<compile_context>
chip_gen: v7x
topology: tpu7x:2x2x1
jax: 0.10.0
libtpu: 0.0.40
codegen_flags: <defaults>
</compile_context>

<pallas_src>
import functools
import math

import jax
import jax.numpy as jnp
from jax.experimental import pallas as pl
from jax.experimental.pallas import tpu as pltpu

LN_EPS = 1e-5      # PyTorch layer_norm_eps default
LANE = 128


def _layernorm(h, gamma, beta):
    """f32 LayerNorm over the last axis."""
    mean = jnp.mean(h, axis=-1, keepdims=True)
    var = jnp.mean((h - mean) ** 2, axis=-1, keepdims=True)
    return (h - mean) * jax.lax.rsqrt(var + LN_EPS) * gamma + beta


def fused_forward_kernel(emb_ref, pe_ref,
                         wqkv_ref, bqkv_ref, wo_ref, bo_ref,
                         ln1g_ref, ln1b_ref,
                         w1_ref, b1_ref, w2_ref, b2_ref,
                         ln2g_ref, ln2b_ref,
                         wout_ref, bout_ref, out_ref,
                         *, nhead, nlayers):
    """Whole forward for one batch tile: pos-enc add -> L encoder layers -> fc_out."""
    Bt, S, E = emb_ref.shape
    H = nhead
    D = E // H
    N = Bt * S
    T_pad = wout_ref.shape[1]

    # Embedding already pre-scaled by sqrt(E) at pack time; positional encoding
    # added with the PyTorch batch_first quirk (broadcast over the sequence).
    x = (emb_ref[...].astype(jnp.float32) + pe_ref[...]).reshape(N, E)   # (N, E) f32

    # Static unroll over layers (L=2).  For deeper stacks switch to
    # lax.fori_loop / a layer grid axis to keep code size & live ranges flat.
    for l in range(nlayers):
        # --- fused QKV projection: ONE lane-dense MXU contraction -------------
        # (1/sqrt(D) is pre-folded into the Q columns of wqkv/bqkv.)
        xb = x.astype(jnp.bfloat16)
        qkv = jnp.dot(xb, wqkv_ref[l],
                      preferred_element_type=jnp.float32) + bqkv_ref[l]   # (N, 3E)

        # --- head-major split (single relayout), merged (head*batch) axis -----
        qkv = jnp.transpose(qkv.reshape(N, 3 * H, D), (1, 0, 2))          # (3H, N, D)
        q = qkv[0 * H:1 * H].reshape(H * Bt, S, D).astype(jnp.bfloat16)
        k = qkv[1 * H:2 * H].reshape(H * Bt, S, D).astype(jnp.bfloat16)
        v = qkv[2 * H:3 * H].reshape(H * Bt, S, D).astype(jnp.bfloat16)

        # --- batched attention, single batch dim z = head*batch ---------------
        s = jnp.einsum('zqd,zkd->zqk', q, k,
                       preferred_element_type=jnp.float32)                # (HB, S, S)
        s = s - jnp.max(s, axis=-1, keepdims=True)
        p = jnp.exp(s)
        p = p * pl.reciprocal(jnp.sum(p, axis=-1, keepdims=True), approx=True)
        attn = jnp.einsum('zqk,zkd->zqd', p.astype(jnp.bfloat16), v,
                          preferred_element_type=jnp.float32)             # (HB, S, D)

        # --- merge heads back to row-major (N, E), output proj + LN1 ----------
        attn = jnp.transpose(attn.reshape(H, N, D), (1, 0, 2)).reshape(N, E)
        ctx = jnp.dot(attn.astype(jnp.bfloat16), wo_ref[l],
                      preferred_element_type=jnp.float32) + bo_ref[l]
        h1 = _layernorm(x + ctx, ln1g_ref[l], ln1b_ref[l])

        # --- feed-forward (relu) + residual + LN2 ------------------------------
        ff = jnp.dot(h1.astype(jnp.bfloat16), w1_ref[l],
                     preferred_element_type=jnp.float32) + b1_ref[l]
        ff = jnp.maximum(ff, 0.0)
        ff = jnp.dot(ff.astype(jnp.bfloat16), w2_ref[l],
                     preferred_element_type=jnp.float32) + b2_ref[l]
        x = _layernorm(h1 + ff, ln2g_ref[l], ln2b_ref[l])

    # --- fc_out: lane-dense (128-wide, zero-padded), bf16 writeback -----------
    y = jnp.dot(x.astype(jnp.bfloat16), wout_ref[...],
                preferred_element_type=jnp.float32) + bout_ref[...]       # (N, T_pad)
    out_ref[...] = y.reshape(Bt, S, T_pad).astype(out_ref.dtype)


def make_positional_encoding(max_len, d_model):
    position = jnp.arange(max_len, dtype=jnp.float32)[:, None]           # (L, 1)
    div_term = jnp.exp(jnp.arange(0, d_model, 2, dtype=jnp.float32)
                       * (-math.log(10000.0) / d_model))                 # (E/2,)
    pe = jnp.zeros((max_len, 1, d_model), dtype=jnp.float32)
    pe = pe.at[:, 0, 0::2].set(jnp.sin(position * div_term))
    pe = pe.at[:, 0, 1::2].set(jnp.cos(position * div_term))
    return pe


def init_params(key, vocab_size, tagset_size, emb_size, nhid, nlayers):
    """PyTorch-layout params (weights pre-transposed so y = x @ W + b)."""
    keys = jax.random.split(key, 2 + 4 * nlayers)
    ki = iter(keys)
    p = {
        "embedding": jax.random.normal(next(ki), (vocab_size, emb_size),
                                       jnp.float32) * 0.1,
        "layers": [],
        "w_out": jax.random.normal(next(ki), (emb_size, tagset_size),
                                   jnp.float32) * 0.05,
        "b_out": jnp.zeros((1, tagset_size), jnp.float32),
    }
    for _ in range(nlayers):
        p["layers"].append({
            # in_proj_weight.T : (E, 3E), bias (1, 3E)
            "w_qkv": jax.random.normal(next(ki), (emb_size, 3 * emb_size),
                                       jnp.float32) * 0.05,
            "b_qkv": jnp.zeros((1, 3 * emb_size), jnp.float32),
            "w_o": jax.random.normal(next(ki), (emb_size, emb_size),
                                     jnp.float32) * 0.05,
            "b_o": jnp.zeros((1, emb_size), jnp.float32),
            "ln1_g": jnp.ones((1, emb_size), jnp.float32),
            "ln1_b": jnp.zeros((1, emb_size), jnp.float32),
            "w1": jax.random.normal(next(ki), (emb_size, nhid),
                                    jnp.float32) * 0.05,
            "b1": jnp.zeros((1, nhid), jnp.float32),
            "w2": jax.random.normal(next(ki), (nhid, emb_size),
                                    jnp.float32) * 0.05,
            "b2": jnp.zeros((1, emb_size), jnp.float32),
            "ln2_g": jnp.ones((1, emb_size), jnp.float32),
            "ln2_b": jnp.zeros((1, emb_size), jnp.float32),
        })
    return p


def pack_params(params, nhead):
    """Stack per-layer weights into (L, ...) arrays, keep QKV fused, fold the
    1/sqrt(D) attention scale into the Q columns, fold sqrt(E) into the
    embedding table, cast matmul weights to bf16, and zero-pad fc_out columns
    to a lane-dense multiple of 128."""
    layers = params["layers"]
    E = params["embedding"].shape[1]
    D = E // nhead
    scale = 1.0 / math.sqrt(D)

    def stack(name):
        return jnp.stack([lp[name] for lp in layers], axis=0)

    w_qkv = stack("w_qkv")                           # (L, E, 3E)
    b_qkv = stack("b_qkv")                           # (L, 1, 3E)
    w_qkv = w_qkv.at[:, :, :E].multiply(scale)       # fold 1/sqrt(D) into Q cols
    b_qkv = b_qkv.at[:, :, :E].multiply(scale)

    packed = {
        # sqrt(E) embedding scale folded at pack time; table stored bf16 so the
        # gathered activation block is half-width in HBM/VMEM.
        "embedding": (params["embedding"] * math.sqrt(E)).astype(jnp.bfloat16),
        "w_qkv": w_qkv.astype(jnp.bfloat16), "b_qkv": b_qkv,
        "w_o": stack("w_o").astype(jnp.bfloat16), "b_o": stack("b_o"),
        "ln1_g": stack("ln1_g"), "ln1_b": stack("ln1_b"),
        "w1": stack("w1").astype(jnp.bfloat16), "b1": stack("b1"),
        "w2": stack("w2").astype(jnp.bfloat16), "b2": stack("b2"),
        "ln2_g": stack("ln2_g"), "ln2_b": stack("ln2_b"),
    }
    w_out, b_out = params["w_out"], params["b_out"]
    T = w_out.shape[1]
    T_pad = ((T + LANE - 1) // LANE) * LANE
    packed["w_out"] = jnp.pad(w_out, ((0, 0), (0, T_pad - T))).astype(jnp.bfloat16)
    packed["b_out"] = jnp.pad(b_out, ((0, 0), (0, T_pad - T)))
    return packed


def ner_transformer_forward(src, packed, pe, *,
                            emb_size, nhead, nlayers, tagset_size):
    B, S = src.shape
    E = emb_size
    T_pad = packed["w_out"].shape[1]

    # Batch tiling: pack enough rows per grid step to fill MXU sublanes
    # (~256 rows target; fine on v5e too, it just saturates its 128-wide MXU).
    Bt = max(1, min(B, 256 // max(S, 1)))
    nb = (B + Bt - 1) // Bt
    B_pad = nb * Bt

    # Embedding gather kept as XLA glue (data-dependent gather); negligible HBM
    # traffic at these shapes.  Table is pre-scaled by sqrt(E) and bf16.
    src_p = jnp.pad(src, ((0, B_pad - B), (0, 0)))
    emb = packed["embedding"][src_p]                      # (B_pad, S, E) bf16
    # Faithful to the PyTorch batch_first quirk: pe is sliced by BATCH index
    # and broadcasts over the sequence dimension.
    pe_b = jnp.pad(pe[:B], ((0, B_pad - B), (0, 0), (0, 0)))   # (B_pad, 1, E) f32

    w_args = (packed["w_qkv"], packed["b_qkv"], packed["w_o"], packed["b_o"],
              packed["ln1_g"], packed["ln1_b"], packed["w1"], packed["b1"],
              packed["w2"], packed["b2"], packed["ln2_g"], packed["ln2_b"],
              packed["w_out"], packed["b_out"])

    def full_spec(a):
        return pl.BlockSpec(a.shape, lambda b, _n=a.ndim: (0,) * _n)

    out_padded = pl.pallas_call(
        functools.partial(fused_forward_kernel, nhead=nhead, nlayers=nlayers),
        out_shape=jax.ShapeDtypeStruct((B_pad, S, T_pad), jnp.bfloat16),
        grid=(nb,),
        in_specs=[pl.BlockSpec((Bt, S, E), lambda b: (b, 0, 0)),
                  pl.BlockSpec((Bt, 1, E), lambda b: (b, 0, 0))]
                 + [full_spec(a) for a in w_args],
        out_specs=pl.BlockSpec((Bt, S, T_pad), lambda b: (b, 0, 0)),
        compiler_params=pltpu.CompilerParams(
            dimension_semantics=("parallel",),
            vmem_limit_bytes=32 * 1024 * 1024),
    )(emb, pe_b, *w_args)

    # Drop batch padding and lane padding (plain JAX); logits stay bf16 so the
    # consumer (argmax / loss) reads half the epilogue bytes.
    return out_padded[:B, :, :tagset_size]


if __name__ == "__main__":
    # Small, module-consistent shapes.
    vocab_size, tagset_size = 50, 9
    emb_size, nhead, nhid, nlayers = 32, 4, 64, 2
    B, S = 2, 8
    max_len = 64

    key = jax.random.PRNGKey(0)
    k_param, k_src = jax.random.split(key)

    params = init_params(k_param, vocab_size, tagset_size, emb_size, nhid, nlayers)
    packed = pack_params(params, nhead)
    pe = make_positional_encoding(max_len, emb_size)
    src = jax.random.randint(k_src, (B, S), 0, vocab_size, dtype=jnp.int32)

    fwd = jax.jit(functools.partial(ner_transformer_forward,
                                    emb_size=emb_size, nhead=nhead,
                                    nlayers=nlayers, tagset_size=tagset_size))
    out = fwd(src, packed, pe)
    out = jax.block_until_ready(out)
    assert out.shape == (B, S, tagset_size)
    assert bool(jnp.all(jnp.isfinite(out.astype(jnp.float32))))
    print("KERNEL_OK")
</pallas_src>

<mosaic_0001>
module attributes {stable_mosaic.version = 11 : i64} {
  func.func @fused_forward_kernel(%arg0: i32, %arg1: memref<2x8x32xbf16, #tpu.memory_space<vmem>>, %arg2: memref<2x1x32xf32, #tpu.memory_space<vmem>>, %arg3: memref<2x32x96xbf16, #tpu.memory_space<vmem>>, %arg4: memref<2x1x96xf32, #tpu.memory_space<vmem>>, %arg5: memref<2x32x32xbf16, #tpu.memory_space<vmem>>, %arg6: memref<2x1x32xf32, #tpu.memory_space<vmem>>, %arg7: memref<2x1x32xf32, #tpu.memory_space<vmem>>, %arg8: memref<2x1x32xf32, #tpu.memory_space<vmem>>, %arg9: memref<2x32x64xbf16, #tpu.memory_space<vmem>>, %arg10: memref<2x1x64xf32, #tpu.memory_space<vmem>>, %arg11: memref<2x64x32xbf16, #tpu.memory_space<vmem>>, %arg12: memref<2x1x32xf32, #tpu.memory_space<vmem>>, %arg13: memref<2x1x32xf32, #tpu.memory_space<vmem>>, %arg14: memref<2x1x32xf32, #tpu.memory_space<vmem>>, %arg15: memref<32x128xbf16, #tpu.memory_space<vmem>>, %arg16: memref<1x128xf32, #tpu.memory_space<vmem>>, %arg17: memref<2x8x128xbf16, #tpu.memory_space<vmem>>) attributes {dimension_semantics = [#tpu.dimension_semantics<parallel>], iteration_bounds = array<i64: 1>, scalar_prefetch = 0 : i64, scratch_operands = 0 : i64, tpu.core_type = #tpu.core_type<tc>, window_params = [{transform_indices = @transform_0, window_bounds = array<i64: 2, 8, 32>}, {transform_indices = @transform_1, window_bounds = array<i64: 2, 1, 32>}, {pipeline_mode = #tpu.pipeline_mode<synchronous>, transform_indices = @transform_2, window_bounds = array<i64: 2, 32, 96>}, {pipeline_mode = #tpu.pipeline_mode<synchronous>, transform_indices = @transform_3, window_bounds = array<i64: 2, 1, 96>}, {pipeline_mode = #tpu.pipeline_mode<synchronous>, transform_indices = @transform_4, window_bounds = array<i64: 2, 32, 32>}, {pipeline_mode = #tpu.pipeline_mode<synchronous>, transform_indices = @transform_5, window_bounds = array<i64: 2, 1, 32>}, {pipeline_mode = #tpu.pipeline_mode<synchronous>, transform_indices = @transform_6, window_bounds = array<i64: 2, 1, 32>}, {pipeline_mode = #tpu.pipeline_mode<synchronous>, transform_indices = @transform_7, window_bounds = array<i64: 2, 1, 32>}, {pipeline_mode = #tpu.pipeline_mode<synchronous>, transform_indices = @transform_8, window_bounds = array<i64: 2, 32, 64>}, {pipeline_mode = #tpu.pipeline_mode<synchronous>, transform_indices = @transform_9, window_bounds = array<i64: 2, 1, 64>}, {pipeline_mode = #tpu.pipeline_mode<synchronous>, transform_indices = @transform_10, window_bounds = array<i64: 2, 64, 32>}, {pipeline_mode = #tpu.pipeline_mode<synchronous>, transform_indices = @transform_11, window_bounds = array<i64: 2, 1, 32>}, {pipeline_mode = #tpu.pipeline_mode<synchronous>, transform_indices = @transform_12, window_bounds = array<i64: 2, 1, 32>}, {pipeline_mode = #tpu.pipeline_mode<synchronous>, transform_indices = @transform_13, window_bounds = array<i64: 2, 1, 32>}, {pipeline_mode = #tpu.pipeline_mode<synchronous>, transform_indices = @transform_14, window_bounds = array<i64: 32, 128>}, {pipeline_mode = #tpu.pipeline_mode<synchronous>, transform_indices = @transform_15, window_bounds = array<i64: 1, 128>}, {transform_indices = @transform_16, window_bounds = array<i64: 2, 8, 128>}]} {
    %c0 = arith.constant 0 : index
    %c0_0 = arith.constant 0 : index
    %c0_1 = arith.constant 0 : index
    %0 = vector.load %arg1[%c0, %c0_0, %c0_1] : memref<2x8x32xbf16, #tpu.memory_space<vmem>>, vector<2x8x32xbf16>
    %1 = arith.extf %0 : vector<2x8x32xbf16> to vector<2x8x32xf32>
    %c0_2 = arith.constant 0 : index
    %c0_3 = arith.constant 0 : index
    %c0_4 = arith.constant 0 : index
    %2 = vector.load %arg2[%c0_2, %c0_3, %c0_4] : memref<2x1x32xf32, #tpu.memory_space<vmem>>, vector<2x1x32xf32>
    %3 = vector.broadcast %2 : vector<2x1x32xf32> to vector<2x8x32xf32>
    %4 = arith.addf %1, %3 : vector<2x8x32xf32>
    %5 = vector.shape_cast %4 : vector<2x8x32xf32> to vector<16x32xf32>
    %6 = arith.truncf %5 : vector<16x32xf32> to vector<16x32xbf16>
    %c0_5 = arith.constant 0 : index
    %c0_6 = arith.constant 0 : index
    %c0_7 = arith.constant 0 : index
    %7 = vector.load %arg3[%c0_5, %c0_6, %c0_7] : memref<2x32x96xbf16, #tpu.memory_space<vmem>>, vector<1x32x96xbf16>
    %8 = vector.shape_cast %7 : vector<1x32x96xbf16> to vector<32x96xbf16>
    %cst = arith.constant dense<0.000000e+00> : vector<16x96xf32>
    %9 = tpu.matmul %6, %8, %cst {dimension_numbers = #tpu.dot_dimension_numbers<[1], [0], [0], [1], [0, 0, 1, 1], [], []>} : vector<16x32xbf16>, vector<32x96xbf16>, vector<16x96xf32> -> vector<16x96xf32>
    %c0_8 = arith.constant 0 : index
    %c0_9 = arith.constant 0 : index
    %c0_10 = arith.constant 0 : index
    %10 = vector.load %arg4[%c0_8, %c0_9, %c0_10] : memref<2x1x96xf32, #tpu.memory_space<vmem>>, vector<1x1x96xf32>
    %11 = vector.shape_cast %10 : vector<1x1x96xf32> to vector<1x96xf32>
    %12 = vector.broadcast %11 : vector<1x96xf32> to vector<16x96xf32>
    %13 = arith.addf %9, %12 : vector<16x96xf32>
    %14 = vector.shape_cast %13 : vector<16x96xf32> to vector<16x12x8xf32>
    %15 = tpu.transpose %14, [1, 0, 2] : vector<16x12x8xf32> -> vector<12x16x8xf32>
    %16 = vector.extract_strided_slice %15 {offsets = [0, 0, 0], sizes = [4, 16, 8], strides = [1, 1, 1]} : vector<12x16x8xf32> to vector<4x16x8xf32>
    %17 = vector.shape_cast %16 : vector<4x16x8xf32> to vector<8x8x8xf32>
    %18 = arith.truncf %17 : vector<8x8x8xf32> to vector<8x8x8xbf16>
    %19 = vector.extract_strided_slice %15 {offsets = [4, 0, 0], sizes = [4, 16, 8], strides = [1, 1, 1]} : vector<12x16x8xf32> to vector<4x16x8xf32>
    %20 = vector.shape_cast %19 : vector<4x16x8xf32> to vector<8x8x8xf32>
    %21 = arith.truncf %20 : vector<8x8x8xf32> to vector<8x8x8xbf16>
    %22 = vector.extract_strided_slice %15 {offsets = [8, 0, 0], sizes = [4, 16, 8], strides = [1, 1, 1]} : vector<12x16x8xf32> to vector<4x16x8xf32>
    %23 = vector.shape_cast %22 : vector<4x16x8xf32> to vector<8x8x8xf32>
    %24 = arith.truncf %23 : vector<8x8x8xf32> to vector<8x8x8xbf16>
    "tpu.trace_start"() <{level = 10 : i32, message = "zqd,zkd->zqk"}> : () -> ()
    %cst_11 = arith.constant dense<0.000000e+00> : vector<8x8x8xf32>
    %25 = tpu.matmul %18, %21, %cst_11 {dimension_numbers = #tpu.dot_dimension_numbers<[2], [2], [1], [1], [0, 0, 0, 1, 1, 1], [0], [0]>} : vector<8x8x8xbf16>, vector<8x8x8xbf16>, vector<8x8x8xf32> -> vector<8x8x8xf32>
    "tpu.trace_stop"() : () -> ()
    %cst_12 = arith.constant dense<0xFF800000> : vector<8x8xf32>
    %26 = vector.multi_reduction <maximumf>, %25, %cst_12 [2] : vector<8x8x8xf32> to vector<8x8xf32>
    %27 = vector.shape_cast %26 : vector<8x8xf32> to vector<8x8x1xf32>
    %28 = vector.broadcast %27 : vector<8x8x1xf32> to vector<8x8x8xf32>
    %29 = arith.subf %25, %28 : vector<8x8x8xf32>
    %30 = math.exp %29 : vector<8x8x8xf32>
    %cst_13 = arith.constant dense<0.000000e+00> : vector<8x8xf32>
    %31 = vector.multi_reduction <add>, %30, %cst_13 [2] : vector<8x8x8xf32> to vector<8x8xf32>
    %32 = vector.shape_cast %31 : vector<8x8xf32> to vector<8x8x1xf32>
    %33 = tpu.reciprocal %32 {approx = true} : vector<8x8x1xf32> -> vector<8x8x1xf32>
    %34 = vector.broadcast %33 : vector<8x8x1xf32> to vector<8x8x8xf32>
    %35 = arith.mulf %30, %34 : vector<8x8x8xf32>
    %36 = arith.truncf %35 : vector<8x8x8xf32> to vector<8x8x8xbf16>
    "tpu.trace_start"() <{level = 10 : i32, message = "zqk,zkd->zqd"}> : () -> ()
    %cst_14 = arith.constant dense<0.000000e+00> : vector<8x8x8xf32>
    %37 = tpu.matmul %36, %24, %cst_14 {dimension_numbers = #tpu.dot_dimension_numbers<[2], [1], [1], [2], [0, 0, 0, 1, 1, 2], [0], [0]>} : vector<8x8x8xbf16>, vector<8x8x8xbf16>, vector<8x8x8xf32> -> vector<8x8x8xf32>
    "tpu.trace_stop"() : () -> ()
    %38 = vector.shape_cast %37 : vector<8x8x8xf32> to vector<4x16x8xf32>
    %39 = tpu.transpose %38, [1, 0, 2] : vector<4x16x8xf32> -> vector<16x4x8xf32>
    %40 = vector.shape_cast %39 : vector<16x4x8xf32> to vector<16x32xf32>
    %41 = arith.truncf %40 : vector<16x32xf32> to vector<16x32xbf16>
    %c0_15 = arith.constant 0 : index
    %c0_16 = arith.constant 0 : index
    %c0_17 = arith.constant 0 : index
    %42 = vector.load %arg5[%c0_15, %c0_16, %c0_17] : memref<2x32x32xbf16, #tpu.memory_space<vmem>>, vector<1x32x32xbf16>
    %43 = vector.shape_cast %42 : vector<1x32x32xbf16> to vector<32x32xbf16>
    %cst_18 = arith.constant dense<0.000000e+00> : vector<16x32xf32>
    %44 = tpu.matmul %41, %43, %cst_18 {dimension_numbers = #tpu.dot_dimension_numbers<[1], [0], [0], [1], [0, 0, 1, 1], [], []>} : vector<16x32xbf16>, vector<32x32xbf16>, vector<16x32xf32> -> vector<16x32xf32>
    %c0_19 = arith.constant 0 : index
    %c0_20 = arith.constant 0 : index
    %c0_21 = arith.constant 0 : index
    %45 = vector.load %arg6[%c0_19, %c0_20, %c0_21] : memref<2x1x32xf32, #tpu.memory_space<vmem>>, vector<1x1x32xf32>
    %46 = vector.shape_cast %45 : vector<1x1x32xf32> to vector<1x32xf32>
    %47 = vector.broadcast %46 : vector<1x32xf32> to vector<16x32xf32>
    %48 = arith.addf %44, %47 : vector<16x32xf32>
    %49 = arith.addf %5, %48 : vector<16x32xf32>
    %c0_22 = arith.constant 0 : index
    %c0_23 = arith.constant 0 : index
    %c0_24 = arith.constant 0 : index
    %50 = vector.load %arg7[%c0_22, %c0_23, %c0_24] : memref<2x1x32xf32, #tpu.memory_space<vmem>>, vector<1x1x32xf32>
    %51 = vector.shape_cast %50 : vector<1x1x32xf32> to vector<1x32xf32>
    %c0_25 = arith.constant 0 : index
    %c0_26 = arith.constant 0 : index
    %c0_27 = arith.constant 0 : index
    %52 = vector.load %arg8[%c0_25, %c0_26, %c0_27] : memref<2x1x32xf32, #tpu.memory_space<vmem>>, vector<1x1x32xf32>
    %53 = vector.shape_cast %52 : vector<1x1x32xf32> to vector<1x32xf32>
    %cst_28 = arith.constant dense<0.000000e+00> : vector<16xf32>
    %54 = vector.multi_reduction <add>, %49, %cst_28 [1] : vector<16x32xf32> to vector<16xf32>
    %55 = vector.shape_cast %54 : vector<16xf32> to vector<16x1xf32>
    %cst_29 = arith.constant 3.200000e+01 : f32
    %56 = vector.broadcast %cst_29 : f32 to vector<16x1xf32>
    %57 = arith.divf %55, %56 : vector<16x1xf32>
    %58 = vector.broadcast %57 : vector<16x1xf32> to vector<16x32xf32>
    %59 = arith.subf %49, %58 : vector<16x32xf32>
    %60 = arith.mulf %59, %59 : vector<16x32xf32>
    %cst_30 = arith.constant dense<0.000000e+00> : vector<16xf32>
    %61 = vector.multi_reduction <add>, %60, %cst_30 [1] : vector<16x32xf32> to vector<16xf32>
    %62 = vector.shape_cast %61 : vector<16xf32> to vector<16x1xf32>
    %cst_31 = arith.constant 3.200000e+01 : f32
    %63 = vector.broadcast %cst_31 : f32 to vector<16x1xf32>
    %64 = arith.divf %62, %63 : vector<16x1xf32>
    %65 = vector.broadcast %57 : vector<16x1xf32> to vector<16x32xf32>
    %66 = arith.subf %49, %65 : vector<16x32xf32>
    %cst_32 = arith.constant 9.99999974E-6 : f32
    %67 = vector.broadcast %cst_32 : f32 to vector<16x1xf32>
    %68 = arith.addf %64, %67 : vector<16x1xf32>
    %69 = math.rsqrt %68 : vector<16x1xf32>
    %70 = vector.broadcast %69 : vector<16x1xf32> to vector<16x32xf32>
    %71 = arith.mulf %66, %70 : vector<16x32xf32>
    %72 = vector.broadcast %51 : vector<1x32xf32> to vector<16x32xf32>
    %73 = arith.mulf %71, %72 : vector<16x32xf32>
    %74 = vector.broadcast %53 : vector<1x32xf32> to vector<16x32xf32>
    %75 = arith.addf %73, %74 : vector<16x32xf32>
    %76 = arith.truncf %75 : vector<16x32xf32> to vector<16x32xbf16>
    %c0_33 = arith.constant 0 : index
    %c0_34 = arith.constant 0 : index
    %c0_35 = arith.constant 0 : index
    %77 = vector.load %arg9[%c0_33, %c0_34, %c0_35] : memref<2x32x64xbf16, #tpu.memory_space<vmem>>, vector<1x32x64xbf16>
    %78 = vector.shape_cast %77 : vector<1x32x64xbf16> to vector<32x64xbf16>
    %cst_36 = arith.constant dense<0.000000e+00> : vector<16x64xf32>
    %79 = tpu.matmul %76, %78, %cst_36 {dimension_numbers = #tpu.dot_dimension_numbers<[1], [0], [0], [1], [0, 0, 1, 1], [], []>} : vector<16x32xbf16>, vector<32x64xbf16>, vector<16x64xf32> -> vector<16x64xf32>
    %c0_37 = arith.constant 0 : index
    %c0_38 = arith.constant 0 : index
    %c0_39 = arith.constant 0 : index
    %80 = vector.load %arg10[%c0_37, %c0_38, %c0_39] : memref<2x1x64xf32, #tpu.memory_space<vmem>>, vector<1x1x64xf32>
    %81 = vector.shape_cast %80 : vector<1x1x64xf32> to vector<1x64xf32>
    %82 = vector.broadcast %81 : vector<1x64xf32> to vector<16x64xf32>
    %83 = arith.addf %79, %82 : vector<16x64xf32>
    %cst_40 = arith.constant 0.000000e+00 : f32
    %84 = vector.broadcast %cst_40 : f32 to vector<16x64xf32>
    %85 = arith.maximumf %83, %84 : vector<16x64xf32>
    %86 = arith.truncf %85 : vector<16x64xf32> to vector<16x64xbf16>
    %c0_41 = arith.constant 0 : index
    %c0_42 = arith.constant 0 : index
    %c0_43 = arith.constant 0 : index
    %87 = vector.load %arg11[%c0_41, %c0_42, %c0_43] : memref<2x64x32xbf16, #tpu.memory_space<vmem>>, vector<1x64x32xbf16>
    %88 = vector.shape_cast %87 : vector<1x64x32xbf16> to vector<64x32xbf16>
    %cst_44 = arith.constant dense<0.000000e+00> : vector<16x32xf32>
    %89 = tpu.matmul %86, %88, %cst_44 {dimension_numbers = #tpu.dot_dimension_numbers<[1], [0], [0], [1], [0, 0, 1, 1], [], []>} : vector<16x64xbf16>, vector<64x32xbf16>, vector<16x32xf32> -> vector<16x32xf32>
    %c0_45 = arith.constant 0 : index
    %c0_46 = arith.constant 0 : index
    %c0_47 = arith.constant 0 : index
    %90 = vector.load %arg12[%c0_45, %c0_46, %c0_47] : memref<2x1x32xf32, #tpu.memory_space<vmem>>, vector<1x1x32xf32>
    %91 = vector.shape_cast %90 : vector<1x1x32xf32> to vector<1x32xf32>
    %92 = vector.broadcast %91 : vector<1x32xf32> to vector<16x32xf32>
    %93 = arith.addf %89, %92 : vector<16x32xf32>
    %94 = arith.addf %75, %93 : vector<16x32xf32>
    %c0_48 = arith.constant 0 : index
    %c0_49 = arith.constant 0 : index
    %c0_50 = arith.constant 0 : index
    %95 = vector.load %arg13[%c0_48, %c0_49, %c0_50] : memref<2x1x32xf32, #tpu.memory_space<vmem>>, vector<1x1x32xf32>
    %96 = vector.shape_cast %95 : vector<1x1x32xf32> to vector<1x32xf32>
    %c0_51 = arith.constant 0 : index
    %c0_52 = arith.constant 0 : index
    %c0_53 = arith.constant 0 : index
    %97 = vector.load %arg14[%c0_51, %c0_52, %c0_53] : memref<2x1x32xf32, #tpu.memory_space<vmem>>, vector<1x1x32xf32>
    %98 = vector.shape_cast %97 : vector<1x1x32xf32> to vector<1x32xf32>
    %cst_54 = arith.constant dense<0.000000e+00> : vector<16xf32>
    %99 = vector.multi_reduction <add>, %94, %cst_54 [1] : vector<16x32xf32> to vector<16xf32>
    %100 = vector.shape_cast %99 : vector<16xf32> to vector<16x1xf32>
    %cst_55 = arith.constant 3.200000e+01 : f32
    %101 = vector.broadcast %cst_55 : f32 to vector<16x1xf32>
    %102 = arith.divf %100, %101 : vector<16x1xf32>
    %103 = vector.broadcast %102 : vector<16x1xf32> to vector<16x32xf32>
    %104 = arith.subf %94, %103 : vector<16x32xf32>
    %105 = arith.mulf %104, %104 : vector<16x32xf32>
    %cst_56 = arith.constant dense<0.000000e+00> : vector<16xf32>
    %106 = vector.multi_reduction <add>, %105, %cst_56 [1] : vector<16x32xf32> to vector<16xf32>
    %107 = vector.shape_cast %106 : vector<16xf32> to vector<16x1xf32>
    %cst_57 = arith.constant 3.200000e+01 : f32
    %108 = vector.broadcast %cst_57 : f32 to vector<16x1xf32>
    %109 = arith.divf %107, %108 : vector<16x1xf32>
    %110 = vector.broadcast %102 : vector<16x1xf32> to vector<16x32xf32>
    %111 = arith.subf %94, %110 : vector<16x32xf32>
    %cst_58 = arith.constant 9.99999974E-6 : f32
    %112 = vector.broadcast %cst_58 : f32 to vector<16x1xf32>
    %113 = arith.addf %109, %112 : vector<16x1xf32>
    %114 = math.rsqrt %113 : vector<16x1xf32>
    %115 = vector.broadcast %114 : vector<16x1xf32> to vector<16x32xf32>
    %116 = arith.mulf %111, %115 : vector<16x32xf32>
    %117 = vector.broadcast %96 : vector<1x32xf32> to vector<16x32xf32>
    %118 = arith.mulf %116, %117 : vector<16x32xf32>
    %119 = vector.broadcast %98 : vector<1x32xf32> to vector<16x32xf32>
    %120 = arith.addf %118, %119 : vector<16x32xf32>
    %121 = arith.truncf %120 : vector<16x32xf32> to vector<16x32xbf16>
    %c1 = arith.constant 1 : index
    %c0_59 = arith.constant 0 : index
    %c0_60 = arith.constant 0 : index
    %122 = vector.load %arg3[%c1, %c0_59, %c0_60] : memref<2x32x96xbf16, #tpu.memory_space<vmem>>, vector<1x32x96xbf16>
    %123 = vector.shape_cast %122 : vector<1x32x96xbf16> to vector<32x96xbf16>
    %cst_61 = arith.constant dense<0.000000e+00> : vector<16x96xf32>
    %124 = tpu.matmul %121, %123, %cst_61 {dimension_numbers = #tpu.dot_dimension_numbers<[1], [0], [0], [1], [0, 0, 1, 1], [], []>} : vector<16x32xbf16>, vector<32x96xbf16>, vector<16x96xf32> -> vector<16x96xf32>
    %c1_62 = arith.constant 1 : index
    %c0_63 = arith.constant 0 : index
    %c0_64 = arith.constant 0 : index
    %125 = vector.load %arg4[%c1_62, %c0_63, %c0_64] : memref<2x1x96xf32, #tpu.memory_space<vmem>>, vector<1x1x96xf32>
    %126 = vector.shape_cast %125 : vector<1x1x96xf32> to vector<1x96xf32>
    %127 = vector.broadcast %126 : vector<1x96xf32> to vector<16x96xf32>
    %128 = arith.addf %124, %127 : vector<16x96xf32>
    %129 = vector.shape_cast %128 : vector<16x96xf32> to vector<16x12x8xf32>
    %130 = tpu.transpose %129, [1, 0, 2] : vector<16x12x8xf32> -> vector<12x16x8xf32>
    %131 = vector.extract_strided_slice %130 {offsets = [0, 0, 0], sizes = [4, 16, 8], strides = [1, 1, 1]} : vector<12x16x8xf32> to vector<4x16x8xf32>
    %132 = vector.shape_cast %131 : vector<4x16x8xf32> to vector<8x8x8xf32>
    %133 = arith.truncf %132 : vector<8x8x8xf32> to vector<8x8x8xbf16>
    %134 = vector.extract_strided_slice %130 {offsets = [4, 0, 0], sizes = [4, 16, 8], strides = [1, 1, 1]} : vector<12x16x8xf32> to vector<4x16x8xf32>
    %135 = vector.shape_cast %134 : vector<4x16x8xf32> to vector<8x8x8xf32>
    %136 = arith.truncf %135 : vector<8x8x8xf32> to vector<8x8x8xbf16>
    %137 = vector.extract_strided_slice %130 {offsets = [8, 0, 0], sizes = [4, 16, 8], strides = [1, 1, 1]} : vector<12x16x8xf32> to vector<4x16x8xf32>
    %138 = vector.shape_cast %137 : vector<4x16x8xf32> to vector<8x8x8xf32>
    %139 = arith.truncf %138 : vector<8x8x8xf32> to vector<8x8x8xbf16>
    "tpu.trace_start"() <{level = 10 : i32, message = "zqd,zkd->zqk"}> : () -> ()
    %cst_65 = arith.constant dense<0.000000e+00> : vector<8x8x8xf32>
    %140 = tpu.matmul %133, %136, %cst_65 {dimension_numbers = #tpu.dot_dimension_numbers<[2], [2], [1], [1], [0, 0, 0, 1, 1, 1], [0], [0]>} : vector<8x8x8xbf16>, vector<8x8x8xbf16>, vector<8x8x8xf32> -> vector<8x8x8xf32>
    "tpu.trace_stop"() : () -> ()
    %cst_66 = arith.constant dense<0xFF800000> : vector<8x8xf32>
    %141 = vector.multi_reduction <maximumf>, %140, %cst_66 [2] : vector<8x8x8xf32> to vector<8x8xf32>
    %142 = vector.shape_cast %141 : vector<8x8xf32> to vector<8x8x1xf32>
    %143 = vector.broadcast %142 : vector<8x8x1xf32> to vector<8x8x8xf32>
    %144 = arith.subf %140, %143 : vector<8x8x8xf32>
    %145 = math.exp %144 : vector<8x8x8xf32>
    %cst_67 = arith.constant dense<0.000000e+00> : vector<8x8xf32>
    %146 = vector.multi_reduction <add>, %145, %cst_67 [2] : vector<8x8x8xf32> to vector<8x8xf32>
    %147 = vector.shape_cast %146 : vector<8x8xf32> to vector<8x8x1xf32>
    %148 = tpu.reciprocal %147 {approx = true} : vector<8x8x1xf32> -> vector<8x8x1xf32>
    %149 = vector.broadcast %148 : vector<8x8x1xf32> to vector<8x8x8xf32>
    %150 = arith.mulf %145, %149 : vector<8x8x8xf32>
    %151 = arith.truncf %150 : vector<8x8x8xf32> to vector<8x8x8xbf16>
    "tpu.trace_start"() <{level = 10 : i32, message = "zqk,zkd->zqd"}> : () -> ()
    %cst_68 = arith.constant dense<0.000000e+00> : vector<8x8x8xf32>
    %152 = tpu.matmul %151, %139, %cst_68 {dimension_numbers = #tpu.dot_dimension_numbers<[2], [1], [1], [2], [0, 0, 0, 1, 1, 2], [0], [0]>} : vector<8x8x8xbf16>, vector<8x8x8xbf16>, vector<8x8x8xf32> -> vector<8x8x8xf32>
    "tpu.trace_stop"() : () -> ()
    %153 = vector.shape_cast %152 : vector<8x8x8xf32> to vector<4x16x8xf32>
    %154 = tpu.transpose %153, [1, 0, 2] : vector<4x16x8xf32> -> vector<16x4x8xf32>
    %155 = vector.shape_cast %154 : vector<16x4x8xf32> to vector<16x32xf32>
    %156 = arith.truncf %155 : vector<16x32xf32> to vector<16x32xbf16>
    %c1_69 = arith.constant 1 : index
    %c0_70 = arith.constant 0 : index
    %c0_71 = arith.constant 0 : index
    %157 = vector.load %arg5[%c1_69, %c0_70, %c0_71] : memref<2x32x32xbf16, #tpu.memory_space<vmem>>, vector<1x32x32xbf16>
    %158 = vector.shape_cast %157 : vector<1x32x32xbf16> to vector<32x32xbf16>
    %cst_72 = arith.constant dense<0.000000e+00> : vector<16x32xf32>
    %159 = tpu.matmul %156, %158, %cst_72 {dimension_numbers = #tpu.dot_dimension_numbers<[1], [0], [0], [1], [0, 0, 1, 1], [], []>} : vector<16x32xbf16>, vector<32x32xbf16>, vector<16x32xf32> -> vector<16x32xf32>
    %c1_73 = arith.constant 1 : index
    %c0_74 = arith.constant 0 : index
    %c0_75 = arith.constant 0 : index
    %160 = vector.load %arg6[%c1_73, %c0_74, %c0_75] : memref<2x1x32xf32, #tpu.memory_space<vmem>>, vector<1x1x32xf32>
    %161 = vector.shape_cast %160 : vector<1x1x32xf32> to vector<1x32xf32>
    %162 = vector.broadcast %161 : vector<1x32xf32> to vector<16x32xf32>
    %163 = arith.addf %159, %162 : vector<16x32xf32>
    %164 = arith.addf %120, %163 : vector<16x32xf32>
    %c1_76 = arith.constant 1 : index
    %c0_77 = arith.constant 0 : index
    %c0_78 = arith.constant 0 : index
    %165 = vector.load %arg7[%c1_76, %c0_77, %c0_78] : memref<2x1x32xf32, #tpu.memory_space<vmem>>, vector<1x1x32xf32>
    %166 = vector.shape_cast %165 : vector<1x1x32xf32> to vector<1x32xf32>
    %c1_79 = arith.constant 1 : index
    %c0_80 = arith.constant 0 : index
    %c0_81 = arith.constant 0 : index
    %167 = vector.load %arg8[%c1_79, %c0_80, %c0_81] : memref<2x1x32xf32, #tpu.memory_space<vmem>>, vector<1x1x32xf32>
    %168 = vector.shape_cast %167 : vector<1x1x32xf32> to vector<1x32xf32>
    %cst_82 = arith.constant dense<0.000000e+00> : vector<16xf32>
    %169 = vector.multi_reduction <add>, %164, %cst_82 [1] : vector<16x32xf32> to vector<16xf32>
    %170 = vector.shape_cast %169 : vector<16xf32> to vector<16x1xf32>
    %cst_83 = arith.constant 3.200000e+01 : f32
    %171 = vector.broadcast %cst_83 : f32 to vector<16x1xf32>
    %172 = arith.divf %170, %171 : vector<16x1xf32>
    %173 = vector.broadcast %172 : vector<16x1xf32> to vector<16x32xf32>
    %174 = arith.subf %164, %173 : vector<16x32xf32>
    %175 = arith.mulf %174, %174 : vector<16x32xf32>
    %cst_84 = arith.constant dense<0.000000e+00> : vector<16xf32>
    %176 = vector.multi_reduction <add>, %175, %cst_84 [1] : vector<16x32xf32> to vector<16xf32>
    %177 = vector.shape_cast %176 : vector<16xf32> to vector<16x1xf32>
    %cst_85 = arith.constant 3.200000e+01 : f32
    %178 = vector.broadcast %cst_85 : f32 to vector<16x1xf32>
    %179 = arith.divf %177, %178 : vector<16x1xf32>
    %180 = vector.broadcast %172 : vector<16x1xf32> to vector<16x32xf32>
    %181 = arith.subf %164, %180 : vector<16x32xf32>
    %cst_86 = arith.constant 9.99999974E-6 : f32
    %182 = vector.broadcast %cst_86 : f32 to vector<16x1xf32>
    %183 = arith.addf %179, %182 : vector<16x1xf32>
    %184 = math.rsqrt %183 : vector<16x1xf32>
    %185 = vector.broadcast %184 : vector<16x1xf32> to vector<16x32xf32>
    %186 = arith.mulf %181, %185 : vector<16x32xf32>
    %187 = vector.broadcast %166 : vector<1x32xf32> to vector<16x32xf32>
    %188 = arith.mulf %186, %187 : vector<16x32xf32>
    %189 = vector.broadcast %168 : vector<1x32xf32> to vector<16x32xf32>
    %190 = arith.addf %188, %189 : vector<16x32xf32>
    %191 = arith.truncf %190 : vector<16x32xf32> to vector<16x32xbf16>
    %c1_87 = arith.constant 1 : index
    %c0_88 = arith.constant 0 : index
    %c0_89 = arith.constant 0 : index
    %192 = vector.load %arg9[%c1_87, %c0_88, %c0_89] : memref<2x32x64xbf16, #tpu.memory_space<vmem>>, vector<1x32x64xbf16>
    %193 = vector.shape_cast %192 : vector<1x32x64xbf16> to vector<32x64xbf16>
    %cst_90 = arith.constant dense<0.000000e+00> : vector<16x64xf32>
    %194 = tpu.matmul %191, %193, %cst_90 {dimension_numbers = #tpu.dot_dimension_numbers<[1], [0], [0], [1], [0, 0, 1, 1], [], []>} : vector<16x32xbf16>, vector<32x64xbf16>, vector<16x64xf32> -> vector<16x64xf32>
    %c1_91 = arith.constant 1 : index
    %c0_92 = arith.constant 0 : index
    %c0_93 = arith.constant 0 : index
    %195 = vector.load %arg10[%c1_91, %c0_92, %c0_93] : memref<2x1x64xf32, #tpu.memory_space<vmem>>, vector<1x1x64xf32>
    %196 = vector.shape_cast %195 : vector<1x1x64xf32> to vector<1x64xf32>
    %197 = vector.broadcast %196 : vector<1x64xf32> to vector<16x64xf32>
    %198 = arith.addf %194, %197 : vector<16x64xf32>
    %cst_94 = arith.constant 0.000000e+00 : f32
    %199 = vector.broadcast %cst_94 : f32 to vector<16x64xf32>
    %200 = arith.maximumf %198, %199 : vector<16x64xf32>
    %201 = arith.truncf %200 : vector<16x64xf32> to vector<16x64xbf16>
    %c1_95 = arith.constant 1 : index
    %c0_96 = arith.constant 0 : index
    %c0_97 = arith.constant 0 : index
    %202 = vector.load %arg11[%c1_95, %c0_96, %c0_97] : memref<2x64x32xbf16, #tpu.memory_space<vmem>>, vector<1x64x32xbf16>
    %203 = vector.shape_cast %202 : vector<1x64x32xbf16> to vector<64x32xbf16>
    %cst_98 = arith.constant dense<0.000000e+00> : vector<16x32xf32>
    %204 = tpu.matmul %201, %203, %cst_98 {dimension_numbers = #tpu.dot_dimension_numbers<[1], [0], [0], [1], [0, 0, 1, 1], [], []>} : vector<16x64xbf16>, vector<64x32xbf16>, vector<16x32xf32> -> vector<16x32xf32>
    %c1_99 = arith.constant 1 : index
    %c0_100 = arith.constant 0 : index
    %c0_101 = arith.constant 0 : index
    %205 = vector.load %arg12[%c1_99, %c0_100, %c0_101] : memref<2x1x32xf32, #tpu.memory_space<vmem>>, vector<1x1x32xf32>
    %206 = vector.shape_cast %205 : vector<1x1x32xf32> to vector<1x32xf32>
    %207 = vector.broadcast %206 : vector<1x32xf32> to vector<16x32xf32>
    %208 = arith.addf %204, %207 : vector<16x32xf32>
    %209 = arith.addf %190, %208 : vector<16x32xf32>
    %c1_102 = arith.constant 1 : index
    %c0_103 = arith.constant 0 : index
    %c0_104 = arith.constant 0 : index
    %210 = vector.load %arg13[%c1_102, %c0_103, %c0_104] : memref<2x1x32xf32, #tpu.memory_space<vmem>>, vector<1x1x32xf32>
    %211 = vector.shape_cast %210 : vector<1x1x32xf32> to vector<1x32xf32>
    %c1_105 = arith.constant 1 : index
    %c0_106 = arith.constant 0 : index
    %c0_107 = arith.constant 0 : index
    %212 = vector.load %arg14[%c1_105, %c0_106, %c0_107] : memref<2x1x32xf32, #tpu.memory_space<vmem>>, vector<1x1x32xf32>
    %213 = vector.shape_cast %212 : vector<1x1x32xf32> to vector<1x32xf32>
    %cst_108 = arith.constant dense<0.000000e+00> : vector<16xf32>
    %214 = vector.multi_reduction <add>, %209, %cst_108 [1] : vector<16x32xf32> to vector<16xf32>
    %215 = vector.shape_cast %214 : vector<16xf32> to vector<16x1xf32>
    %cst_109 = arith.constant 3.200000e+01 : f32
    %216 = vector.broadcast %cst_109 : f32 to vector<16x1xf32>
    %217 = arith.divf %215, %216 : vector<16x1xf32>
    %218 = vector.broadcast %217 : vector<16x1xf32> to vector<16x32xf32>
    %219 = arith.subf %209, %218 : vector<16x32xf32>
    %220 = arith.mulf %219, %219 : vector<16x32xf32>
    %cst_110 = arith.constant dense<0.000000e+00> : vector<16xf32>
    %221 = vector.multi_reduction <add>, %220, %cst_110 [1] : vector<16x32xf32> to vector<16xf32>
    %222 = vector.shape_cast %221 : vector<16xf32> to vector<16x1xf32>
    %cst_111 = arith.constant 3.200000e+01 : f32
    %223 = vector.broadcast %cst_111 : f32 to vector<16x1xf32>
    %224 = arith.divf %222, %223 : vector<16x1xf32>
    %225 = vector.broadcast %217 : vector<16x1xf32> to vector<16x32xf32>
    %226 = arith.subf %209, %225 : vector<16x32xf32>
    %cst_112 = arith.constant 9.99999974E-6 : f32
    %227 = vector.broadcast %cst_112 : f32 to vector<16x1xf32>
    %228 = arith.addf %224, %227 : vector<16x1xf32>
    %229 = math.rsqrt %228 : vector<16x1xf32>
    %230 = vector.broadcast %229 : vector<16x1xf32> to vector<16x32xf32>
    %231 = arith.mulf %226, %230 : vector<16x32xf32>
    %232 = vector.broadcast %211 : vector<1x32xf32> to vector<16x32xf32>
    %233 = arith.mulf %231, %232 : vector<16x32xf32>
    %234 = vector.broadcast %213 : vector<1x32xf32> to vector<16x32xf32>
    %235 = arith.addf %233, %234 : vector<16x32xf32>
    %236 = arith.truncf %235 : vector<16x32xf32> to vector<16x32xbf16>
    %c0_113 = arith.constant 0 : index
    %c0_114 = arith.constant 0 : index
    %237 = vector.load %arg15[%c0_113, %c0_114] : memref<32x128xbf16, #tpu.memory_space<vmem>>, vector<32x128xbf16>
    %cst_115 = arith.constant dense<0.000000e+00> : vector<16x128xf32>
    %238 = tpu.matmul %236, %237, %cst_115 {dimension_numbers = #tpu.dot_dimension_numbers<[1], [0], [0], [1], [0, 0, 1, 1], [], []>} : vector<16x32xbf16>, vector<32x128xbf16>, vector<16x128xf32> -> vector<16x128xf32>
    %c0_116 = arith.constant 0 : index
    %c0_117 = arith.constant 0 : index
    %239 = vector.load %arg16[%c0_116, %c0_117] : memref<1x128xf32, #tpu.memory_space<vmem>>, vector<1x128xf32>
    %240 = vector.broadcast %239 : vector<1x128xf32> to vector<16x128xf32>
    %241 = arith.addf %238, %240 : vector<16x128xf32>
    %242 = vector.shape_cast %241 : vector<16x128xf32> to vector<2x8x128xf32>
    %243 = arith.truncf %242 : vector<2x8x128xf32> to vector<2x8x128xbf16>
    %c0_118 = arith.constant 0 : index
    %c0_119 = arith.constant 0 : index
    %c0_120 = arith.constant 0 : index
    %244 = vector.load %arg17[%c0_118, %c0_119, %c0_120] : memref<2x8x128xbf16, #tpu.memory_space<vmem>>, vector<2x8x128xbf16>
    tpu.vector_store %arg17[%c0_118, %c0_119, %c0_120], %243 {strides = array<i32>} : memref<2x8x128xbf16, #tpu.memory_space<vmem>>, vector<2x8x128xbf16>,
    return
  }
  func.func @transform_0(%arg0: i32) -> (i32, i32, i32) {
    %c0_i32 = arith.constant 0 : i32
    %c0_i32_0 = arith.constant 0 : i32
    %c0_i32_1 = arith.constant 0 : i32
    return %arg0, %c0_i32, %c0_i32_0 : i32, i32, i32
  }
  func.func @transform_1(%arg0: i32) -> (i32, i32, i32) {
    %c0_i32 = arith.constant 0 : i32
    %c0_i32_0 = arith.constant 0 : i32
    %c0_i32_1 = arith.constant 0 : i32
    return %arg0, %c0_i32, %c0_i32_0 : i32, i32, i32
  }
  func.func @transform_2(%arg0: i32) -> (i32, i32, i32) {
    %c0_i32 = arith.constant 0 : i32
    %c0_i32_0 = arith.constant 0 : i32
    %c0_i32_1 = arith.constant 0 : i32
    %c0_i32_2 = arith.constant 0 : i32
    return %c0_i32, %c0_i32_0, %c0_i32_1 : i32, i32, i32
  }
  func.func @transform_3(%arg0: i32) -> (i32, i32, i32) {
    %c0_i32 = arith.constant 0 : i32
    %c0_i32_0 = arith.constant 0 : i32
    %c0_i32_1 = arith.constant 0 : i32
    %c0_i32_2 = arith.constant 0 : i32
    return %c0_i32, %c0_i32_0, %c0_i32_1 : i32, i32, i32
  }
  func.func @transform_4(%arg0: i32) -> (i32, i32, i32) {
    %c0_i32 = arith.constant 0 : i32
    %c0_i32_0 = arith.constant 0 : i32
    %c0_i32_1 = arith.constant 0 : i32
    %c0_i32_2 = arith.constant 0 : i32
    return %c0_i32, %c0_i32_0, %c0_i32_1 : i32, i32, i32
  }
  func.func @transform_5(%arg0: i32) -> (i32, i32, i32) {
    %c0_i32 = arith.constant 0 : i32
    %c0_i32_0 = arith.constant 0 : i32
    %c0_i32_1 = arith.constant 0 : i32
    %c0_i32_2 = arith.constant 0 : i32
    return %c0_i32, %c0_i32_0, %c0_i32_1 : i32, i32, i32
  }
  func.func @transform_6(%arg0: i32) -> (i32, i32, i32) {
    %c0_i32 = arith.constant 0 : i32
    %c0_i32_0 = arith.constant 0 : i32
    %c0_i32_1 = arith.constant 0 : i32
    %c0_i32_2 = arith.constant 0 : i32
    return %c0_i32, %c0_i32_0, %c0_i32_1 : i32, i32, i32
  }
  func.func @transform_7(%arg0: i32) -> (i32, i32, i32) {
    %c0_i32 = arith.constant 0 : i32
    %c0_i32_0 = arith.constant 0 : i32
    %c0_i32_1 = arith.constant 0 : i32
    %c0_i32_2 = arith.constant 0 : i32
    return %c0_i32, %c0_i32_0, %c0_i32_1 : i32, i32, i32
  }
  func.func @transform_8(%arg0: i32) -> (i32, i32, i32) {
    %c0_i32 = arith.constant 0 : i32
    %c0_i32_0 = arith.constant 0 : i32
    %c0_i32_1 = arith.constant 0 : i32
    %c0_i32_2 = arith.constant 0 : i32
    return %c0_i32, %c0_i32_0, %c0_i32_1 : i32, i32, i32
  }
  func.func @transform_9(%arg0: i32) -> (i32, i32, i32) {
    %c0_i32 = arith.constant 0 : i32
    %c0_i32_0 = arith.constant 0 : i32
    %c0_i32_1 = arith.constant 0 : i32
    %c0_i32_2 = arith.constant 0 : i32
    return %c0_i32, %c0_i32_0, %c0_i32_1 : i32, i32, i32
  }
  func.func @transform_10(%arg0: i32) -> (i32, i32, i32) {
    %c0_i32 = arith.constant 0 : i32
    %c0_i32_0 = arith.constant 0 : i32
    %c0_i32_1 = arith.constant 0 : i32
    %c0_i32_2 = arith.constant 0 : i32
    return %c0_i32, %c0_i32_0, %c0_i32_1 : i32, i32, i32
  }
  func.func @transform_11(%arg0: i32) -> (i32, i32, i32) {
    %c0_i32 = arith.constant 0 : i32
    %c0_i32_0 = arith.constant 0 : i32
    %c0_i32_1 = arith.constant 0 : i32
    %c0_i32_2 = arith.constant 0 : i32
    return %c0_i32, %c0_i32_0, %c0_i32_1 : i32, i32, i32
  }
  func.func @transform_12(%arg0: i32) -> (i32, i32, i32) {
    %c0_i32 = arith.constant 0 : i32
    %c0_i32_0 = arith.constant 0 : i32
    %c0_i32_1 = arith.constant 0 : i32
    %c0_i32_2 = arith.constant 0 : i32
    return %c0_i32, %c0_i32_0, %c0_i32_1 : i32, i32, i32
  }
  func.func @transform_13(%arg0: i32) -> (i32, i32, i32) {
    %c0_i32 = arith.constant 0 : i32
    %c0_i32_0 = arith.constant 0 : i32
    %c0_i32_1 = arith.constant 0 : i32
    %c0_i32_2 = arith.constant 0 : i32
    return %c0_i32, %c0_i32_0, %c0_i32_1 : i32, i32, i32
  }
  func.func @transform_14(%arg0: i32) -> (i32, i32) {
    %c0_i32 = arith.constant 0 : i32
    %c0_i32_0 = arith.constant 0 : i32
    %c0_i32_1 = arith.constant 0 : i32
    return %c0_i32, %c0_i32_0 : i32, i32
  }
  func.func @transform_15(%arg0: i32) -> (i32, i32) {
    %c0_i32 = arith.constant 0 : i32
    %c0_i32_0 = arith.constant 0 : i32
    %c0_i32_1 = arith.constant 0 : i32
    return %c0_i32, %c0_i32_0 : i32, i32
  }
  func.func @transform_16(%arg0: i32) -> (i32, i32, i32) {
    %c0_i32 = arith.constant 0 : i32
    %c0_i32_0 = arith.constant 0 : i32
    %c0_i32_1 = arith.constant 0 : i32
    return %arg0, %c0_i32, %c0_i32_0 : i32, i32, i32
  }
}

</mosaic_0001>

<bundles_post_ra>
// kernel: ner_transformer_forward.1
= control target key start
LH: loop header
LB: loop body
LE: loop exit
PB: predicated region body
PF: predicated region fallthrough
CT: control target
= control target key end

     0   :  { %s6884_s0 = inlined_call_operand.vmem [shape: bf16[2,8,32], index: 0, kind: input, shape index: {}]   ;;  %s6885_s1 = inlined_call_operand.vmem [shape: f32[2,1,32], index: 1, kind: input, shape index: {}]   ;;  %s6886_s2 = inlined_call_operand.vmem [shape: bf16[2,32,96], index: 2, kind: input, shape index: {}]   ;;  %s6887_s3 = inlined_call_operand.vmem [shape: f32[2,1,96], index: 3, kind: input, shape index: {}]   ;;  %s6888_s4 = inlined_call_operand.vmem [shape: bf16[2,32,32], index: 4, kind: input, shape index: {}]   ;;  %s6889_s5 = inlined_call_operand.vmem [shape: f32[2,1,32], index: 5, kind: input, shape index: {}]   ;;  %s6890_s6 = inlined_call_operand.vmem [shape: f32[2,1,32], index: 6, kind: input, shape index: {}]   ;;  %s6891_s7 = inlined_call_operand.vmem [shape: f32[2,1,32], index: 7, kind: input, shape index: {}]   ;;  %s6892_s8 = inlined_call_operand.vmem [shape: bf16[2,32,64], index: 8, kind: input, shape index: {}]   ;;  %s6893_s9 = inlined_call_operand.vmem [shape: f32[2,1,64], index: 9, kind: input, shape index: {}]   ;;  %s6894_s10 = inlined_call_operand.vmem [shape: bf16[2,64,32], index: 10, kind: input, shape index: {}]   ;;  %s6895_s11 = inlined_call_operand.vmem [shape: f32[2,1,32], index: 11, kind: input, shape index: {}]   ;;  %s6896_s12 = inlined_call_operand.vmem [shape: f32[2,1,32], index: 12, kind: input, shape index: {}]   ;;  %s6897_s13 = inlined_call_operand.vmem [shape: f32[2,1,32], index: 13, kind: input, shape index: {}]   ;;  %s6898_s14 = inlined_call_operand.vmem [shape: bf16[32,128], index: 14, kind: input, shape index: {}]   ;;  %s6899_s15 = inlined_call_operand.vmem [shape: f32[1,128], index: 15, kind: input, shape index: {}]   ;;  %s6900_s16 = inlined_call_operand.hbm [shape: bf16[2,8,128], index: 16, kind: output, shape index: {}]  }
   0x1   :  { %6910 = sst [smem:[#allocation5_spill]] %s6884_s0 }
   0x2   :  { %v5614_v0 = vld [vmem:[%s6886_s2] sm:$0xff]   ;;  %v5740_v1 = vmov 0.0   ;;  %v5615_v2 = vld [vmem:[%s6886_s2 + $0x8] sm:$0xff]   ;;  %vm5741_vm0 = vmmov 0   ;;  %s6911_s27 = sld [smem:[#allocation5_spill]]  ;;  %vm99_vm1 = vcmask 261120  }
   0x3   :  { %5292 = vmatprep.subr.bf16.mxu0 %v5740_v1  ;;  %5300 = vmatprep.subr.bf16.mxu1 %v5740_v1  ;;  %v5030_v4 = vld [vmem:[%s6885_s1] ss:$0 sm:$0xff]  ;;  %v5031_v5 = vld [vmem:[%s6885_s1 + $0x1] ss:$0 sm:$0xff] }
   0x4   :  { %5293 = vmatpush3.bf16.msra.mxu0 %v5614_v0  ;;  %5296 = vmatprep.mubr.msk.bf16.mxu0 %vm5741_vm0, %v5740_v1 }
   0x5   :  { %5294 = vmatprep.subr.bf16.mxu0 %v5740_v1  ;;  %5302 = vmatprep.mubr.msk.bf16.mxu1 %vm5741_vm0, %v5740_v1 }
   0x8   :  { %v5189_v3 = vld [vmem:[%s6911_s27] sm:$0xff]   ;;  %5295 = vmatpush3.bf16.msra.mxu0 %v5615_v2 }
   0x9   :  { %v5190_v6 = vunpack.c.l.bf16 %v5189_v3  ;;  %v5191_v7 = vunpack.c.h.bf16 %v5189_v3  ;;  %5306 = vmatprep.subr.bf16.mxu0 %v5740_v1 }
   0xb   :  { %v5867_v8 = vadd.f32 %v5190_v6, %v5030_v4  ;;  %v5869_v9 = vadd.f32 %v5191_v7, %v5031_v5 }
   0xd   :  { %v75_v10 = vpack.c.bf16 %v5869_v9, %v5867_v8 }
   0xf   :  { %5297 = vmatmul.mubr.msk.bf16.vlgmr.msra.gmra.mrb[0].mxu0 %vm99_vm1, %v75_v10 }
  0x10   :  { %5308 = vmatprep.mubr.msk.bf16.mxu0 %vm5741_vm0, %v5740_v1 }
  0x11   :  { %21 = vsyncpa [#allocation3], 0  ;;  %v5032_v11 = vld [vmem:[%s6887_s3] ss:$0 sm:$0xff]  ;;  %s5742_s18 = smov 88   ;;  %s5743_s19 = smov 96   ;;  %v217_v20 = vlaneseq }
  0x12   :  { %s5744_s20 = smov 80   ;;  %s5745_s21 = smov 72   ;;  %v5751_v18 = vmov 1983009808   ;;  %v5752_v23 = vmov 1934713408  }
  0x13   :  { %s5746_s22 = smov 120   ;;  %s5747_s23 = smov 112   ;;  %v215_v19 = vunpack.c.l.s4 %v5751_v18  ;;  %v279_v24 = vunpack.c.l.s4 %v5752_v23  ;;  %v218_v26 = vshrl.u32 %v217_v20, 7  ;;  %vm1052_vm2 = vcmask 64512  }
  0x14   :  { %s5748_s24 = smov 104   ;;  %s5749_s25 = smov 64   ;;  %vm1520_vm3 = vcmask 1043456   ;;  %vm2184_vm4 = vcmask 130048   ;;  %vm2187_vm5 = vcmask 195584   ;;  %vm2415_vm6 = vcmask 523264  }
  0x15   :  { %s6908_s26 = smov 56   ;;  %v216_v25 = vunpack.c.0.s8 %v215_v19  ;;  %v280_v29 = vunpack.c.0.s8 %v279_v24  ;;  %s6906_s27 = smov 48  }
  0x16   :  { %s6904_s28 = smov 40   ;;  %s6903_s17 = smov 16  }
  0x17   :  { %v5920_v30 = vsub.s32 %v216_v25, %v218_v26  ;;  %v5922_v37 = vsub.s32 %v280_v29, %v218_v26  ;;  %s6902_s29 = smov 8   ;;  %s6901_s30 = smov 24  }
  0x18   :  { %s6917_s0 = smov 24  }
  0xe2   :  { %v137_v12 = vpop.f32.mrb[0].mxu0 }
  0xe3   :  { %v5880_v13 = vadd.f32 %v5032_v11, %v137_v12  ;;  %v5298_v14 = vpop.f32.mrb[1].mxu0 }
  0xe4   :  { %v140_v15 = vpop.f32.mrb[2].mxu0 }
  0xe5   :  { %170 = vrot.lane.b32.xlu1 %v5880_v13, %s5742_s18  ;;  %164 = vrot.lane.b32.xlu0 %v5880_v13, %s5743_s19  ;;  %v5299_v16 = vpop.f32.mrb[3].mxu0  ;;  %v5886_v17 = vadd.f32 %v5032_v11, %v140_v15 }
  0xe9   :  { %176 = vrot.lane.b32.xlu0 %v5880_v13, %s5744_s20  ;;  %172 = vrot.lane.b32.xlu1 %v5886_v17, %s5742_s18 }
  0xed   :  { %182 = vrot.lane.b32.xlu0 %v5880_v13, %s5745_s21  ;;  %178 = vrot.lane.b32.xlu1 %v5886_v17, %s5744_s20 }
  0xf1   :  { %146 = vrot.lane.b32.xlu0 %v5880_v13, %s5746_s22  ;;  %184 = vrot.lane.b32.xlu1 %v5886_v17, %s5745_s21 }
  0xf5   :  { %148 = vrot.lane.b32.xlu1 %v5886_v17, %s5746_s22  ;;  %166 = vrot.lane.b32.xlu0 %v5886_v17, %s5743_s19 }
  0xf9   :  { %154 = vrot.lane.b32.xlu1 %v5886_v17, %s5747_s23  ;;  %152 = vrot.lane.b32.xlu0 %v5880_v13, %s5747_s23 }
  0xfd   :  { %160 = vrot.lane.b32.xlu1 %v5886_v17, %s5748_s24  ;;  %158 = vrot.lane.b32.xlu0 %v5880_v13, %s5748_s24 }
 0x101   :  { %188 = vrot.lane.b32.xlu1 %v5880_v13, %s5749_s25  ;;  %190 = vrot.lane.b32.xlu0 %v5886_v17, %s5749_s25 }
 0x105   :  { %194 = vrot.lane.b32.xlu1 %v5880_v13, %s6908_s26 }
 0x109   :  { %196 = vrot.lane.b32.xlu1 %v5886_v17, %s6908_s26 }
 0x157   :  { %v171_v21 = vpop.permute.xlu1 %170  ;;  %v165_v22 = vpop.permute.xlu0 %164 }
 0x15b   :  { %v177_v27 = vpop.permute.xlu0 %176  ;;  %v173_v28 = vpop.permute.xlu1 %172 }
 0x15c   :  { %v244_v31 = vcombine.low %v165_v22, %v177_v27  ;;  %v245_v32 = vcombine.high %v165_v22, %v177_v27 }
 0x15e   :  { %v252_v38 = vrot.slane %v244_v31, %v5920_v30  ;;  %v259_v39 = vrot.slane %v245_v32, %v5920_v30 }
 0x15f   :  { %v183_v33 = vpop.permute.xlu0 %182  ;;  %v179_v34 = vpop.permute.xlu1 %178 }
 0x160   :  { %v260_v35 = vcombine.low %v171_v21, %v183_v33  ;;  %v261_v36 = vcombine.high %v171_v21, %v183_v33 }
 0x162   :  { %v268_v40 = vrot.slane %v260_v35, %v5920_v30  ;;  %v275_v41 = vrot.slane %v261_v36, %v5920_v30 }
 0x163   :  { %v147_v42 = vpop.permute.xlu0 %146  ;;  %v185_v43 = vpop.permute.xlu1 %184 }
 0x164   :  { %v308_v44 = vcombine.low %v252_v38, %v268_v40  ;;  %v309_v45 = vcombine.high %v252_v38, %v268_v40  ;;  %v324_v46 = vcombine.low %v259_v39, %v275_v41  ;;  %v325_v47 = vcombine.high %v259_v39, %v275_v41 }
 0x165   :  { %v464_v48 = vcombine.low %v173_v28, %v185_v43  ;;  %v465_v49 = vcombine.high %v173_v28, %v185_v43 }
 0x166   :  { %v316_v50 = vrot.slane %v308_v44, %v5922_v37  ;;  %v323_v51 = vrot.slane %v309_v45, %v5922_v37  ;;  %v332_v52 = vrot.slane %v324_v46, %v5922_v37  ;;  %v339_v53 = vrot.slane %v325_v47, %v5922_v37 }
 0x167   :  { %v149_v54 = vpop.permute.xlu1 %148  ;;  %v167_v55 = vpop.permute.xlu0 %166  ;;  %v472_v62 = vrot.slane %v464_v48, %v5920_v30  ;;  %v479_v63 = vrot.slane %v465_v49, %v5920_v30 }
 0x168   :  { %v5037_v56 = vcombine.low %v316_v50, %v323_v51  ;;  %v5039_v57 = vcombine.high %v316_v50, %v323_v51  ;;  %v5041_v58 = vcombine.low %v332_v52, %v339_v53  ;;  %v5043_v59 = vcombine.high %v332_v52, %v339_v53 }
 0x169   :  { %v448_v60 = vcombine.low %v167_v55, %v179_v34  ;;  %v449_v61 = vcombine.high %v167_v55, %v179_v34 }
 0x16a   :  { %v5935_v0 = vrot.slane %v5037_v56, %v5920_v30  ;;  %v5938_v2 = vrot.slane %v5039_v57, %v5920_v30  ;;  %v5943_v7 = vrot.slane %v5041_v58, %v5920_v30  ;;  %v5946_v10 = vrot.slane %v5043_v59, %v5920_v30 }
 0x16b   :  { %v456_v3 = vrot.slane %v448_v60, %v5920_v30  ;;  %v463_v4 = vrot.slane %v449_v61, %v5920_v30  ;;  %v155_v5 = vpop.permute.xlu1 %154  ;;  %v153_v6 = vpop.permute.xlu0 %152 }
 0x16c   :  { %v416_v11 = vcombine.low %v5886_v17, %v155_v5  ;;  %v417_v12 = vcombine.high %v5886_v17, %v155_v5  ;;  %v212_v14 = vcombine.low %v5880_v13, %v153_v6  ;;  %v213_v15 = vcombine.high %v5880_v13, %v153_v6 }
 0x16d   :  { %v512_v16 = vcombine.low %v456_v3, %v472_v62  ;;  %v513_v18 = vcombine.high %v456_v3, %v472_v62  ;;  %v528_v19 = vcombine.low %v463_v4, %v479_v63  ;;  %v529_v20 = vcombine.high %v463_v4, %v479_v63 }
 0x16e   :  { %v424_v21 = vrot.slane %v416_v11, %v5920_v30  ;;  %v431_v22 = vrot.slane %v417_v12, %v5920_v30  ;;  %v220_v23 = vrot.slane %v212_v14, %v5920_v30  ;;  %v227_v24 = vrot.slane %v213_v15, %v5920_v30 }
 0x16f   :  { %v520_v25 = vrot.slane %v512_v16, %v5922_v37  ;;  %v527_v26 = vrot.slane %v513_v18, %v5922_v37  ;;  %v536_v27 = vrot.slane %v528_v19, %v5922_v37  ;;  %v543_v28 = vrot.slane %v529_v20, %v5922_v37  ;;  %v161_v29 = vpop.permute.xlu1 %160  ;;  %v159_v31 = vpop.permute.xlu0 %158 }
 0x170   :  { %v432_v32 = vcombine.low %v149_v54, %v161_v29  ;;  %v433_v33 = vcombine.high %v149_v54, %v161_v29  ;;  %v228_v34 = vcombine.low %v147_v42, %v159_v31  ;;  %v229_v35 = vcombine.high %v147_v42, %v159_v31 }
 0x171   :  { %v5045_v36 = vcombine.low %v520_v25, %v527_v26  ;;  %v5047_v38 = vcombine.high %v520_v25, %v527_v26  ;;  %v5049_v39 = vcombine.low %v536_v27, %v543_v28  ;;  %v5051_v40 = vcombine.high %v536_v27, %v543_v28 }
 0x172   :  { %v440_v41 = vrot.slane %v432_v32, %v5920_v30  ;;  %v447_v43 = vrot.slane %v433_v33, %v5920_v30  ;;  %v236_v44 = vrot.slane %v228_v34, %v5920_v30  ;;  %v243_v45 = vrot.slane %v229_v35, %v5920_v30 }
 0x173   :  { %v5965_v46 = vrot.slane %v5045_v36, %v5920_v30  ;;  %v5968_v47 = vrot.slane %v5047_v38, %v5920_v30  ;;  %v5971_v42 = vrot.slane %v5049_v39, %v5920_v30  ;;  %v5974_v48 = vrot.slane %v5051_v40, %v5920_v30 }
 0x174   :  { %v480_v49 = vcombine.low %v424_v21, %v440_v41  ;;  %v481_v50 = vcombine.high %v424_v21, %v440_v41  ;;  %v496_v51 = vcombine.low %v431_v22, %v447_v43  ;;  %v497_v52 = vcombine.high %v431_v22, %v447_v43 }
 0x175   :  { %v276_v53 = vcombine.low %v220_v23, %v236_v44  ;;  %v277_v54 = vcombine.high %v220_v23, %v236_v44  ;;  %v292_v55 = vcombine.low %v227_v24, %v243_v45  ;;  %v293_v56 = vcombine.high %v227_v24, %v243_v45 }
 0x176   :  { %v488_v57 = vrot.slane %v480_v49, %v5922_v37  ;;  %v495_v58 = vrot.slane %v481_v50, %v5922_v37  ;;  %v504_v59 = vrot.slane %v496_v51, %v5922_v37  ;;  %v511_v60 = vrot.slane %v497_v52, %v5922_v37 }
 0x177   :  { %v284_v61 = vrot.slane %v276_v53, %v5922_v37  ;;  %v291_v62 = vrot.slane %v277_v54, %v5922_v37  ;;  %v300_v63 = vrot.slane %v292_v55, %v5922_v37  ;;  %v307_v3 = vrot.slane %v293_v56, %v5922_v37 }
 0x178   :  { %v5044_v4 = vcombine.low %v488_v57, %v495_v58  ;;  %v5046_v5 = vcombine.high %v488_v57, %v495_v58  ;;  %v5048_v6 = vcombine.low %v504_v59, %v511_v60  ;;  %v5050_v11 = vcombine.high %v504_v59, %v511_v60 }
 0x179   :  { %v5036_v12 = vcombine.low %v284_v61, %v291_v62  ;;  %v5038_v14 = vcombine.high %v284_v61, %v291_v62  ;;  %v5040_v15 = vcombine.low %v300_v63, %v307_v3  ;;  %v5042_v16 = vcombine.high %v300_v63, %v307_v3 }
 0x17a   :  { %v5985_v18 = vrot.slane %v5044_v4, %v5920_v30  ;;  %v5988_v19 = vrot.slane %v5046_v5, %v5920_v30  ;;  %v5991_v20 = vrot.slane %v5048_v6, %v5920_v30  ;;  %v5994_v21 = vrot.slane %v5050_v11, %v5920_v30 }
 0x17b   :  { %v5997_v22 = vrot.slane %v5036_v12, %v5920_v30  ;;  %v6000_v23 = vrot.slane %v5038_v14, %v5920_v30  ;;  %v6003_v24 = vrot.slane %v5040_v15, %v5920_v30  ;;  %v6006_v25 = vrot.slane %v5042_v16, %v5920_v30 }
 0x17c   :  { %v820_v26 = vcombine.low %v5985_v18, %v5988_v19  ;;  %v852_v27 = vcombine.low %v5991_v20, %v5994_v21  ;;  %v700_v28 = vcombine.low %v5935_v0, %v5938_v2  ;;  %v732_v29 = vcombine.low %v5943_v7, %v5946_v10 }
 0x17d   :  { %v836_v31 = vcombine.low %v5965_v46, %v5968_v47  ;;  %v868_v32 = vcombine.low %v5971_v42, %v5974_v48  ;;  %v684_v33 = vcombine.low %v5997_v22, %v6000_v23  ;;  %v716_v34 = vcombine.low %v6003_v24, %v6006_v25 }
 0x17e   :  { %v708_v35 = vrot.slane %v700_v28, %v5922_v37  ;;  %v740_v36 = vrot.slane %v732_v29, %v5922_v37  ;;  %v828_v40 = vrot.slane %v820_v26, %v5922_v37  ;;  %v860_v41 = vrot.slane %v852_v27, %v5922_v37 }
 0x17f   :  { %v844_v38 = vrot.slane %v836_v31, %v5922_v37  ;;  %v876_v39 = vrot.slane %v868_v32, %v5922_v37  ;;  %v692_v44 = vrot.slane %v684_v33, %v5922_v37  ;;  %v724_v45 = vrot.slane %v716_v34, %v5922_v37 }
 0x180   :  { %v752_v43 = vcombine.low %v708_v35, %v740_v36  ;;  %v884_v52 = vcombine.low %v828_v40, %v860_v41  ;;  %v753_v53 = vcombine.high %v708_v35, %v740_v36  ;;  %v701_v56 = vcombine.high %v5935_v0, %v5938_v2 }
 0x181   :  { %v888_v49 = vcombine.low %v844_v38, %v876_v39  ;;  %v748_v55 = vcombine.low %v692_v44, %v724_v45  ;;  %v733_v57 = vcombine.high %v5943_v7, %v5946_v10  ;;  %v889_v59 = vcombine.high %v844_v38, %v876_v39 }
 0x182   :  { %v1036_v50 = vpack.c.bf16 %v752_v43, %v752_v43  ;;  %v837_v60 = vcombine.high %v5965_v46, %v5968_v47  ;;  %v869_v61 = vcombine.high %v5971_v42, %v5974_v48  ;;  %v1038_v0 = vpack.c.bf16 %v753_v53, %v753_v53 }
 0x183   :  { %v1037_v51 = vpack.c.bf16 %v888_v49, %v888_v49  ;;  %v1028_v62 = vpack.c.bf16 %v748_v55, %v748_v55  ;;  %v715_v2 = vrot.slane %v701_v56, %v5922_v37  ;;  %v747_v7 = vrot.slane %v733_v57, %v5922_v37 }
 0x184   :  { %v1057_v54 = vsel %vm1052_vm2, %v1036_v50, 0  ;;  %v1029_v10 = vpack.c.bf16 %v884_v52, %v884_v52  ;;  %v1039_v63 = vpack.c.bf16 %v889_v59, %v889_v59  ;;  %v851_v3 = vrot.slane %v837_v60, %v5922_v37 }
 0x185   :  { %5301 = vmatpush3.bf16.xpose.msra.mxu1 %v1057_v54  ;;  %v1103_v58 = vsel %vm1052_vm2, %v1037_v51, 0  ;;  %v883_v46 = vrot.slane %v869_v61, %v5922_v37  ;;  %v1149_v47 = vsel %vm1052_vm2, %v1038_v0, 0  ;;  %v754_v42 = vcombine.low %v715_v2, %v747_v7 }
 0x186   :  { %5307 = vmatpush3.bf16.xpose.msra.mxu0 %v1103_v58  ;;  %5312 = vmatprep.subr.bf16.mxu1 %v5740_v1  ;;  %v1195_v48 = vsel %vm1052_vm2, %v1039_v63, 0  ;;  %v685_v5 = vcombine.high %v5997_v22, %v6000_v23  ;;  %v717_v6 = vcombine.high %v6003_v24, %v6006_v25  ;;  %v749_v11 = vcombine.high %v692_v44, %v724_v45 }
 0x187   :  { %5318 = vmatprep.subr.bf16.mxu0 %v5740_v1  ;;  %v890_v4 = vcombine.low %v851_v3, %v883_v46  ;;  %v821_v12 = vcombine.high %v5985_v18, %v5988_v19  ;;  %v853_v14 = vcombine.high %v5991_v20, %v5994_v21  ;;  %v885_v15 = vcombine.high %v828_v40, %v860_v41 }
 0x188   :  { %v1040_v16 = vpack.c.bf16 %v754_v42, %v754_v42  ;;  %v1030_v23 = vpack.c.bf16 %v749_v11, %v749_v11  ;;  %v699_v24 = vrot.slane %v685_v5, %v5922_v37  ;;  %v731_v25 = vrot.slane %v717_v6, %v5922_v37 }
 0x189   :  { %v1041_v22 = vpack.c.bf16 %v890_v4, %v890_v4  ;;  %v1031_v26 = vpack.c.bf16 %v885_v15, %v885_v15  ;;  %v835_v18 = vrot.slane %v821_v12, %v5922_v37  ;;  %v867_v19 = vrot.slane %v853_v14, %v5922_v37 }
 0x18a   :  { %v1241_v20 = vsel %vm1052_vm2, %v1040_v16, 0  ;;  %v755_v21 = vcombine.high %v715_v2, %v747_v7  ;;  %v891_v28 = vcombine.high %v851_v3, %v883_v46  ;;  %v750_v29 = vcombine.low %v699_v24, %v731_v25 }
 0x18b   :  { %v1287_v27 = vsel %vm1052_vm2, %v1041_v22, 0  ;;  %v886_v31 = vcombine.low %v835_v18, %v867_v19  ;;  %v751_v39 = vcombine.high %v699_v24, %v731_v25  ;;  %v887_v40 = vcombine.high %v835_v18, %v867_v19  ;;  %v6117_v19 = vpop.permute.xlu1 %188 }
 0x18c   :  { %5303 = vmatmul.mubr.msk.bf16.vlgmr.msra.gmra.mrb[0].mxu1 %vm1052_vm2, %v1028_v62  ;;  %v1042_v32 = vpack.c.bf16 %v755_v21, %v755_v21  ;;  %v1043_v33 = vpack.c.bf16 %v891_v28, %v891_v28  ;;  %v1032_v34 = vpack.c.bf16 %v750_v29, %v750_v29  ;;  %v6121_v21 = vpop.permute.xlu0 %190 }
 0x18d   :  { %5309 = vmatmul.mubr.msk.bf16.vlgmr.msra.gmra.mrb[4].mxu0 %vm1052_vm2, %v1029_v10  ;;  %5313 = vmatpush3.bf16.xpose.msra.mxu1 %v1149_v47  ;;  %v1033_v35 = vpack.c.bf16 %v886_v31, %v886_v31  ;;  %v1034_v41 = vpack.c.bf16 %v751_v39, %v751_v39  ;;  %v1035_v43 = vpack.c.bf16 %v887_v40, %v887_v40 }
 0x18e   :  { %5319 = vmatpush3.bf16.xpose.msra.mxu0 %v1195_v48  ;;  %5314 = vmatprep.mubr.msk.bf16.mxu1 %vm5741_vm0, %v5740_v1  ;;  %v1333_v36 = vsel %vm1052_vm2, %v1042_v32, 0  ;;  %v1379_v38 = vsel %vm1052_vm2, %v1043_v33, 0 }
 0x18f   :  { %5320 = vmatprep.mubr.msk.bf16.mxu0 %vm5741_vm0, %v5740_v1  ;;  %5324 = vmatprep.subr.bf16.mxu1 %v5740_v1 }
 0x190   :  { %5330 = vmatprep.subr.bf16.mxu0 %v5740_v1 }
 0x194   :  { %5315 = vmatmul.mubr.msk.bf16.vlgmr.msra.gmra.mrb[4].mxu1 %vm1052_vm2, %v1030_v23 }
 0x195   :  { %5321 = vmatmul.mubr.msk.bf16.vlgmr.msra.gmra.mrb[8].mxu0 %vm1052_vm2, %v1031_v26  ;;  %5325 = vmatpush3.bf16.xpose.msra.mxu1 %v1241_v20  ;;  %v6119_v20 = vpop.permute.xlu1 %194 }
 0x196   :  { %5331 = vmatpush3.bf16.xpose.msra.mxu0 %v1287_v27  ;;  %5326 = vmatprep.mubr.msk.bf16.mxu1 %vm5741_vm0, %v5740_v1 }
 0x197   :  { %5332 = vmatprep.mubr.msk.bf16.mxu0 %vm5741_vm0, %v5740_v1  ;;  %5336 = vmatprep.subr.bf16.mxu1 %v5740_v1 }
 0x198   :  { %5342 = vmatprep.subr.bf16.mxu0 %v5740_v1 }
 0x199   :  { %v6123_v27 = vpop.permute.xlu1 %196 }
 0x19c   :  { %5327 = vmatmul.mubr.msk.bf16.vlgmr.msra.gmra.mrb[8].mxu1 %vm1052_vm2, %v1032_v34 }
 0x19d   :  { %5333 = vmatmul.mubr.msk.bf16.vlgmr.msra.gmra.mrb[12].mxu0 %vm1052_vm2, %v1033_v35  ;;  %5337 = vmatpush3.bf16.xpose.msra.mxu1 %v1333_v36 }
 0x19e   :  { %5343 = vmatpush3.bf16.xpose.msra.mxu0 %v1379_v38  ;;  %5338 = vmatprep.mubr.msk.bf16.mxu1 %vm5741_vm0, %v5740_v1 }
 0x19f   :  { %5344 = vmatprep.mubr.msk.bf16.mxu0 %vm5741_vm0, %v5740_v1  ;;  %5348 = vmatprep.subr.bf16.mxu1 %v5740_v1 }
 0x1a0   :  { %5354 = vmatprep.subr.bf16.mxu0 %v5740_v1 }
 0x1a4   :  { %5339 = vmatmul.mubr.msk.bf16.vlgmr.msra.gmra.mrb[12].mxu1 %vm1052_vm2, %v1034_v41 }
 0x1a5   :  { %5345 = vmatmul.mubr.msk.bf16.vlgmr.msra.gmra.mrb[16].mxu0 %vm1052_vm2, %v1035_v43  ;;  %5350 = vmatprep.mubr.msk.bf16.mxu1 %vm5741_vm0, %v5740_v1 }
 0x1a6   :  { %5356 = vmatprep.mubr.msk.bf16.mxu0 %vm5741_vm0, %v5740_v1 }
 0x25f   :  { %v1093_v44 = vpop.f32.mrb[0].mxu1 }
 0x260   :  { %v1139_v45 = vpop.f32.mrb[4].mxu0  ;;  %v5304_v49 = vpop.f32.mrb[1].mxu1  ;;  %v1421_v50 = vsel %vm1052_vm2, %v1093_v44, -inf }
 0x261   :  { %v5310_v51 = vpop.f32.mrb[5].mxu0  ;;  %1422 = vmax.xlane.f32.xlu0 %v1421_v50  ;;  %v1096_v52 = vpop.f32.mrb[2].mxu1  ;;  %v1424_v53 = vsel %vm1052_vm2, %v1139_v45, -inf }
 0x262   :  { %1425 = vmax.xlane.f32.xlu1 %v1424_v53  ;;  %v1142_v54 = vpop.f32.mrb[6].mxu0  ;;  %v5305_v55 = vpop.f32.mrb[3].mxu1 }
 0x263   :  { %v5311_v56 = vpop.f32.mrb[7].mxu0 }
 0x267   :  { %v6098_v57 = vpop.f32.mrb[4].mxu1 }
 0x268   :  { %v6100_v58 = vpop.f32.mrb[8].mxu0  ;;  %v5316_v59 = vpop.f32.mrb[5].mxu1  ;;  %v1427_v60 = vsel %vm1052_vm2, %v6098_v57, -inf }
 0x269   :  { %v5322_v61 = vpop.f32.mrb[9].mxu0  ;;  %1428 = vmax.xlane.f32.xlu0 %v1427_v60  ;;  %v1188_v62 = vpop.f32.mrb[6].mxu1  ;;  %v1430_v10 = vsel %vm1052_vm2, %v6100_v58, -inf }
 0x26a   :  { %v1234_v0 = vpop.f32.mrb[10].mxu0  ;;  %v5317_v2 = vpop.f32.mrb[7].mxu1 }
 0x26b   :  { %v5323_v7 = vpop.f32.mrb[11].mxu0 }
 0x26d   :  { %1431 = vmax.xlane.f32.xlu0 %v1430_v10 }
 0x26f   :  { %v1277_v63 = vpop.f32.mrb[8].mxu1 }
 0x270   :  { %v6106_v3 = vpop.f32.mrb[12].mxu0  ;;  %v5328_v46 = vpop.f32.mrb[9].mxu1  ;;  %v1433_v47 = vsel %vm1052_vm2, %v1277_v63, -inf }
 0x271   :  { %v5334_v42 = vpop.f32.mrb[13].mxu0  ;;  %v1280_v48 = vpop.f32.mrb[10].mxu1  ;;  %1434 = vmax.xlane.f32.xlu1 %v1433_v47  ;;  %v1436_v4 = vsel %vm1052_vm2, %v6106_v3, -inf }
 0x272   :  { %1437 = vmax.xlane.f32.xlu0 %v1436_v4  ;;  %v1326_v5 = vpop.f32.mrb[14].mxu0  ;;  %v5329_v6 = vpop.f32.mrb[11].mxu1 }
 0x273   :  { %v5335_v11 = vpop.f32.mrb[15].mxu0 }
 0x277   :  { %v1369_v12 = vpop.f32.mrb[12].mxu1 }
 0x278   :  { %v1415_v14 = vpop.f32.mrb[16].mxu0  ;;  %v5340_v15 = vpop.f32.mrb[13].mxu1  ;;  %v1439_v16 = vsel %vm1052_vm2, %v1369_v12, -inf }
 0x279   :  { %v5346_v22 = vpop.f32.mrb[17].mxu0  ;;  %v1372_v23 = vpop.f32.mrb[14].mxu1  ;;  %1440 = vmax.xlane.f32.xlu1 %v1439_v16  ;;  %v1442_v24 = vsel %vm1052_vm2, %v1415_v14, -inf }
 0x27a   :  { %1443 = vmax.xlane.f32.xlu0 %v1442_v24  ;;  %v1418_v25 = vpop.f32.mrb[18].mxu0  ;;  %v5341_v26 = vpop.f32.mrb[15].mxu1 }
 0x27b   :  { %v5347_v18 = vpop.f32.mrb[19].mxu0 }
 0x28a   :  { %202 = vrot.lane.b32.xlu1 %v5886_v17, %s6906_s27 }
 0x290   :  { %200 = vrot.lane.b32.xlu0 %v5880_v13, %s6906_s27 }
 0x2ee   :  { %v1423_v28 = vpop.xlane.xlu0 %1422 }
 0x2ef   :  { %v1445_v29 = vsub.f32 %v1093_v44, %v1423_v28  ;;  %v1426_v31 = vpop.xlane.xlu1 %1425 }
 0x2f0   :  { %v1446_v32 = vsub.f32 %v1139_v45, %v1426_v31 }
 0x2f1   :  { %v1453_v33 = vmul.f32 1.442695, %v1445_v29 }
 0x2f2   :  { %v1455_v34 = vmul.f32 1.442695, %v1446_v32 }
 0x2f3   :  { %5636 = vpow2.f32 %v1453_v33 }
 0x2f4   :  { %5638 = vpow2.f32 %v1455_v34 }
 0x2f6   :  { %v1429_v40 = vpop.xlane.xlu0 %1428 }
 0x2f7   :  { %v1447_v45 = vsub.f32 %v6098_v57, %v1429_v40 }
 0x2f9   :  { %v1457_v52 = vmul.f32 1.442695, %v1447_v45 }
 0x2fa   :  { %v1432_v41 = vpop.xlane.xlu0 %1431 }
 0x2fb   :  { %v1448_v44 = vsub.f32 %v6100_v58, %v1432_v41 }
 0x2fd   :  { %v6125_v35 = vpop.eup %5636  ;;  %v1459_v50 = vmul.f32 1.442695, %v1448_v44 }
 0x2fe   :  { %v6127_v36 = vpop.eup %5638  ;;  %v1469_v38 = vsel %vm1052_vm2, %v6125_v35, 0.0  ;;  %v1435_v43 = vpop.xlane.xlu1 %1434 }
 0x2ff   :  { %1470 = vadd.xlane.f32.xlu1 %v1469_v38  ;;  %v1472_v39 = vsel %vm1052_vm2, %v6127_v36, 0.0  ;;  %v1449_v53 = vsub.f32 %v1277_v63, %v1435_v43  ;;  %v1438_v54 = vpop.xlane.xlu0 %1437  ;;  %5640 = vpow2.f32 %v1459_v50 }
 0x300   :  { %1473 = vadd.xlane.f32.xlu0 %v1472_v39  ;;  %5642 = vpow2.f32 %v1457_v52  ;;  %v1450_v56 = vsub.f32 %v6106_v3, %v1438_v54 }
 0x306   :  { %v1441_v49 = vpop.xlane.xlu1 %1440 }
 0x307   :  { %v1451_v51 = vsub.f32 %v1369_v12, %v1441_v49  ;;  %v1444_v59 = vpop.xlane.xlu0 %1443 }
 0x308   :  { %v1452_v60 = vsub.f32 %v1415_v14, %v1444_v59 }
 0x309   :  { %v1465_v55 = vmul.f32 1.442695, %v1451_v51  ;;  %v6140_v57 = vpop.eup %5640 }
 0x30a   :  { %v1467_v58 = vmul.f32 1.442695, %v1452_v60  ;;  %v6142_v61 = vpop.eup %5642  ;;  %v1478_v62 = vsel %vm1052_vm2, %v6140_v57, 0.0  ;;  %v203_v48 = vpop.permute.xlu1 %202 }
 0x30b   :  { %5644 = vpow2.f32 %v1465_v55  ;;  %v1475_v2 = vsel %vm1052_vm2, %v6142_v61, 0.0  ;;  %v201_v4 = vpop.permute.xlu0 %200  ;;  %v552_v11 = vcombine.low %v6121_v21, %v203_v48  ;;  %v553_v12 = vcombine.high %v6121_v21, %v203_v48 }
 0x30c   :  { %v348_v14 = vcombine.low %v6117_v19, %v201_v4  ;;  %v349_v15 = vcombine.high %v6117_v19, %v201_v4 }
 0x30d   :  { %v560_v25 = vrot.slane %v552_v11, %v5920_v30  ;;  %v567_v28 = vrot.slane %v553_v12, %v5920_v30 }
 0x30e   :  { %v356_v21 = vrot.slane %v348_v14, %v5920_v30  ;;  %v363_v31 = vrot.slane %v349_v15, %v5920_v30 }
 0x310   :  { %208 = vrot.lane.b32.xlu1 %v5886_v17, %s6904_s28  ;;  %v1461_v17 = vmul.f32 1.442695, %v1449_v53 }
 0x312   :  { %5646 = vpow2.f32 %v1461_v17 }
 0x315   :  { %v6146_v0 = vpop.eup %5644 }
 0x316   :  { %206 = vrot.lane.b32.xlu0 %v5880_v13, %s6904_s28  ;;  %v1463_v13 = vmul.f32 1.442695, %v1450_v56  ;;  %v1487_v10 = vsel %vm1052_vm2, %v6146_v0, 0.0 }
 0x318   :  { %5648 = vpow2.f32 %v1463_v13 }
 0x319   :  { %5650 = vpow2.f32 %v1467_v58 }
 0x31c   :  { %v6150_v7 = vpop.eup %5646 }
 0x31d   :  { %v1481_v63 = vsel %vm1052_vm2, %v6150_v7, 0.0 }
 0x322   :  { %v6156_v3 = vpop.eup %5648 }
 0x323   :  { %v1484_v46 = vsel %vm1052_vm2, %v6156_v3, 0.0  ;;  %v6160_v47 = vpop.eup %5650 }
 0x324   :  { %v1490_v42 = vsel %vm1052_vm2, %v6160_v47, 0.0 }
 0x334   :  { %1479 = vadd.xlane.f32.xlu1 %v1478_v62 }
 0x335   :  { %1476 = vadd.xlane.f32.xlu0 %v1475_v2 }
 0x338   :  { %1488 = vadd.xlane.f32.xlu1 %v1487_v10 }
 0x339   :  { %1482 = vadd.xlane.f32.xlu0 %v1481_v63 }
 0x33d   :  { %1485 = vadd.xlane.f32.xlu0 %v1484_v46 }
 0x341   :  { %1491 = vadd.xlane.f32.xlu0 %v1490_v42 }
 0x38c   :  { %v1471_v5 = vpop.xlane.xlu1 %1470 }
 0x38d   :  { %v1474_v6 = vpop.xlane.xlu0 %1473 }
 0x38e   :  { %5652 = vrcp.f32 %v1474_v6 }
 0x38f   :  { %5654 = vrcp.f32 %v1471_v5 }
 0x390   :  { %v209_v16 = vpop.permute.xlu1 %208 }
 0x391   :  { %v568_v22 = vcombine.low %v6123_v27, %v209_v16  ;;  %v569_v23 = vcombine.high %v6123_v27, %v209_v16  ;;  %v207_v24 = vpop.permute.xlu0 %206 }
 0x392   :  { %v364_v26 = vcombine.low %v6119_v20, %v207_v24  ;;  %v365_v18 = vcombine.high %v6119_v20, %v207_v24 }
 0x393   :  { %v576_v29 = vrot.slane %v568_v22, %v5920_v30  ;;  %v583_v19 = vrot.slane %v569_v23, %v5920_v30 }
 0x394   :  { %v372_v27 = vrot.slane %v364_v26, %v5920_v30  ;;  %v379_v32 = vrot.slane %v365_v18, %v5920_v30 }
 0x395   :  { %v584_v33 = vcombine.low %v560_v25, %v576_v29  ;;  %v585_v34 = vcombine.high %v560_v25, %v576_v29  ;;  %v600_v38 = vcombine.low %v567_v28, %v583_v19  ;;  %v601_v39 = vcombine.high %v567_v28, %v583_v19 }
 0x396   :  { %v380_v20 = vcombine.low %v356_v21, %v372_v27  ;;  %v381_v40 = vcombine.high %v356_v21, %v372_v27  ;;  %v396_v41 = vcombine.low %v363_v31, %v379_v32  ;;  %v397_v43 = vcombine.high %v363_v31, %v379_v32 }
 0x397   :  { %v592_v44 = vrot.slane %v584_v33, %v5922_v37  ;;  %v599_v45 = vrot.slane %v585_v34, %v5922_v37  ;;  %v608_v49 = vrot.slane %v600_v38, %v5922_v37  ;;  %v615_v50 = vrot.slane %v601_v39, %v5922_v37 }
 0x398   :  { %v388_v51 = vrot.slane %v380_v20, %v5922_v37  ;;  %v395_v52 = vrot.slane %v381_v40, %v5922_v37  ;;  %v404_v53 = vrot.slane %v396_v41, %v5922_v37  ;;  %v411_v59 = vrot.slane %v397_v43, %v5922_v37  ;;  %v5653_v5 = vpop.eup %5652 }
 0x399   :  { %v960_v54 = vcombine.low %v592_v44, %v599_v45  ;;  %v5054_v55 = vcombine.high %v592_v44, %v599_v45  ;;  %v976_v17 = vcombine.low %v608_v49, %v615_v50  ;;  %v5055_v56 = vcombine.high %v608_v49, %v615_v50  ;;  %v5655_v26 = vpop.eup %5654 }
 0x39a   :  { %v892_v13 = vcombine.low %v388_v51, %v395_v52  ;;  %v5052_v60 = vcombine.high %v388_v51, %v395_v52  ;;  %v908_v42 = vcombine.low %v404_v53, %v411_v59  ;;  %v5053_v48 = vcombine.high %v404_v53, %v411_v59 }
 0x39b   :  { %v967_v58 = vrot.slane %v960_v54, %v5920_v30  ;;  %v975_v62 = vrot.slane %v5054_v55, %v5920_v30  ;;  %v983_v2 = vrot.slane %v976_v17, %v5920_v30  ;;  %v991_v10 = vrot.slane %v5055_v56, %v5920_v30 }
 0x39c   :  { %v899_v63 = vrot.slane %v892_v13, %v5920_v30  ;;  %v907_v46 = vrot.slane %v5052_v60, %v5920_v30  ;;  %v915_v6 = vrot.slane %v908_v42, %v5920_v30  ;;  %v923_v14 = vrot.slane %v5053_v48, %v5920_v30 }
 0x39d   :  { %v992_v4 = vcombine.low %v967_v58, %v975_v62  ;;  %v1008_v12 = vcombine.low %v983_v2, %v991_v10  ;;  %v1502_v28 = vmul.f32 %v5653_v5, %v6127_v36  ;;  %v1501_v32 = vmul.f32 %v5655_v26, %v6125_v35 }
 0x39e   :  { %v924_v11 = vcombine.low %v899_v63, %v907_v46  ;;  %v940_v23 = vcombine.low %v915_v6, %v923_v14  ;;  %v993_v41 = vcombine.high %v967_v58, %v975_v62  ;;  %v1009_v43 = vcombine.high %v983_v2, %v991_v10 }
 0x39f   :  { %v1000_v15 = vrot.slane %v992_v4, %v5922_v37  ;;  %v1016_v16 = vrot.slane %v1008_v12, %v5922_v37  ;;  %v1510_v34 = vpack.c.bf16 %v1502_v28, %v1502_v28  ;;  %v1509_v20 = vpack.c.bf16 %v1501_v32, %v1501_v32 }
 0x3a0   :  { %v932_v22 = vrot.slane %v924_v11, %v5922_v37  ;;  %v948_v18 = vrot.slane %v940_v23, %v5922_v37  ;;  %v925_v45 = vcombine.high %v899_v63, %v907_v46  ;;  %v941_v49 = vcombine.high %v915_v6, %v923_v14 }
 0x3a1   :  { %v1024_v24 = vcombine.low %v1000_v15, %v1016_v16  ;;  %v1025_v25 = vcombine.high %v1000_v15, %v1016_v16  ;;  %v1007_v50 = vrot.slane %v993_v41, %v5922_v37  ;;  %v1023_v51 = vrot.slane %v1009_v43, %v5922_v37 }
 0x3a2   :  { %v956_v29 = vcombine.low %v932_v22, %v948_v18  ;;  %v957_v19 = vcombine.high %v932_v22, %v948_v18  ;;  %v939_v53 = vrot.slane %v925_v45, %v5922_v37  ;;  %v955_v54 = vrot.slane %v941_v49, %v5922_v37 }
 0x3a3   :  { %v1045_v21 = vpack.c.bf16 %v1024_v24, %v1024_v24  ;;  %v1047_v27 = vpack.c.bf16 %v1025_v25, %v1025_v25  ;;  %v1026_v55 = vcombine.low %v1007_v50, %v1023_v51  ;;  %v1027_v6 = vcombine.high %v1007_v50, %v1023_v51 }
 0x3a4   :  { %v1044_v33 = vpack.c.bf16 %v956_v29, %v956_v29  ;;  %v1046_v39 = vpack.c.bf16 %v957_v19, %v957_v19  ;;  %v958_v56 = vcombine.low %v939_v53, %v955_v54 }
 0x3a5   :  { %v1568_v31 = vsel %vm1520_vm3, %v1045_v21, 0  ;;  %v1660_v36 = vsel %vm1520_vm3, %v1047_v27, 0  ;;  %v1049_v62 = vpack.c.bf16 %v1026_v55, %v1026_v55  ;;  %v1051_v15 = vpack.c.bf16 %v1027_v6, %v1027_v6 }
 0x3a6   :  { %5355 = vmatpush3.bf16.msra.mxu0 %v1568_v31  ;;  %v1522_v38 = vsel %vm1520_vm3, %v1044_v33, 0  ;;  %v1614_v35 = vsel %vm1520_vm3, %v1046_v39, 0  ;;  %v1048_v63 = vpack.c.bf16 %v958_v56, %v958_v56 }
 0x3a7   :  { %5366 = vmatprep.subr.bf16.mxu0 %v5740_v1  ;;  %5349 = vmatpush3.bf16.msra.mxu1 %v1522_v38  ;;  %v1752_v4 = vsel %vm1520_vm3, %v1049_v62, 0  ;;  %v1844_v25 = vsel %vm1520_vm3, %v1051_v15, 0 }
 0x3a8   :  { %5360 = vmatprep.subr.bf16.mxu1 %v5740_v1  ;;  %v1706_v5 = vsel %vm1520_vm3, %v1048_v63, 0 }
 0x3a9   :  { %5357 = vmatmul.mubr.msk.bf16.vlgmr.msra.gmra.mrb[20].mxu0 %vm1052_vm2, %v1510_v34 }
 0x3aa   :  { %5367 = vmatpush3.bf16.msra.mxu0 %v1660_v36  ;;  %5368 = vmatprep.mubr.msk.bf16.mxu0 %vm5741_vm0, %v5740_v1 }
 0x3ab   :  { %5378 = vmatprep.subr.bf16.mxu0 %v5740_v1  ;;  %5351 = vmatmul.mubr.msk.bf16.vlgmr.msra.gmra.mrb[16].mxu1 %vm1052_vm2, %v1509_v20 }
 0x3ac   :  { %5361 = vmatpush3.bf16.msra.mxu1 %v1614_v35  ;;  %5362 = vmatprep.mubr.msk.bf16.mxu1 %vm5741_vm0, %v5740_v1 }
 0x3ad   :  { %5372 = vmatprep.subr.bf16.mxu1 %v5740_v1 }
 0x3c1   :  { %v1480_v40 = vpop.xlane.xlu1 %1479 }
 0x3c2   :  { %5656 = vrcp.f32 %v1480_v40  ;;  %v1477_v44 = vpop.xlane.xlu0 %1476 }
 0x3c3   :  { %5658 = vrcp.f32 %v1477_v44 }
 0x3c5   :  { %v1489_v59 = vpop.xlane.xlu1 %1488 }
 0x3c6   :  { %v1483_v52 = vpop.xlane.xlu0 %1482 }
 0x3c7   :  { %5660 = vrcp.f32 %v1483_v52 }
 0x3ca   :  { %v1486_v17 = vpop.xlane.xlu0 %1485 }
 0x3cb   :  { %5662 = vrcp.f32 %v1486_v17 }
 0x3cc   :  { %v5657_v13 = vpop.eup %5656  ;;  %5664 = vrcp.f32 %v1489_v59 }
 0x3cd   :  { %v5659_v60 = vpop.eup %5658  ;;  %v1504_v58 = vmul.f32 %v5657_v13, %v6140_v57  ;;  %v959_v57 = vcombine.high %v939_v53, %v955_v54 }
 0x3ce   :  { %v1503_v2 = vmul.f32 %v5659_v60, %v6142_v61  ;;  %v1492_v10 = vpop.xlane.xlu0 %1491 }
 0x3cf   :  { %5666 = vrcp.f32 %v1492_v10  ;;  %v1512_v46 = vpack.c.bf16 %v1504_v58, %v1504_v58  ;;  %v1050_v14 = vpack.c.bf16 %v959_v57, %v959_v57 }
 0x3d0   :  { %v1511_v42 = vpack.c.bf16 %v1503_v2, %v1503_v2 }
 0x3d1   :  { %v5661_v48 = vpop.eup %5660  ;;  %5369 = vmatmul.mubr.msk.bf16.vlgmr.msra.gmra.mrb[24].mxu0 %vm1052_vm2, %v1512_v46 }
 0x3d2   :  { %5363 = vmatmul.mubr.msk.bf16.vlgmr.msra.gmra.mrb[20].mxu1 %vm1052_vm2, %v1511_v42  ;;  %5379 = vmatpush3.bf16.msra.mxu0 %v1752_v4  ;;  %v1505_v61 = vmul.f32 %v5661_v48, %v6150_v7  ;;  %v1798_v7 = vsel %vm1520_vm3, %v1050_v14, 0 }
 0x3d3   :  { %5373 = vmatpush3.bf16.msra.mxu1 %v1706_v5  ;;  %5374 = vmatprep.mubr.msk.bf16.mxu1 %vm5741_vm0, %v5740_v1 }
 0x3d4   :  { %5380 = vmatprep.mubr.msk.bf16.mxu0 %vm5741_vm0, %v5740_v1  ;;  %5384 = vmatprep.subr.bf16.mxu1 %v5740_v1  ;;  %v1513_v22 = vpack.c.bf16 %v1505_v61, %v1505_v61 }
 0x3d5   :  { %v5663_v11 = vpop.eup %5662  ;;  %5390 = vmatprep.subr.bf16.mxu0 %v5740_v1 }
 0x3d6   :  { %v1506_v12 = vmul.f32 %v5663_v11, %v6156_v3  ;;  %v5665_v16 = vpop.eup %5664 }
 0x3d7   :  { %v1507_v26 = vmul.f32 %v5665_v16, %v6146_v0 }
 0x3d8   :  { %v1514_v23 = vpack.c.bf16 %v1506_v12, %v1506_v12 }
 0x3d9   :  { %v5667_v24 = vpop.eup %5666  ;;  %v1515_v18 = vpack.c.bf16 %v1507_v26, %v1507_v26 }
 0x3da   :  { %5375 = vmatmul.mubr.msk.bf16.vlgmr.msra.gmra.mrb[24].mxu1 %vm1052_vm2, %v1513_v22  ;;  %5381 = vmatmul.mubr.msk.bf16.vlgmr.msra.gmra.mrb[28].mxu0 %vm1052_vm2, %v1514_v23  ;;  %v1508_v3 = vmul.f32 %v5667_v24, %v6160_v47 }
 0x3db   :  { %5385 = vmatpush3.bf16.msra.mxu1 %v1798_v7  ;;  %5391 = vmatpush3.bf16.msra.mxu0 %v1844_v25 }
 0x3dc   :  { %5386 = vmatprep.mubr.msk.bf16.mxu1 %vm5741_vm0, %v5740_v1  ;;  %5392 = vmatprep.mubr.msk.bf16.mxu0 %vm5741_vm0, %v5740_v1  ;;  %v1516_v28 = vpack.c.bf16 %v1508_v3, %v1508_v3 }
 0x3dd   :  { %5396 = vmatprep.subr.bf16.mxu1 %v5740_v1  ;;  %5404 = vmatprep.subr.bf16.mxu0 %v5740_v1 }
 0x3e2   :  { %5387 = vmatmul.mubr.msk.bf16.vlgmr.msra.gmra.mrb[28].mxu1 %vm1052_vm2, %v1515_v18  ;;  %5393 = vmatmul.mubr.msk.bf16.vlgmr.msra.gmra.mrb[32].mxu0 %vm1052_vm2, %v1516_v28 }
 0x3e3   :  { %5400 = vmatprep.mubr.msk.bf16.mxu1 %vm5741_vm0, %v5740_v1  ;;  %5408 = vmatprep.mubr.msk.bf16.mxu0 %vm5741_vm0, %v5740_v1 }
 0x47c   :  { %v1604_v0 = vpop.f32.mrb[20].mxu0 }
 0x47d   :  { %v5358_v47 = vpop.f32.mrb[21].mxu0 }
 0x47e   :  { %v1607_v21 = vpop.f32.mrb[22].mxu0  ;;  %v1558_v29 = vpop.f32.mrb[16].mxu1 }
 0x47f   :  { %v5359_v19 = vpop.f32.mrb[23].mxu0  ;;  %v5352_v31 = vpop.f32.mrb[17].mxu1 }
 0x480   :  { %v1561_v27 = vpop.f32.mrb[18].mxu1 }
 0x481   :  { %v5353_v32 = vpop.f32.mrb[19].mxu1 }
 0x4a4   :  { %v1696_v33 = vpop.f32.mrb[24].mxu0 }
 0x4a5   :  { %v1650_v34 = vpop.f32.mrb[20].mxu1  ;;  %v5370_v38 = vpop.f32.mrb[25].mxu0 }
 0x4a6   :  { %v5364_v39 = vpop.f32.mrb[21].mxu1  ;;  %v1699_v36 = vpop.f32.mrb[26].mxu0 }
 0x4a7   :  { %v1653_v20 = vpop.f32.mrb[22].mxu1  ;;  %v5371_v35 = vpop.f32.mrb[27].mxu0 }
 0x4a8   :  { %v5365_v40 = vpop.f32.mrb[23].mxu1 }
 0x4ad   :  { %v1742_v41 = vpop.f32.mrb[24].mxu1  ;;  %v1788_v43 = vpop.f32.mrb[28].mxu0 }
 0x4ae   :  { %v1886_v44 = vcombine.low %v1558_v29, %v1742_v41  ;;  %v1887_v45 = vcombine.high %v1558_v29, %v1742_v41  ;;  %v1954_v49 = vcombine.low %v1604_v0, %v1788_v43  ;;  %v1955_v50 = vcombine.high %v1604_v0, %v1788_v43  ;;  %v5376_v51 = vpop.f32.mrb[25].mxu1  ;;  %v5382_v52 = vpop.f32.mrb[29].mxu0  ;;  %v5616_v43 = vld [vmem:[%s6888_s4] sm:$0xff]  }
 0x4af   :  { %v1745_v53 = vpop.f32.mrb[26].mxu1  ;;  %v1791_v54 = vpop.f32.mrb[30].mxu0  ;;  %5397 = vmatpush3.bf16.msra.mxu1 %v5616_v43 }
 0x4b0   :  { %v5377_v55 = vpop.f32.mrb[27].mxu1  ;;  %v5383_v17 = vpop.f32.mrb[31].mxu0  ;;  %v1894_v63 = vrot.slane %v1886_v44, %v5920_v30  ;;  %v1901_v46 = vrot.slane %v1887_v45, %v5920_v30  ;;  %v1962_v12 = vrot.slane %v1954_v49, %v5920_v30  ;;  %v1969_v14 = vrot.slane %v1955_v50, %v5920_v30  ;;  %5398 = vmatprep.subr.bf16.mxu1 %v5740_v1 }
 0x4b5   :  { %v1834_v56 = vpop.f32.mrb[28].mxu1  ;;  %v1880_v59 = vpop.f32.mrb[32].mxu0 }
 0x4b6   :  { %v1902_v13 = vcombine.low %v1650_v34, %v1834_v56  ;;  %v1903_v60 = vcombine.high %v1650_v34, %v1834_v56  ;;  %v1970_v58 = vcombine.low %v1696_v33, %v1880_v59  ;;  %v1971_v62 = vcombine.high %v1696_v33, %v1880_v59  ;;  %v5388_v2 = vpop.f32.mrb[29].mxu1  ;;  %v5394_v10 = vpop.f32.mrb[33].mxu0 }
 0x4b7   :  { %v1837_v42 = vpop.f32.mrb[30].mxu1  ;;  %v1883_v48 = vpop.f32.mrb[34].mxu0 }
 0x4b8   :  { %v1910_v4 = vrot.slane %v1902_v13, %v5920_v30  ;;  %v1917_v5 = vrot.slane %v1903_v60, %v5920_v30  ;;  %v1978_v57 = vrot.slane %v1970_v58, %v5920_v30  ;;  %v1985_v6 = vrot.slane %v1971_v62, %v5920_v30  ;;  %v5389_v61 = vpop.f32.mrb[31].mxu1  ;;  %v5395_v11 = vpop.f32.mrb[35].mxu0  ;;  %v5617_v42 = vld [vmem:[%s6888_s4 + $0x8] sm:$0xff]  }
 0x4b9   :  { %5399 = vmatpush3.bf16.msra.mxu1 %v5617_v42 }
 0x4ba   :  { %v1918_v15 = vcombine.low %v1894_v63, %v1910_v4  ;;  %v1919_v16 = vcombine.high %v1894_v63, %v1910_v4  ;;  %v1934_v22 = vcombine.low %v1901_v46, %v1917_v5  ;;  %v1935_v23 = vcombine.high %v1901_v46, %v1917_v5  ;;  %5412 = vmatprep.subr.bf16.mxu1 %v5740_v1 }
 0x4bb   :  { %v1986_v24 = vcombine.low %v1962_v12, %v1978_v57  ;;  %v1987_v7 = vcombine.high %v1962_v12, %v1978_v57  ;;  %v2002_v25 = vcombine.low %v1969_v14, %v1985_v6  ;;  %v2003_v26 = vcombine.high %v1969_v14, %v1985_v6 }
 0x4bc   :  { %v1926_v3 = vrot.slane %v1918_v15, %v5922_v37  ;;  %v1933_v18 = vrot.slane %v1919_v16, %v5922_v37  ;;  %v1942_v28 = vrot.slane %v1934_v22, %v5922_v37  ;;  %v1949_v0 = vrot.slane %v1935_v23, %v5922_v37 }
 0x4bd   :  { %v1994_v47 = vrot.slane %v1986_v24, %v5922_v37  ;;  %v2001_v21 = vrot.slane %v1987_v7, %v5922_v37  ;;  %v2010_v29 = vrot.slane %v2002_v25, %v5922_v37  ;;  %v2017_v19 = vrot.slane %v2003_v26, %v5922_v37 }
 0x4be   :  { %v2022_v31 = vcombine.low %v1926_v3, %v1933_v18  ;;  %v5072_v27 = vcombine.high %v1926_v3, %v1933_v18  ;;  %v2038_v32 = vcombine.low %v1942_v28, %v1949_v0  ;;  %v5073_v33 = vcombine.high %v1942_v28, %v1949_v0 }
 0x4bf   :  { %v2090_v34 = vcombine.low %v1994_v47, %v2001_v21  ;;  %v5074_v38 = vcombine.high %v1994_v47, %v2001_v21  ;;  %v2106_v39 = vcombine.low %v2010_v29, %v2017_v19  ;;  %v5075_v36 = vcombine.high %v2010_v29, %v2017_v19 }
 0x4c0   :  { %v2029_v20 = vrot.slane %v2022_v31, %v5920_v30  ;;  %v2037_v35 = vrot.slane %v5072_v27, %v5920_v30  ;;  %v2045_v40 = vrot.slane %v2038_v32, %v5920_v30  ;;  %v2053_v41 = vrot.slane %v5073_v33, %v5920_v30  ;;  %v5076_v32 = vld [vmem:[%s6889_s5] ss:$0 sm:$0xff] }
 0x4c1   :  { %v2097_v44 = vrot.slane %v2090_v34, %v5920_v30  ;;  %v2105_v45 = vrot.slane %v5074_v38, %v5920_v30  ;;  %v2113_v49 = vrot.slane %v2106_v39, %v5920_v30  ;;  %v2121_v50 = vrot.slane %v5075_v36, %v5920_v30 }
 0x4c2   :  { %v2055_v51 = vcombine.high %v2029_v20, %v2037_v35  ;;  %v2071_v52 = vcombine.high %v2045_v40, %v2053_v41  ;;  %v2054_v53 = vcombine.low %v2029_v20, %v2037_v35  ;;  %v2070_v54 = vcombine.low %v2045_v40, %v2053_v41 }
 0x4c3   :  { %v2123_v55 = vcombine.high %v2097_v44, %v2105_v45  ;;  %v2139_v17 = vcombine.high %v2113_v49, %v2121_v50  ;;  %v2122_v56 = vcombine.low %v2097_v44, %v2105_v45  ;;  %v2138_v59 = vcombine.low %v2113_v49, %v2121_v50 }
 0x4c4   :  { %v2069_v13 = vrot.slane %v2055_v51, %v5922_v37  ;;  %v2085_v60 = vrot.slane %v2071_v52, %v5922_v37  ;;  %v2062_v58 = vrot.slane %v2054_v53, %v5922_v37  ;;  %v2078_v62 = vrot.slane %v2070_v54, %v5922_v37 }
 0x4c5   :  { %v2137_v2 = vrot.slane %v2123_v55, %v5922_v37  ;;  %v2153_v10 = vrot.slane %v2139_v17, %v5922_v37  ;;  %v2130_v63 = vrot.slane %v2122_v56, %v5922_v37  ;;  %v2146_v46 = vrot.slane %v2138_v59, %v5922_v37  ;;  %v5619_v17 = vld [vmem:[%s6892_s8 + $0x8] sm:$0xff]   ;;  %v5620_v56 = vld [vmem:[%s6894_s10] sm:$0xff]  }
 0x4c6   :  { %v2088_v48 = vcombine.low %v2069_v13, %v2085_v60  ;;  %v2086_v4 = vcombine.low %v2062_v58, %v2078_v62  ;;  %v2087_v5 = vcombine.high %v2062_v58, %v2078_v62  ;;  %v2089_v57 = vcombine.high %v2069_v13, %v2085_v60  ;;  %v5621_v59 = vld [vmem:[%s6894_s10 + $0x8] sm:$0xff]  }
 0x4c7   :  { %v2156_v6 = vcombine.low %v2137_v2, %v2153_v10  ;;  %v2155_v61 = vcombine.high %v2130_v63, %v2146_v46  ;;  %v2154_v11 = vcombine.low %v2130_v63, %v2146_v46  ;;  %v2157_v12 = vcombine.high %v2137_v2, %v2153_v10  ;;  %v5080_v46 = vld [vmem:[%s6890_s6] ss:$0 sm:$0xff] }
 0x4c9   :  { %v5589_v14 = vpack.i.bf16 %v2156_v6, %v2088_v48  ;;  %v5584_v15 = vpack.i.bf16 %v2155_v61, %v2087_v5  ;;  %v5594_v16 = vpack.i.bf16 %v2157_v12, %v2089_v57  ;;  %v5081_v57 = vld [vmem:[%s6891_s7] ss:$0 sm:$0xff] }
 0x4cb   :  { %5590 = vrot.lane.b32.xlu0 %v5589_v14, %s6903_s17  ;;  %5585 = vrot.lane.b32.xlu1 %v5584_v15, %s6902_s29  ;;  %v5622_v14 = vld [vmem:[%s6894_s10 + $0x10] sm:$0xff]   ;;  %v5623_v15 = vld [vmem:[%s6894_s10 + $0x18] sm:$0xff]  }
 0x4cf   :  { %5595 = vrot.lane.b32.xlu1 %v5594_v16, %s6901_s30  ;;  %v5082_v16 = vld [vmem:[%s6893_s9] ss:$0 sm:$0xff]  ;;  %s6916_s30 = smov 8  }
 0x53d   :  { %v5591_v22 = vpop.permute.xlu0 %5590  ;;  %v5586_v23 = vpop.permute.xlu1 %5585 }
 0x53e   :  { %v5588_v24 = vunpack.i.h.bf16 %v5586_v23  ;;  %v5587_v7 = vunpack.i.l.bf16 %v5586_v23  ;;  %v5593_v25 = vunpack.i.h.bf16 %v5591_v22  ;;  %v5592_v26 = vunpack.i.l.bf16 %v5591_v22 }
 0x540   :  { %v2182_v3 = vsel %vm1052_vm2, %v2086_v4, %v5587_v7  ;;  %v2183_v18 = vsel %vm1052_vm2, %v2154_v11, %v5588_v24 }
 0x541   :  { %v5596_v28 = vpop.permute.xlu1 %5595  ;;  %v2185_v21 = vsel %vm2184_vm4, %v2182_v3, %v5592_v26  ;;  %v2186_v29 = vsel %vm2184_vm4, %v2183_v18, %v5593_v25 }
 0x542   :  { %v5598_v0 = vunpack.i.h.bf16 %v5596_v28  ;;  %v5597_v47 = vunpack.i.l.bf16 %v5596_v28 }
 0x544   :  { %v2188_v19 = vsel %vm2187_vm5, %v2185_v21, %v5597_v47  ;;  %v2189_v31 = vsel %vm2187_vm5, %v2186_v29, %v5598_v0  ;;  %v5086_v0 = vld [vmem:[%s6895_s11] ss:$0 sm:$0xff] }
 0x545   :  { %v2190_v27 = vpack.c.bf16 %v2189_v31, %v2188_v19 }
 0x547   :  { %5401 = vmatmul.mubr.msk.bf16.vlgmr.msra.gmra.mrb[32].mxu1 %vm99_vm1, %v2190_v27 }
 0x548   :  { %5420 = vmatprep.mubr.msk.bf16.mxu1 %vm5741_vm0, %v5740_v1  ;;  %5413 = vmatpush3.bf16.msra.mxu1 %v5620_v56  ;;  %v5092_v56 = vld [vmem:[%s6896_s12] ss:$0 sm:$0xff] }
 0x549   :  { %5414 = vmatprep.subr.bf16.mxu1 %v5740_v1 }
 0x54c   :  { %5415 = vmatpush3.bf16.msra.mxu1 %v5621_v59 }
 0x54d   :  { %5416 = vmatprep.subr.bf16.mxu1 %v5740_v1 }
 0x550   :  { %5417 = vmatpush3.bf16.msra.mxu1 %v5622_v14 }
 0x551   :  { %5418 = vmatprep.subr.bf16.mxu1 %v5740_v1 }
 0x554   :  { %5419 = vmatpush3.bf16.msra.mxu1 %v5623_v15 }
 0x555   :  { %5438 = vmatprep.subr.bf16.mxu1 %v5740_v1 }
 0x61a   :  { %v2251_v33 = vpop.f32.mrb[32].mxu1 }
 0x61b   :  { %v2252_v34 = vadd.f32 %v5076_v32, %v2251_v33  ;;  %v5402_v38 = vpop.f32.mrb[33].mxu1 }
 0x61c   :  { %v2254_v39 = vpop.f32.mrb[34].mxu1 }
 0x61d   :  { %v2255_v36 = vadd.f32 %v5076_v32, %v2254_v39  ;;  %v5403_v20 = vpop.f32.mrb[35].mxu1  ;;  %v2258_v35 = vadd.f32 %v2252_v34, %v5867_v8 }
 0x61f   :  { %v2262_v40 = vsel %vm99_vm1, %v2258_v35, 0.0  ;;  %v2259_v41 = vadd.f32 %v2255_v36, %v5869_v9  ;;  %v5618_v9 = vld [vmem:[%s6892_s8] sm:$0xff]  }
 0x620   :  { %2263 = vadd.xlane.f32.xlu1 %v2262_v40  ;;  %5405 = vmatpush3.bf16.msra.mxu0 %v5618_v9 }
 0x621   :  { %v2265_v43 = vsel %vm99_vm1, %v2259_v41, 0.0  ;;  %5406 = vmatprep.subr.bf16.mxu0 %v5740_v1 }
 0x622   :  { %2266 = vadd.xlane.f32.xlu0 %v2265_v43 }
 0x624   :  { %5407 = vmatpush3.bf16.msra.mxu0 %v5619_v17 }
 0x625   :  { %5424 = vmatprep.subr.bf16.mxu0 %v5740_v1 }
 0x6ad   :  { %v2264_v44 = vpop.xlane.xlu1 %2263 }
 0x6ae   :  { %v2269_v45 = vmul.f32 0.03125, %v2264_v44 }
 0x6af   :  { %v2267_v49 = vpop.xlane.xlu0 %2266 }
 0x6b0   :  { %v2271_v50 = vsub.f32 %v2258_v35, %v2269_v45  ;;  %v2270_v51 = vmul.f32 0.03125, %v2267_v49 }
 0x6b2   :  { %v2272_v52 = vsub.f32 %v2259_v41, %v2270_v51  ;;  %v2273_v53 = vmul.f32 %v2271_v50, %v2271_v50  ;;  %v5625_v51 = vld [vmem:[%s6886_s2 + $0x18] sm:$0xff]  }
 0x6b4   :  { %v2275_v54 = vsel %vm99_vm1, %v2273_v53, 0.0  ;;  %v2274_v55 = vmul.f32 %v2272_v52, %v2272_v52 }
 0x6b5   :  { %2276 = vadd.xlane.f32.xlu0 %v2275_v54 }
 0x6b6   :  { %v2278_v8 = vsel %vm99_vm1, %v2274_v55, 0.0 }
 0x6b7   :  { %2279 = vadd.xlane.f32.xlu1 %v2278_v8 }
 0x742   :  { %v2277_v13 = vpop.xlane.xlu0 %2276 }
 0x743   :  { %v2281_v60 = vmul.f32 0.03125, %v2277_v13 }
 0x744   :  { %v2280_v58 = vpop.xlane.xlu1 %2279 }
 0x745   :  { %v2283_v62 = vadd.f32 1e-05, %v2281_v60  ;;  %v2282_v2 = vmul.f32 0.03125, %v2280_v58 }
 0x747   :  { %5668 = vrsqrt.f32 %v2283_v62  ;;  %v2284_v10 = vadd.f32 1e-05, %v2282_v2  ;;  %v5093_v62 = vld [vmem:[%s6897_s13] ss:$0 sm:$0xff] }
 0x749   :  { %5670 = vrsqrt.f32 %v2284_v10 }
 0x751   :  { %v5669_v63 = vpop.eup %5668 }
 0x752   :  { %v2287_v42 = vmul.f32 %v5669_v63, %v2271_v50  ;;  %v5624_v50 = vld [vmem:[%s6886_s2 + $0x10] sm:$0xff]  }
 0x753   :  { %v5671_v48 = vpop.eup %5670 }
 0x754   :  { %v2295_v4 = vmul.f32 %v5080_v46, %v2287_v42  ;;  %v2288_v5 = vmul.f32 %v5671_v48, %v2272_v52  ;;  %v5099_v42 = vld [vmem:[%s6887_s3 + $0x1] ss:$0 sm:$0xff]  ;;  %s6912_s3 = smov 56  }
 0x756   :  { %v2296_v6 = vmul.f32 %v5080_v46, %v2288_v5  ;;  %v2303_v61 = vadd.f32 %v5081_v57, %v2295_v4 }
 0x758   :  { %v2304_v11 = vadd.f32 %v5081_v57, %v2296_v6 }
 0x75a   :  { %v2305_v12 = vpack.c.bf16 %v2304_v11, %v2303_v61 }
 0x75c   :  { %5409 = vmatmul.mubr.msk.bf16.vlgmr.msra.gmra.mrb[36].mxu0 %vm99_vm1, %v2305_v12 }
 0x75d   :  { %5428 = vmatprep.mubr.msk.bf16.mxu0 %vm5741_vm0, %v5740_v1  ;;  %5425 = vmatpush3.bf16.msra.mxu0 %v5624_v50 }
 0x75e   :  { %5426 = vmatprep.subr.bf16.mxu0 %v5740_v1 }
 0x761   :  { %5427 = vmatpush3.bf16.msra.mxu0 %v5625_v51 }
 0x762   :  { %5432 = vmatprep.subr.bf16.mxu0 %v5740_v1 }
 0x82f   :  { %v2366_v22 = vpop.f32.mrb[36].mxu0 }
 0x830   :  { %v2367_v23 = vadd.f32 %v5082_v16, %v2366_v22  ;;  %v5410_v24 = vpop.f32.mrb[37].mxu0 }
 0x831   :  { %v2369_v7 = vpop.f32.mrb[38].mxu0 }
 0x832   :  { %v2370_v25 = vadd.f32 %v5082_v16, %v2369_v7  ;;  %v5411_v26 = vpop.f32.mrb[39].mxu0  ;;  %v2373_v3 = vmax.f32 %v2367_v23, 0.0 }
 0x834   :  { %v2374_v18 = vmax.f32 %v2370_v25, 0.0 }
 0x836   :  { %v2375_v28 = vpack.c.bf16 %v2374_v18, %v2373_v3 }
 0x838   :  { %5421 = vmatmul.mubr.msk.bf16.vlgmr.msra.gmra.mrb[36].mxu1 %vm2415_vm6, %v2375_v28 }
 0x839   :  { %5440 = vmatprep.mubr.msk.bf16.mxu1 %vm5741_vm0, %v5740_v1 }
 0x90b   :  { %v2453_v47 = vpop.f32.mrb[36].mxu1 }
 0x90c   :  { %v2454_v21 = vadd.f32 %v5086_v0, %v2453_v47  ;;  %v5422_v29 = vpop.f32.mrb[37].mxu1 }
 0x90d   :  { %v2456_v19 = vpop.f32.mrb[38].mxu1 }
 0x90e   :  { %v2457_v31 = vadd.f32 %v5086_v0, %v2456_v19  ;;  %v5423_v27 = vpop.f32.mrb[39].mxu1  ;;  %v2460_v32 = vadd.f32 %v2454_v21, %v2303_v61 }
 0x910   :  { %v2464_v33 = vsel %vm99_vm1, %v2460_v32, 0.0  ;;  %v2461_v34 = vadd.f32 %v2457_v31, %v2304_v11 }
 0x911   :  { %2465 = vadd.xlane.f32.xlu0 %v2464_v33 }
 0x912   :  { %v2467_v38 = vsel %vm99_vm1, %v2461_v34, 0.0 }
 0x913   :  { %2468 = vadd.xlane.f32.xlu1 %v2467_v38 }
 0x99e   :  { %v2466_v39 = vpop.xlane.xlu0 %2465 }
 0x99f   :  { %v2470_v36 = vmul.f32 0.03125, %v2466_v39 }
 0x9a0   :  { %v2469_v20 = vpop.xlane.xlu1 %2468 }
 0x9a1   :  { %v2472_v35 = vsub.f32 %v2460_v32, %v2470_v36  ;;  %v2471_v40 = vmul.f32 0.03125, %v2469_v20 }
 0x9a3   :  { %v2473_v41 = vsub.f32 %v2461_v34, %v2471_v40  ;;  %v2474_v43 = vmul.f32 %v2472_v35, %v2472_v35 }
 0x9a5   :  { %v2476_v44 = vsel %vm99_vm1, %v2474_v43, 0.0  ;;  %v2475_v45 = vmul.f32 %v2473_v41, %v2473_v41 }
 0x9a6   :  { %2477 = vadd.xlane.f32.xlu0 %v2476_v44 }
 0x9a7   :  { %v2479_v49 = vsel %vm99_vm1, %v2475_v45, 0.0 }
 0x9a8   :  { %2480 = vadd.xlane.f32.xlu1 %v2479_v49 }
 0xa33   :  { %v2478_v52 = vpop.xlane.xlu0 %2477 }
 0xa34   :  { %v2482_v53 = vmul.f32 0.03125, %v2478_v52 }
 0xa35   :  { %v2481_v54 = vpop.xlane.xlu1 %2480 }
 0xa36   :  { %v2484_v55 = vadd.f32 1e-05, %v2482_v53  ;;  %v2483_v8 = vmul.f32 0.03125, %v2481_v54 }
 0xa38   :  { %5672 = vrsqrt.f32 %v2484_v55  ;;  %v2485_v9 = vadd.f32 1e-05, %v2483_v8 }
 0xa3a   :  { %5674 = vrsqrt.f32 %v2485_v9 }
 0xa42   :  { %v5673_v17 = vpop.eup %5672 }
 0xa43   :  { %v2488_v59 = vmul.f32 %v5673_v17, %v2472_v35 }
 0xa44   :  { %v5675_v13 = vpop.eup %5674 }
 0xa45   :  { %v2496_v60 = vmul.f32 %v5092_v56, %v2488_v59  ;;  %v2489_v58 = vmul.f32 %v5675_v13, %v2473_v41 }
 0xa47   :  { %v2497_v2 = vmul.f32 %v5092_v56, %v2489_v58  ;;  %v6373_v10 = vadd.f32 %v5093_v62, %v2496_v60 }
 0xa49   :  { %v6375_v63 = vadd.f32 %v5093_v62, %v2497_v2 }
 0xa4b   :  { %v2506_v46 = vpack.c.bf16 %v6375_v63, %v6373_v10 }
 0xa4d   :  { %5429 = vmatmul.mubr.msk.bf16.vlgmr.msra.gmra.mrb[40].mxu0 %vm99_vm1, %v2506_v46 }
 0xa4e   :  { %5434 = vmatprep.mubr.msk.bf16.mxu0 %vm5741_vm0, %v5740_v1 }
 0xb20   :  { %v2569_v48 = vpop.f32.mrb[40].mxu0 }
 0xb21   :  { %v6385_v4 = vadd.f32 %v5099_v42, %v2569_v48  ;;  %v5430_v5 = vpop.f32.mrb[41].mxu0 }
 0xb22   :  { %v2572_v57 = vpop.f32.mrb[42].mxu0 }
 0xb23   :  { %2602 = vrot.lane.b32.xlu1 %v6385_v4, %s5742_s18  ;;  %2596 = vrot.lane.b32.xlu0 %v6385_v4, %s5743_s19  ;;  %v5431_v6 = vpop.f32.mrb[43].mxu0  ;;  %v6391_v61 = vadd.f32 %v5099_v42, %v2572_v57 }
 0xb27   :  { %2608 = vrot.lane.b32.xlu1 %v6385_v4, %s5744_s20  ;;  %2604 = vrot.lane.b32.xlu0 %v6391_v61, %s5742_s18  ;;  %s6913_s18 = smov 48  }
 0xb2b   :  { %2614 = vrot.lane.b32.xlu1 %v6385_v4, %s5745_s21  ;;  %2610 = vrot.lane.b32.xlu0 %v6391_v61, %s5744_s20 }
 0xb2f   :  { %2578 = vrot.lane.b32.xlu1 %v6385_v4, %s5746_s22  ;;  %2616 = vrot.lane.b32.xlu0 %v6391_v61, %s5745_s21 }
 0xb33   :  { %2580 = vrot.lane.b32.xlu0 %v6391_v61, %s5746_s22  ;;  %2598 = vrot.lane.b32.xlu1 %v6391_v61, %s5743_s19  ;;  %s6914_s19 = smov 40  }
 0xb37   :  { %2586 = vrot.lane.b32.xlu0 %v6391_v61, %s5747_s23  ;;  %2584 = vrot.lane.b32.xlu1 %v6385_v4, %s5747_s23 }
 0xb3b   :  { %2592 = vrot.lane.b32.xlu0 %v6391_v61, %s5748_s24  ;;  %2590 = vrot.lane.b32.xlu1 %v6385_v4, %s5748_s24  ;;  %s6915_s24 = smov 16  }
 0xb3f   :  { %2620 = vrot.lane.b32.xlu0 %v6385_v4, %s5749_s25  ;;  %2626 = vrot.lane.b32.xlu1 %v6385_v4, %s6912_s3 }
 0xb43   :  { %2628 = vrot.lane.b32.xlu0 %v6391_v61, %s6912_s3  ;;  %2622 = vrot.lane.b32.xlu1 %v6391_v61, %s5749_s25 }
 0xb95   :  { %v2603_v11 = vpop.permute.xlu1 %2602  ;;  %v2597_v12 = vpop.permute.xlu0 %2596 }
 0xb99   :  { %v2609_v14 = vpop.permute.xlu1 %2608  ;;  %v2605_v15 = vpop.permute.xlu0 %2604 }
 0xb9a   :  { %v2676_v16 = vcombine.low %v2597_v12, %v2609_v14  ;;  %v2677_v22 = vcombine.high %v2597_v12, %v2609_v14 }
 0xb9c   :  { %v2684_v26 = vrot.slane %v2676_v16, %v5920_v30  ;;  %v2691_v3 = vrot.slane %v2677_v22, %v5920_v30 }
 0xb9d   :  { %v2615_v23 = vpop.permute.xlu1 %2614  ;;  %v2611_v24 = vpop.permute.xlu0 %2610 }
 0xb9e   :  { %v2692_v7 = vcombine.low %v2603_v11, %v2615_v23  ;;  %v2693_v25 = vcombine.high %v2603_v11, %v2615_v23 }
 0xba0   :  { %v2700_v18 = vrot.slane %v2692_v7, %v5920_v30  ;;  %v2707_v28 = vrot.slane %v2693_v25, %v5920_v30 }
 0xba1   :  { %v2579_v0 = vpop.permute.xlu1 %2578  ;;  %v2617_v47 = vpop.permute.xlu0 %2616 }
 0xba2   :  { %v2740_v21 = vcombine.low %v2684_v26, %v2700_v18  ;;  %v2741_v29 = vcombine.high %v2684_v26, %v2700_v18  ;;  %v2756_v19 = vcombine.low %v2691_v3, %v2707_v28  ;;  %v2757_v31 = vcombine.high %v2691_v3, %v2707_v28 }
 0xba3   :  { %v2896_v27 = vcombine.low %v2605_v15, %v2617_v47  ;;  %v2897_v32 = vcombine.high %v2605_v15, %v2617_v47 }
 0xba4   :  { %v2748_v33 = vrot.slane %v2740_v21, %v5922_v37  ;;  %v2755_v34 = vrot.slane %v2741_v29, %v5922_v37  ;;  %v2764_v38 = vrot.slane %v2756_v19, %v5922_v37  ;;  %v2771_v39 = vrot.slane %v2757_v31, %v5922_v37 }
 0xba5   :  { %v2581_v36 = vpop.permute.xlu0 %2580  ;;  %v2599_v20 = vpop.permute.xlu1 %2598  ;;  %v2904_v51 = vrot.slane %v2896_v27, %v5920_v30  ;;  %v2911_v52 = vrot.slane %v2897_v32, %v5920_v30 }
 0xba6   :  { %v5104_v35 = vcombine.low %v2748_v33, %v2755_v34  ;;  %v5106_v40 = vcombine.high %v2748_v33, %v2755_v34  ;;  %v5108_v41 = vcombine.low %v2764_v38, %v2771_v39  ;;  %v5110_v43 = vcombine.high %v2764_v38, %v2771_v39 }
 0xba7   :  { %v2880_v44 = vcombine.low %v2599_v20, %v2611_v24  ;;  %v2881_v45 = vcombine.high %v2599_v20, %v2611_v24 }
 0xba8   :  { %v6434_v49 = vrot.slane %v5104_v35, %v5920_v30  ;;  %v6437_v50 = vrot.slane %v5106_v40, %v5920_v30  ;;  %v6442_v53 = vrot.slane %v5108_v41, %v5920_v30  ;;  %v6445_v54 = vrot.slane %v5110_v43, %v5920_v30 }
 0xba9   :  { %v2888_v55 = vrot.slane %v2880_v44, %v5920_v30  ;;  %v2895_v8 = vrot.slane %v2881_v45, %v5920_v30  ;;  %v2587_v9 = vpop.permute.xlu0 %2586  ;;  %v2585_v17 = vpop.permute.xlu1 %2584 }
 0xbaa   :  { %v2848_v56 = vcombine.low %v6391_v61, %v2587_v9  ;;  %v2849_v59 = vcombine.high %v6391_v61, %v2587_v9  ;;  %v2644_v13 = vcombine.low %v6385_v4, %v2585_v17  ;;  %v2645_v60 = vcombine.high %v6385_v4, %v2585_v17 }
 0xbab   :  { %v2944_v58 = vcombine.low %v2888_v55, %v2904_v51  ;;  %v2945_v62 = vcombine.high %v2888_v55, %v2904_v51  ;;  %v2960_v2 = vcombine.low %v2895_v8, %v2911_v52  ;;  %v2961_v46 = vcombine.high %v2895_v8, %v2911_v52 }
 0xbac   :  { %v2856_v42 = vrot.slane %v2848_v56, %v5920_v30  ;;  %v2863_v48 = vrot.slane %v2849_v59, %v5920_v30  ;;  %v2652_v5 = vrot.slane %v2644_v13, %v5920_v30  ;;  %v2659_v57 = vrot.slane %v2645_v60, %v5920_v30 }
 0xbad   :  { %v2952_v6 = vrot.slane %v2944_v58, %v5922_v37  ;;  %v2959_v11 = vrot.slane %v2945_v62, %v5922_v37  ;;  %v2968_v12 = vrot.slane %v2960_v2, %v5922_v37  ;;  %v2975_v14 = vrot.slane %v2961_v46, %v5922_v37  ;;  %v2593_v15 = vpop.permute.xlu0 %2592  ;;  %v2591_v16 = vpop.permute.xlu1 %2590 }
 0xbae   :  { %v2864_v22 = vcombine.low %v2581_v36, %v2593_v15  ;;  %v2865_v23 = vcombine.high %v2581_v36, %v2593_v15  ;;  %v2660_v24 = vcombine.low %v2579_v0, %v2591_v16  ;;  %v2661_v7 = vcombine.high %v2579_v0, %v2591_v16 }
 0xbaf   :  { %v5112_v25 = vcombine.low %v2952_v6, %v2959_v11  ;;  %v5114_v26 = vcombine.high %v2952_v6, %v2959_v11  ;;  %v5116_v3 = vcombine.low %v2968_v12, %v2975_v14  ;;  %v5118_v18 = vcombine.high %v2968_v12, %v2975_v14 }
 0xbb0   :  { %v2872_v28 = vrot.slane %v2864_v22, %v5920_v30  ;;  %v2879_v47 = vrot.slane %v2865_v23, %v5920_v30  ;;  %v2668_v21 = vrot.slane %v2660_v24, %v5920_v30  ;;  %v2675_v29 = vrot.slane %v2661_v7, %v5920_v30 }
 0xbb1   :  { %v6466_v19 = vrot.slane %v5112_v25, %v5920_v30  ;;  %v6469_v31 = vrot.slane %v5114_v26, %v5920_v30  ;;  %v6472_v0 = vrot.slane %v5116_v3, %v5920_v30  ;;  %v6475_v27 = vrot.slane %v5118_v18, %v5920_v30 }
 0xbb2   :  { %v2912_v32 = vcombine.low %v2856_v42, %v2872_v28  ;;  %v2913_v33 = vcombine.high %v2856_v42, %v2872_v28  ;;  %v2928_v34 = vcombine.low %v2863_v48, %v2879_v47  ;;  %v2929_v38 = vcombine.high %v2863_v48, %v2879_v47 }
 0xbb3   :  { %v2708_v39 = vcombine.low %v2652_v5, %v2668_v21  ;;  %v2709_v36 = vcombine.high %v2652_v5, %v2668_v21  ;;  %v2724_v20 = vcombine.low %v2659_v57, %v2675_v29  ;;  %v2725_v35 = vcombine.high %v2659_v57, %v2675_v29 }
 0xbb4   :  { %v2920_v40 = vrot.slane %v2912_v32, %v5922_v37  ;;  %v2927_v41 = vrot.slane %v2913_v33, %v5922_v37  ;;  %v2936_v43 = vrot.slane %v2928_v34, %v5922_v37  ;;  %v2943_v44 = vrot.slane %v2929_v38, %v5922_v37 }
 0xbb5   :  { %v2716_v45 = vrot.slane %v2708_v39, %v5922_v37  ;;  %v2723_v51 = vrot.slane %v2709_v36, %v5922_v37  ;;  %v2732_v52 = vrot.slane %v2724_v20, %v5922_v37  ;;  %v2739_v55 = vrot.slane %v2725_v35, %v5922_v37 }
 0xbb6   :  { %v5111_v8 = vcombine.low %v2920_v40, %v2927_v41  ;;  %v5113_v9 = vcombine.high %v2920_v40, %v2927_v41  ;;  %v5115_v17 = vcombine.low %v2936_v43, %v2943_v44  ;;  %v5117_v56 = vcombine.high %v2936_v43, %v2943_v44 }
 0xbb7   :  { %v5103_v59 = vcombine.low %v2716_v45, %v2723_v51  ;;  %v5105_v13 = vcombine.high %v2716_v45, %v2723_v51  ;;  %v5107_v60 = vcombine.low %v2732_v52, %v2739_v55  ;;  %v5109_v58 = vcombine.high %v2732_v52, %v2739_v55 }
 0xbb8   :  { %v6486_v62 = vrot.slane %v5111_v8, %v5920_v30  ;;  %v6489_v2 = vrot.slane %v5113_v9, %v5920_v30  ;;  %v6492_v46 = vrot.slane %v5115_v17, %v5920_v30  ;;  %v6495_v42 = vrot.slane %v5117_v56, %v5920_v30 }
 0xbb9   :  { %v6498_v48 = vrot.slane %v5103_v59, %v5920_v30  ;;  %v6501_v5 = vrot.slane %v5105_v13, %v5920_v30  ;;  %v6504_v57 = vrot.slane %v5107_v60, %v5920_v30  ;;  %v6507_v6 = vrot.slane %v5109_v58, %v5920_v30 }
 0xbba   :  { %v3252_v11 = vcombine.low %v6486_v62, %v6489_v2  ;;  %v3284_v12 = vcombine.low %v6492_v46, %v6495_v42  ;;  %v3132_v16 = vcombine.low %v6434_v49, %v6437_v50  ;;  %v3164_v22 = vcombine.low %v6442_v53, %v6445_v54 }
 0xbbb   :  { %v3116_v14 = vcombine.low %v6498_v48, %v6501_v5  ;;  %v3148_v15 = vcombine.low %v6504_v57, %v6507_v6  ;;  %v3268_v23 = vcombine.low %v6466_v19, %v6469_v31  ;;  %v3300_v24 = vcombine.low %v6472_v0, %v6475_v27 }
 0xbbc   :  { %v3260_v26 = vrot.slane %v3252_v11, %v5922_v37  ;;  %v3292_v3 = vrot.slane %v3284_v12, %v5922_v37  ;;  %v3140_v18 = vrot.slane %v3132_v16, %v5922_v37  ;;  %v3172_v28 = vrot.slane %v3164_v22, %v5922_v37 }
 0xbbd   :  { %v3124_v7 = vrot.slane %v3116_v14, %v5922_v37  ;;  %v3156_v25 = vrot.slane %v3148_v15, %v5922_v37  ;;  %v3276_v47 = vrot.slane %v3268_v23, %v5922_v37  ;;  %v3308_v21 = vrot.slane %v3300_v24, %v5922_v37 }
 0xbbe   :  { %v3184_v29 = vcombine.low %v3140_v18, %v3172_v28  ;;  %v3316_v39 = vcombine.low %v3260_v26, %v3292_v3  ;;  %v3185_v36 = vcombine.high %v3140_v18, %v3172_v28  ;;  %v3133_v35 = vcombine.high %v6434_v49, %v6437_v50 }
 0xbbf   :  { %v3320_v32 = vcombine.low %v3276_v47, %v3308_v21  ;;  %v3180_v38 = vcombine.low %v3124_v7, %v3156_v25  ;;  %v3321_v20 = vcombine.high %v3276_v47, %v3308_v21  ;;  %v3165_v40 = vcombine.high %v6442_v53, %v6445_v54 }
 0xbc0   :  { %v3468_v33 = vpack.c.bf16 %v3184_v29, %v3184_v29  ;;  %v3269_v44 = vcombine.high %v6466_v19, %v6469_v31  ;;  %v3301_v45 = vcombine.high %v6472_v0, %v6475_v27  ;;  %v3461_v50 = vpack.c.bf16 %v3316_v39, %v3316_v39 }
 0xbc1   :  { %v3469_v34 = vpack.c.bf16 %v3320_v32, %v3320_v32  ;;  %v3460_v49 = vpack.c.bf16 %v3180_v38, %v3180_v38  ;;  %v3470_v51 = vpack.c.bf16 %v3185_v36, %v3185_v36  ;;  %v3471_v53 = vpack.c.bf16 %v3321_v20, %v3321_v20 }
 0xbc2   :  { %v3488_v41 = vsel %vm1052_vm2, %v3468_v33, 0  ;;  %v3147_v54 = vrot.slane %v3133_v35, %v5922_v37  ;;  %v3179_v52 = vrot.slane %v3165_v40, %v5922_v37  ;;  %v3283_v55 = vrot.slane %v3269_v44, %v5922_v37 }
 0xbc3   :  { %v3534_v43 = vsel %vm1052_vm2, %v3469_v34, 0  ;;  %5433 = vmatpush3.bf16.xpose.msra.mxu0 %v3488_v41  ;;  %v3315_v19 = vrot.slane %v3301_v45, %v5922_v37  ;;  %v3580_v31 = vsel %vm1052_vm2, %v3470_v51, 0  ;;  %v3626_v0 = vsel %vm1052_vm2, %v3471_v53, 0 }
 0xbc4   :  { %5439 = vmatpush3.bf16.xpose.msra.mxu1 %v3534_v43  ;;  %5444 = vmatprep.subr.bf16.mxu0 %v5740_v1  ;;  %v3186_v27 = vcombine.low %v3147_v54, %v3179_v52  ;;  %v3253_v9 = vcombine.high %v6486_v62, %v6489_v2  ;;  %v3181_v17 = vcombine.high %v3124_v7, %v3156_v25 }
 0xbc5   :  { %5450 = vmatprep.subr.bf16.mxu1 %v5740_v1  ;;  %v3322_v8 = vcombine.low %v3283_v55, %v3315_v19  ;;  %v3317_v56 = vcombine.high %v3260_v26, %v3292_v3  ;;  %v3285_v59 = vcombine.high %v6492_v46, %v6495_v42  ;;  %v3117_v13 = vcombine.high %v6498_v48, %v6501_v5 }
 0xbc6   :  { %v3149_v60 = vcombine.high %v6504_v57, %v6507_v6  ;;  %v3472_v58 = vpack.c.bf16 %v3186_v27, %v3186_v27  ;;  %v3462_v2 = vpack.c.bf16 %v3181_v17, %v3181_v17  ;;  %v3267_v5 = vrot.slane %v3253_v9, %v5922_v37 }
 0xbc7   :  { %v3473_v62 = vpack.c.bf16 %v3322_v8, %v3322_v8  ;;  %v3463_v46 = vpack.c.bf16 %v3317_v56, %v3317_v56  ;;  %v3131_v42 = vrot.slane %v3117_v13, %v5922_v37  ;;  %v3299_v57 = vrot.slane %v3285_v59, %v5922_v37 }
 0xbc8   :  { %v3163_v48 = vrot.slane %v3149_v60, %v5922_v37  ;;  %v3672_v6 = vsel %vm1052_vm2, %v3472_v58, 0  ;;  %v3187_v12 = vcombine.high %v3147_v54, %v3179_v52  ;;  %v3323_v14 = vcombine.high %v3283_v55, %v3315_v19 }
 0xbc9   :  { %v3718_v11 = vsel %vm1052_vm2, %v3473_v62, 0  ;;  %v3318_v16 = vcombine.low %v3267_v5, %v3299_v57  ;;  %v3319_v18 = vcombine.high %v3267_v5, %v3299_v57  ;;  %v6615_v57 = vpop.permute.xlu0 %2620 }
 0xbca   :  { %5435 = vmatmul.mubr.msk.bf16.vlgmr.msra.gmra.mrb[44].mxu0 %vm1052_vm2, %v3460_v49  ;;  %v3182_v15 = vcombine.low %v3131_v42, %v3163_v48  ;;  %v3474_v22 = vpack.c.bf16 %v3187_v12, %v3187_v12  ;;  %v3475_v23 = vpack.c.bf16 %v3323_v14, %v3323_v14  ;;  %v3183_v3 = vcombine.high %v3131_v42, %v3163_v48 }
 0xbcb   :  { %5441 = vmatmul.mubr.msk.bf16.vlgmr.msra.gmra.mrb[40].mxu1 %vm1052_vm2, %v3461_v50  ;;  %5445 = vmatpush3.bf16.xpose.msra.mxu0 %v3580_v31  ;;  %v3465_v7 = vpack.c.bf16 %v3318_v16, %v3318_v16  ;;  %v3467_v47 = vpack.c.bf16 %v3319_v18, %v3319_v18 }
 0xbcc   :  { %5451 = vmatpush3.bf16.xpose.msra.mxu1 %v3626_v0  ;;  %5446 = vmatprep.mubr.msk.bf16.mxu0 %vm5741_vm0, %v5740_v1  ;;  %v3464_v24 = vpack.c.bf16 %v3182_v15, %v3182_v15  ;;  %v3764_v25 = vsel %vm1052_vm2, %v3474_v22, 0  ;;  %v3810_v26 = vsel %vm1052_vm2, %v3475_v23, 0  ;;  %v3466_v28 = vpack.c.bf16 %v3183_v3, %v3183_v3 }
 0xbcd   :  { %5452 = vmatprep.mubr.msk.bf16.mxu1 %vm5741_vm0, %v5740_v1  ;;  %5456 = vmatprep.subr.bf16.mxu0 %v5740_v1 }
 0xbce   :  { %5462 = vmatprep.subr.bf16.mxu1 %v5740_v1 }
 0xbd2   :  { %5447 = vmatmul.mubr.msk.bf16.vlgmr.msra.gmra.mrb[48].mxu0 %vm1052_vm2, %v3462_v2 }
 0xbd3   :  { %5453 = vmatmul.mubr.msk.bf16.vlgmr.msra.gmra.mrb[44].mxu1 %vm1052_vm2, %v3463_v46  ;;  %5457 = vmatpush3.bf16.xpose.msra.mxu0 %v3672_v6  ;;  %v6617_v6 = vpop.permute.xlu1 %2626 }
 0xbd4   :  { %5463 = vmatpush3.bf16.xpose.msra.mxu1 %v3718_v11  ;;  %5458 = vmatprep.mubr.msk.bf16.mxu0 %vm5741_vm0, %v5740_v1  ;;  %v6619_v11 = vpop.permute.xlu0 %2628 }
 0xbd5   :  { %5464 = vmatprep.mubr.msk.bf16.mxu1 %vm5741_vm0, %v5740_v1  ;;  %5468 = vmatprep.subr.bf16.mxu0 %v5740_v1 }
 0xbd6   :  { %5474 = vmatprep.subr.bf16.mxu1 %v5740_v1 }
 0xbd7   :  { %v6621_v12 = vpop.permute.xlu1 %2622 }
 0xbda   :  { %5459 = vmatmul.mubr.msk.bf16.vlgmr.msra.gmra.mrb[52].mxu0 %vm1052_vm2, %v3464_v24 }
 0xbdb   :  { %5465 = vmatmul.mubr.msk.bf16.vlgmr.msra.gmra.mrb[48].mxu1 %vm1052_vm2, %v3465_v7  ;;  %5469 = vmatpush3.bf16.xpose.msra.mxu0 %v3764_v25 }
 0xbdc   :  { %5475 = vmatpush3.bf16.xpose.msra.mxu1 %v3810_v26  ;;  %5470 = vmatprep.mubr.msk.bf16.mxu0 %vm5741_vm0, %v5740_v1 }
 0xbdd   :  { %5476 = vmatprep.mubr.msk.bf16.mxu1 %vm5741_vm0, %v5740_v1  ;;  %5480 = vmatprep.subr.bf16.mxu0 %v5740_v1 }
 0xbde   :  { %5486 = vmatprep.subr.bf16.mxu1 %v5740_v1 }
 0xbe2   :  { %5471 = vmatmul.mubr.msk.bf16.vlgmr.msra.gmra.mrb[56].mxu0 %vm1052_vm2, %v3466_v28 }
 0xbe3   :  { %5477 = vmatmul.mubr.msk.bf16.vlgmr.msra.gmra.mrb[52].mxu1 %vm1052_vm2, %v3467_v47  ;;  %5482 = vmatprep.mubr.msk.bf16.mxu0 %vm5741_vm0, %v5740_v1 }
 0xbe4   :  { %5488 = vmatprep.mubr.msk.bf16.mxu1 %vm5741_vm0, %v5740_v1 }
 0xc9d   :  { %v3524_v21 = vpop.f32.mrb[44].mxu0 }
 0xc9e   :  { %v3570_v29 = vpop.f32.mrb[40].mxu1  ;;  %v5436_v32 = vpop.f32.mrb[45].mxu0  ;;  %v3852_v38 = vsel %vm1052_vm2, %v3524_v21, -inf }
 0xc9f   :  { %v5442_v33 = vpop.f32.mrb[41].mxu1  ;;  %v3855_v34 = vsel %vm1052_vm2, %v3570_v29, -inf  ;;  %3853 = vmax.xlane.f32.xlu1 %v3852_v38  ;;  %v3527_v36 = vpop.f32.mrb[46].mxu0 }
 0xca0   :  { %3856 = vmax.xlane.f32.xlu0 %v3855_v34  ;;  %v3573_v39 = vpop.f32.mrb[42].mxu1  ;;  %v5437_v20 = vpop.f32.mrb[47].mxu0 }
 0xca1   :  { %v5443_v35 = vpop.f32.mrb[43].mxu1 }
 0xca5   :  { %v6599_v40 = vpop.f32.mrb[48].mxu0 }
 0xca6   :  { %v6601_v41 = vpop.f32.mrb[44].mxu1  ;;  %v5448_v43 = vpop.f32.mrb[49].mxu0  ;;  %v3858_v49 = vsel %vm1052_vm2, %v6599_v40, -inf }
 0xca7   :  { %v5454_v44 = vpop.f32.mrb[45].mxu1  ;;  %v3861_v45 = vsel %vm1052_vm2, %v6601_v41, -inf  ;;  %3859 = vmax.xlane.f32.xlu0 %v3858_v49  ;;  %v3619_v51 = vpop.f32.mrb[50].mxu0 }
 0xca8   :  { %v3665_v50 = vpop.f32.mrb[46].mxu1  ;;  %3862 = vmax.xlane.f32.xlu1 %v3861_v45  ;;  %v5449_v53 = vpop.f32.mrb[51].mxu0 }
 0xca9   :  { %v5455_v54 = vpop.f32.mrb[47].mxu1 }
 0xcad   :  { %v3708_v52 = vpop.f32.mrb[52].mxu0 }
 0xcae   :  { %v3754_v55 = vpop.f32.mrb[48].mxu1  ;;  %v5460_v19 = vpop.f32.mrb[53].mxu0  ;;  %v3864_v27 = vsel %vm1052_vm2, %v3708_v52, -inf }
 0xcaf   :  { %v5466_v31 = vpop.f32.mrb[49].mxu1  ;;  %v3867_v0 = vsel %vm1052_vm2, %v3754_v55, -inf  ;;  %3865 = vmax.xlane.f32.xlu0 %v3864_v27  ;;  %v3711_v9 = vpop.f32.mrb[54].mxu0 }
 0xcb0   :  { %v3757_v8 = vpop.f32.mrb[50].mxu1  ;;  %3868 = vmax.xlane.f32.xlu1 %v3867_v0  ;;  %v5461_v17 = vpop.f32.mrb[55].mxu0 }
 0xcb1   :  { %v5467_v56 = vpop.f32.mrb[51].mxu1 }
 0xcb5   :  { %v3800_v59 = vpop.f32.mrb[56].mxu0 }
 0xcb6   :  { %v3846_v13 = vpop.f32.mrb[52].mxu1  ;;  %v5472_v60 = vpop.f32.mrb[57].mxu0  ;;  %v3870_v2 = vsel %vm1052_vm2, %v3800_v59, -inf }
 0xcb7   :  { %v5478_v58 = vpop.f32.mrb[53].mxu1  ;;  %v3873_v62 = vsel %vm1052_vm2, %v3846_v13, -inf  ;;  %3871 = vmax.xlane.f32.xlu0 %v3870_v2  ;;  %v3803_v42 = vpop.f32.mrb[58].mxu0 }
 0xcb8   :  { %v3849_v46 = vpop.f32.mrb[54].mxu1  ;;  %3874 = vmax.xlane.f32.xlu1 %v3873_v62  ;;  %v5473_v48 = vpop.f32.mrb[59].mxu0 }
 0xcb9   :  { %v5479_v5 = vpop.f32.mrb[55].mxu1 }
 0xcc9   :  { %2632 = vrot.lane.b32.xlu1 %v6385_v4, %s6913_s18 }
 0xccd   :  { %2634 = vrot.lane.b32.xlu0 %v6391_v61, %s6913_s18 }
 0xd2c   :  { %v3854_v15 = vpop.xlane.xlu1 %3853 }
 0xd2d   :  { %v3857_v14 = vpop.xlane.xlu0 %3856  ;;  %v3876_v22 = vsub.f32 %v3524_v21, %v3854_v15 }
 0xd2e   :  { %v3877_v16 = vsub.f32 %v3570_v29, %v3857_v14 }
 0xd2f   :  { %v3884_v24 = vmul.f32 1.442695, %v3876_v22 }
 0xd30   :  { %v3886_v23 = vmul.f32 1.442695, %v3877_v16 }
 0xd32   :  { %5676 = vpow2.f32 %v3886_v23 }
 0xd33   :  { %5678 = vpow2.f32 %v3884_v24 }
 0xd34   :  { %v3860_v28 = vpop.xlane.xlu0 %3859 }
 0xd35   :  { %v3863_v18 = vpop.xlane.xlu1 %3862  ;;  %v3878_v47 = vsub.f32 %v6599_v40, %v3860_v28 }
 0xd36   :  { %v3879_v21 = vsub.f32 %v6601_v41, %v3863_v18 }
 0xd37   :  { %v3888_v33 = vmul.f32 1.442695, %v3878_v47 }
 0xd38   :  { %v3890_v38 = vmul.f32 1.442695, %v3879_v21 }
 0xd39   :  { %5680 = vpow2.f32 %v3888_v33 }
 0xd3a   :  { %5682 = vpow2.f32 %v3890_v38 }
 0xd3c   :  { %v6623_v7 = vpop.eup %5676  ;;  %v3866_v32 = vpop.xlane.xlu0 %3865 }
 0xd3d   :  { %v6625_v25 = vpop.eup %5678  ;;  %v3903_v26 = vsel %vm1052_vm2, %v6623_v7, 0.0  ;;  %v3869_v29 = vpop.xlane.xlu1 %3868  ;;  %v3880_v39 = vsub.f32 %v3708_v52, %v3866_v32 }
 0xd3e   :  { %3904 = vadd.xlane.f32.xlu1 %v3903_v26  ;;  %v3900_v3 = vsel %vm1052_vm2, %v6625_v25, 0.0  ;;  %v3881_v34 = vsub.f32 %v3754_v55, %v3869_v29 }
 0xd3f   :  { %3901 = vadd.xlane.f32.xlu0 %v3900_v3  ;;  %v3892_v43 = vmul.f32 1.442695, %v3880_v39 }
 0xd40   :  { %v3894_v35 = vmul.f32 1.442695, %v3881_v34 }
 0xd42   :  { %5684 = vpow2.f32 %v3894_v35 }
 0xd43   :  { %5686 = vpow2.f32 %v3892_v43  ;;  %v6637_v41 = vpop.eup %5680 }
 0xd44   :  { %v3872_v20 = vpop.xlane.xlu0 %3871  ;;  %v6639_v45 = vpop.eup %5682  ;;  %v3906_v49 = vsel %vm1052_vm2, %v6637_v41, 0.0 }
 0xd45   :  { %v3875_v36 = vpop.xlane.xlu1 %3874  ;;  %v3909_v51 = vsel %vm1052_vm2, %v6639_v45, 0.0 }
 0xd48   :  { %v2635_v8 = vpop.permute.xlu0 %2634 }
 0xd49   :  { %v2633_v27 = vpop.permute.xlu1 %2632  ;;  %v2985_v60 = vcombine.high %v6621_v12, %v2635_v8 }
 0xd4a   :  { %v2780_v56 = vcombine.low %v6615_v57, %v2633_v27 }
 0xd4b   :  { %v2999_v16 = vrot.slane %v2985_v60, %v5920_v30 }
 0xd4c   :  { %v6643_v50 = vpop.eup %5684  ;;  %v2788_v42 = vrot.slane %v2780_v56, %v5920_v30 }
 0xd4d   :  { %v6647_v53 = vpop.eup %5686  ;;  %v3915_v54 = vsel %vm1052_vm2, %v6643_v50, 0.0 }
 0xd4e   :  { %v3912_v55 = vsel %vm1052_vm2, %v6647_v53, 0.0 }
 0xd4f   :  { %2638 = vrot.lane.b32.xlu1 %v6385_v4, %s6914_s19  ;;  %v3883_v4 = vsub.f32 %v3846_v13, %v3875_v36  ;;  %v2984_v13 = vcombine.low %v6621_v12, %v2635_v8 }
 0xd51   :  { %v3898_v44 = vmul.f32 1.442695, %v3883_v4 }
 0xd53   :  { %5688 = vpow2.f32 %v3898_v44 }
 0xd55   :  { %2640 = vrot.lane.b32.xlu0 %v6391_v61, %s6914_s19  ;;  %v3882_v61 = vsub.f32 %v3800_v59, %v3872_v20  ;;  %v2781_v59 = vcombine.high %v6615_v57, %v2633_v27  ;;  %v2992_v57 = vrot.slane %v2984_v13, %v5920_v30 }
 0xd57   :  { %v3896_v40 = vmul.f32 1.442695, %v3882_v61  ;;  %v2795_v14 = vrot.slane %v2781_v59, %v5920_v30 }
 0xd59   :  { %5690 = vpow2.f32 %v3896_v40 }
 0xd5d   :  { %v6651_v52 = vpop.eup %5688 }
 0xd5e   :  { %v3921_v31 = vsel %vm1052_vm2, %v6651_v52, 0.0 }
 0xd63   :  { %v6655_v19 = vpop.eup %5690 }
 0xd64   :  { %v3918_v0 = vsel %vm1052_vm2, %v6655_v19, 0.0 }
 0xd73   :  { %3907 = vadd.xlane.f32.xlu1 %v3906_v49 }
 0xd74   :  { %3910 = vadd.xlane.f32.xlu0 %v3909_v51 }
 0xd77   :  { %3916 = vadd.xlane.f32.xlu1 %v3915_v54 }
 0xd78   :  { %3913 = vadd.xlane.f32.xlu0 %v3912_v55 }
 0xd7b   :  { %3922 = vadd.xlane.f32.xlu1 %v3921_v31 }
 0xd7c   :  { %3919 = vadd.xlane.f32.xlu0 %v3918_v0 }
 0xdcb   :  { %v3905_v9 = vpop.xlane.xlu1 %3904 }
 0xdcc   :  { %v3902_v17 = vpop.xlane.xlu0 %3901 }
 0xdcd   :  { %5692 = vrcp.f32 %v3902_v17 }
 0xdce   :  { %5694 = vrcp.f32 %v3905_v9 }
 0xdcf   :  { %v2639_v58 = vpop.permute.xlu1 %2638 }
 0xdd0   :  { %v2796_v62 = vcombine.low %v6617_v6, %v2639_v58  ;;  %v2797_v2 = vcombine.high %v6617_v6, %v2639_v58  ;;  %v2641_v46 = vpop.permute.xlu0 %2640 }
 0xdd1   :  { %v3000_v48 = vcombine.low %v6619_v11, %v2641_v46  ;;  %v3001_v5 = vcombine.high %v6619_v11, %v2641_v46 }
 0xdd2   :  { %v2804_v15 = vrot.slane %v2796_v62, %v5920_v30  ;;  %v2811_v12 = vrot.slane %v2797_v2, %v5920_v30 }
 0xdd3   :  { %v3008_v6 = vrot.slane %v3000_v48, %v5920_v30  ;;  %v3015_v22 = vrot.slane %v3001_v5, %v5920_v30 }
 0xdd4   :  { %v2812_v23 = vcombine.low %v2788_v42, %v2804_v15  ;;  %v2813_v24 = vcombine.high %v2788_v42, %v2804_v15  ;;  %v2828_v26 = vcombine.low %v2795_v14, %v2811_v12  ;;  %v2829_v3 = vcombine.high %v2795_v14, %v2811_v12 }
 0xdd5   :  { %v3016_v11 = vcombine.low %v2992_v57, %v3008_v6  ;;  %v3017_v18 = vcombine.high %v2992_v57, %v3008_v6  ;;  %v3032_v28 = vcombine.low %v2999_v16, %v3015_v22  ;;  %v3033_v47 = vcombine.high %v2999_v16, %v3015_v22 }
 0xdd6   :  { %v2820_v21 = vrot.slane %v2812_v23, %v5922_v37  ;;  %v2827_v29 = vrot.slane %v2813_v24, %v5922_v37  ;;  %v2836_v32 = vrot.slane %v2828_v26, %v5922_v37  ;;  %v2843_v33 = vrot.slane %v2829_v3, %v5922_v37 }
 0xdd7   :  { %v3024_v34 = vrot.slane %v3016_v11, %v5922_v37  ;;  %v3031_v38 = vrot.slane %v3017_v18, %v5922_v37  ;;  %v3040_v39 = vrot.slane %v3032_v28, %v5922_v37  ;;  %v3047_v43 = vrot.slane %v3033_v47, %v5922_v37  ;;  %v5693_v9 = vpop.eup %5692 }
 0xdd8   :  { %v3324_v36 = vcombine.low %v2820_v21, %v2827_v29  ;;  %v5119_v20 = vcombine.high %v2820_v21, %v2827_v29  ;;  %v3340_v35 = vcombine.low %v2836_v32, %v2843_v33  ;;  %v5120_v4 = vcombine.high %v2836_v32, %v2843_v33  ;;  %v5695_v48 = vpop.eup %5694 }
 0xdd9   :  { %v3392_v61 = vcombine.low %v3024_v34, %v3031_v38  ;;  %v5121_v44 = vcombine.high %v3024_v34, %v3031_v38  ;;  %v3408_v0 = vcombine.low %v3040_v39, %v3047_v43  ;;  %v5122_v27 = vcombine.high %v3040_v39, %v3047_v43 }
 0xdda   :  { %v3331_v40 = vrot.slane %v3324_v36, %v5920_v30  ;;  %v3339_v49 = vrot.slane %v5119_v20, %v5920_v30  ;;  %v3347_v51 = vrot.slane %v3340_v35, %v5920_v30  ;;  %v3355_v54 = vrot.slane %v5120_v4, %v5920_v30 }
 0xddb   :  { %v3399_v55 = vrot.slane %v3392_v61, %v5920_v30  ;;  %v3407_v31 = vrot.slane %v5121_v44, %v5920_v30  ;;  %v3415_v17 = vrot.slane %v3408_v0, %v5920_v30  ;;  %v3423_v13 = vrot.slane %v5122_v27, %v5920_v30 }
 0xddc   :  { %v3356_v8 = vcombine.low %v3331_v40, %v3339_v49  ;;  %v3372_v56 = vcombine.low %v3347_v51, %v3355_v54  ;;  %v3932_v14 = vmul.f32 %v5693_v9, %v6625_v25  ;;  %v3933_v22 = vmul.f32 %v5695_v48, %v6623_v7 }
 0xddd   :  { %v3424_v59 = vcombine.low %v3399_v55, %v3407_v31  ;;  %v3440_v2 = vcombine.low %v3415_v17, %v3423_v13  ;;  %v3357_v28 = vcombine.high %v3331_v40, %v3339_v49  ;;  %v3373_v47 = vcombine.high %v3347_v51, %v3355_v54 }
 0xdde   :  { %v3364_v60 = vrot.slane %v3356_v8, %v5922_v37  ;;  %v3380_v58 = vrot.slane %v3372_v56, %v5922_v37  ;;  %v3940_v24 = vpack.c.bf16 %v3932_v14, %v3932_v14  ;;  %v3941_v11 = vpack.c.bf16 %v3933_v22, %v3933_v22 }
 0xddf   :  { %v3432_v62 = vrot.slane %v3424_v59, %v5922_v37  ;;  %v3448_v5 = vrot.slane %v3440_v2, %v5922_v37  ;;  %v3425_v29 = vcombine.high %v3399_v55, %v3407_v31  ;;  %v3441_v32 = vcombine.high %v3415_v17, %v3423_v13 }
 0xde0   :  { %v3388_v46 = vcombine.low %v3364_v60, %v3380_v58  ;;  %v3389_v42 = vcombine.high %v3364_v60, %v3380_v58  ;;  %v3371_v34 = vrot.slane %v3357_v28, %v5922_v37  ;;  %v3387_v38 = vrot.slane %v3373_v47, %v5922_v37 }
 0xde1   :  { %v3456_v15 = vcombine.low %v3432_v62, %v3448_v5  ;;  %v3457_v12 = vcombine.high %v3432_v62, %v3448_v5  ;;  %v3439_v36 = vrot.slane %v3425_v29, %v5922_v37  ;;  %v3455_v20 = vrot.slane %v3441_v32, %v5922_v37 }
 0xde2   :  { %v3476_v57 = vpack.c.bf16 %v3388_v46, %v3388_v46  ;;  %v3478_v6 = vpack.c.bf16 %v3389_v42, %v3389_v42  ;;  %v3390_v35 = vcombine.low %v3371_v34, %v3387_v38  ;;  %v3391_v17 = vcombine.high %v3371_v34, %v3387_v38 }
 0xde3   :  { %v3477_v23 = vpack.c.bf16 %v3456_v15, %v3456_v15  ;;  %v3479_v3 = vpack.c.bf16 %v3457_v12, %v3457_v12  ;;  %v3458_v4 = vcombine.low %v3439_v36, %v3455_v20  ;;  %v3459_v56 = vcombine.high %v3439_v36, %v3455_v20 }
 0xde4   :  { %v3952_v16 = vsel %vm1520_vm3, %v3476_v57, 0  ;;  %v4044_v25 = vsel %vm1520_vm3, %v3478_v6, 0  ;;  %v3480_v51 = vpack.c.bf16 %v3390_v35, %v3390_v35  ;;  %v3482_v13 = vpack.c.bf16 %v3391_v17, %v3391_v17 }
 0xde5   :  { %5481 = vmatpush3.bf16.msra.mxu0 %v3952_v16  ;;  %v3998_v26 = vsel %vm1520_vm3, %v3477_v23, 0  ;;  %v4090_v7 = vsel %vm1520_vm3, %v3479_v3, 0  ;;  %v3481_v55 = vpack.c.bf16 %v3458_v4, %v3458_v4  ;;  %v3483_v60 = vpack.c.bf16 %v3459_v56, %v3459_v56 }
 0xde6   :  { %5492 = vmatprep.subr.bf16.mxu0 %v5740_v1  ;;  %5487 = vmatpush3.bf16.msra.mxu1 %v3998_v26  ;;  %v4136_v9 = vsel %vm1520_vm3, %v3480_v51, 0 }
 0xde7   :  { %5498 = vmatprep.subr.bf16.mxu1 %v5740_v1 }
 0xde8   :  { %5483 = vmatmul.mubr.msk.bf16.vlgmr.msra.gmra.mrb[60].mxu0 %vm1052_vm2, %v3940_v24 }
 0xde9   :  { %5493 = vmatpush3.bf16.msra.mxu0 %v4044_v25  ;;  %5494 = vmatprep.mubr.msk.bf16.mxu0 %vm5741_vm0, %v5740_v1 }
 0xdea   :  { %5504 = vmatprep.subr.bf16.mxu0 %v5740_v1  ;;  %5489 = vmatmul.mubr.msk.bf16.vlgmr.msra.gmra.mrb[56].mxu1 %vm1052_vm2, %v3941_v11 }
 0xdeb   :  { %5499 = vmatpush3.bf16.msra.mxu1 %v4090_v7  ;;  %5500 = vmatprep.mubr.msk.bf16.mxu1 %vm5741_vm0, %v5740_v1 }
 0xdec   :  { %5510 = vmatprep.subr.bf16.mxu1 %v5740_v1 }
 0xe00   :  { %v3908_v18 = vpop.xlane.xlu1 %3907 }
 0xe01   :  { %5696 = vrcp.f32 %v3908_v18  ;;  %v3911_v21 = vpop.xlane.xlu0 %3910 }
 0xe02   :  { %5698 = vrcp.f32 %v3911_v21 }
 0xe04   :  { %v3917_v33 = vpop.xlane.xlu1 %3916 }
 0xe05   :  { %5700 = vrcp.f32 %v3917_v33  ;;  %v3914_v39 = vpop.xlane.xlu0 %3913 }
 0xe06   :  { %5702 = vrcp.f32 %v3914_v39 }
 0xe08   :  { %v3923_v44 = vpop.xlane.xlu1 %3922 }
 0xe09   :  { %v3920_v43 = vpop.xlane.xlu0 %3919 }
 0xe0a   :  { %5704 = vrcp.f32 %v3920_v43 }
 0xe0b   :  { %v5697_v61 = vpop.eup %5696  ;;  %5706 = vrcp.f32 %v3923_v44 }
 0xe0c   :  { %v5699_v40 = vpop.eup %5698  ;;  %v3934_v49 = vmul.f32 %v5697_v61, %v6637_v41  ;;  %v4182_v41 = vsel %vm1520_vm3, %v3481_v55, 0 }
 0xe0d   :  { %v3935_v54 = vmul.f32 %v5699_v40, %v6639_v45 }
 0xe0e   :  { %v3942_v31 = vpack.c.bf16 %v3934_v49, %v3934_v49 }
 0xe0f   :  { %v5701_v0 = vpop.eup %5700  ;;  %v3943_v27 = vpack.c.bf16 %v3935_v54, %v3935_v54 }
 0xe10   :  { %v5703_v8 = vpop.eup %5702  ;;  %5495 = vmatmul.mubr.msk.bf16.vlgmr.msra.gmra.mrb[64].mxu0 %vm1052_vm2, %v3942_v31  ;;  %v3937_v59 = vmul.f32 %v5701_v0, %v6643_v50  ;;  %v4274_v50 = vsel %vm1520_vm3, %v3483_v60, 0 }
 0xe11   :  { %5501 = vmatmul.mubr.msk.bf16.vlgmr.msra.gmra.mrb[60].mxu1 %vm1052_vm2, %v3943_v27  ;;  %5505 = vmatpush3.bf16.msra.mxu0 %v4136_v9  ;;  %v3936_v45 = vmul.f32 %v5703_v8, %v6647_v53  ;;  %v4228_v53 = vsel %vm1520_vm3, %v3482_v13, 0 }
 0xe12   :  { %5511 = vmatpush3.bf16.msra.mxu1 %v4182_v41  ;;  %5506 = vmatprep.mubr.msk.bf16.mxu0 %vm5741_vm0, %v5740_v1  ;;  %v3945_v2 = vpack.c.bf16 %v3937_v59, %v3937_v59 }
 0xe13   :  { %5512 = vmatprep.mubr.msk.bf16.mxu1 %vm5741_vm0, %v5740_v1  ;;  %5516 = vmatprep.subr.bf16.mxu0 %v5740_v1  ;;  %v3944_v58 = vpack.c.bf16 %v3936_v45, %v3936_v45 }
 0xe14   :  { %5522 = vmatprep.subr.bf16.mxu1 %v5740_v1  ;;  %v5705_v62 = vpop.eup %5704 }
 0xe15   :  { %v5707_v46 = vpop.eup %5706  ;;  %v3938_v42 = vmul.f32 %v5705_v62, %v6655_v19 }
 0xe16   :  { %v3939_v48 = vmul.f32 %v5707_v46, %v6651_v52 }
 0xe17   :  { %v3946_v5 = vpack.c.bf16 %v3938_v42, %v3938_v42 }
 0xe18   :  { %5507 = vmatmul.mubr.msk.bf16.vlgmr.msra.gmra.mrb[68].mxu0 %vm1052_vm2, %v3944_v58  ;;  %v3947_v14 = vpack.c.bf16 %v3939_v48, %v3939_v48 }
 0xe19   :  { %5513 = vmatmul.mubr.msk.bf16.vlgmr.msra.gmra.mrb[64].mxu1 %vm1052_vm2, %v3945_v2  ;;  %5517 = vmatpush3.bf16.msra.mxu0 %v4228_v53 }
 0xe1a   :  { %5523 = vmatpush3.bf16.msra.mxu1 %v4274_v50  ;;  %5518 = vmatprep.mubr.msk.bf16.mxu0 %vm5741_vm0, %v5740_v1 }
 0xe1b   :  { %5524 = vmatprep.mubr.msk.bf16.mxu1 %vm5741_vm0, %v5740_v1  ;;  %5528 = vmatprep.subr.bf16.mxu0 %v5740_v1 }
 0xe1c   :  { %5536 = vmatprep.subr.bf16.mxu1 %v5740_v1 }
 0xe20   :  { %5519 = vmatmul.mubr.msk.bf16.vlgmr.msra.gmra.mrb[72].mxu0 %vm1052_vm2, %v3946_v5 }
 0xe21   :  { %5525 = vmatmul.mubr.msk.bf16.vlgmr.msra.gmra.mrb[68].mxu1 %vm1052_vm2, %v3947_v14  ;;  %5532 = vmatprep.mubr.msk.bf16.mxu0 %vm5741_vm0, %v5740_v1 }
 0xe22   :  { %5540 = vmatprep.mubr.msk.bf16.mxu1 %vm5741_vm0, %v5740_v1 }
 0xebb   :  { %v3988_v52 = vpop.f32.mrb[60].mxu0 }
 0xebc   :  { %v5484_v19 = vpop.f32.mrb[61].mxu0 }
 0xebd   :  { %v3991_v57 = vpop.f32.mrb[62].mxu0  ;;  %v4034_v15 = vpop.f32.mrb[56].mxu1 }
 0xebe   :  { %v5485_v12 = vpop.f32.mrb[63].mxu0  ;;  %v5490_v16 = vpop.f32.mrb[57].mxu1 }
 0xebf   :  { %v4037_v6 = vpop.f32.mrb[58].mxu1 }
 0xec0   :  { %v5491_v22 = vpop.f32.mrb[59].mxu1 }
 0xee3   :  { %v4080_v23 = vpop.f32.mrb[64].mxu0 }
 0xee4   :  { %v4126_v24 = vpop.f32.mrb[60].mxu1  ;;  %v5496_v26 = vpop.f32.mrb[65].mxu0 }
 0xee5   :  { %v5502_v3 = vpop.f32.mrb[61].mxu1  ;;  %v4083_v25 = vpop.f32.mrb[66].mxu0 }
 0xee6   :  { %v4129_v11 = vpop.f32.mrb[62].mxu1  ;;  %v5497_v7 = vpop.f32.mrb[67].mxu0 }
 0xee7   :  { %v5503_v18 = vpop.f32.mrb[63].mxu1 }
 0xeeb   :  { %v4172_v28 = vpop.f32.mrb[68].mxu0 }
 0xeec   :  { %v4316_v47 = vcombine.low %v3988_v52, %v4172_v28  ;;  %v4317_v21 = vcombine.high %v3988_v52, %v4172_v28  ;;  %v4218_v29 = vpop.f32.mrb[64].mxu1  ;;  %v5508_v32 = vpop.f32.mrb[69].mxu0 }
 0xeed   :  { %v4384_v33 = vcombine.low %v4034_v15, %v4218_v29  ;;  %v4385_v34 = vcombine.high %v4034_v15, %v4218_v29  ;;  %v5514_v38 = vpop.f32.mrb[65].mxu1  ;;  %v4175_v39 = vpop.f32.mrb[70].mxu0 }
 0xeee   :  { %v4221_v36 = vpop.f32.mrb[66].mxu1  ;;  %v5509_v20 = vpop.f32.mrb[71].mxu0  ;;  %v4324_v31 = vrot.slane %v4316_v47, %v5920_v30  ;;  %v4331_v0 = vrot.slane %v4317_v21, %v5920_v30  ;;  %v5626_v47 = vld [vmem:[%s6888_s4 + $0x10] sm:$0xff]  }
 0xeef   :  { %v5515_v35 = vpop.f32.mrb[67].mxu1  ;;  %v4392_v41 = vrot.slane %v4384_v33, %v5920_v30  ;;  %v4399_v56 = vrot.slane %v4385_v34, %v5920_v30  ;;  %5529 = vmatpush3.bf16.msra.mxu0 %v5626_v47 }
 0xef0   :  { %5530 = vmatprep.subr.bf16.mxu0 %v5740_v1 }
 0xef3   :  { %v4264_v4 = vpop.f32.mrb[72].mxu0 }
 0xef4   :  { %v4332_v43 = vcombine.low %v4080_v23, %v4264_v4  ;;  %v4333_v61 = vcombine.high %v4080_v23, %v4264_v4  ;;  %v4310_v44 = vpop.f32.mrb[68].mxu1  ;;  %v5520_v40 = vpop.f32.mrb[73].mxu0 }
 0xef5   :  { %v4400_v49 = vcombine.low %v4126_v24, %v4310_v44  ;;  %v4401_v51 = vcombine.high %v4126_v24, %v4310_v44  ;;  %v5526_v54 = vpop.f32.mrb[69].mxu1  ;;  %v4267_v55 = vpop.f32.mrb[74].mxu0 }
 0xef6   :  { %v4340_v27 = vrot.slane %v4332_v43, %v5920_v30  ;;  %v4347_v8 = vrot.slane %v4333_v61, %v5920_v30  ;;  %v4313_v9 = vpop.f32.mrb[70].mxu1  ;;  %v5521_v17 = vpop.f32.mrb[75].mxu0 }
 0xef7   :  { %v4408_v45 = vrot.slane %v4400_v49, %v5920_v30  ;;  %v4415_v59 = vrot.slane %v4401_v51, %v5920_v30  ;;  %v5527_v13 = vpop.f32.mrb[71].mxu1 }
 0xef8   :  { %v4348_v60 = vcombine.low %v4324_v31, %v4340_v27  ;;  %v4349_v58 = vcombine.high %v4324_v31, %v4340_v27  ;;  %v4364_v62 = vcombine.low %v4331_v0, %v4347_v8  ;;  %v4365_v2 = vcombine.high %v4331_v0, %v4347_v8  ;;  %v5627_v31 = vld [vmem:[%s6888_s4 + $0x18] sm:$0xff]  }
 0xef9   :  { %v4416_v46 = vcombine.low %v4392_v41, %v4408_v45  ;;  %v4417_v53 = vcombine.high %v4392_v41, %v4408_v45  ;;  %v4432_v50 = vcombine.low %v4399_v56, %v4415_v59  ;;  %v4433_v42 = vcombine.high %v4399_v56, %v4415_v59  ;;  %5531 = vmatpush3.bf16.msra.mxu0 %v5627_v31 }
 0xefa   :  { %v4356_v48 = vrot.slane %v4348_v60, %v5922_v37  ;;  %v4363_v5 = vrot.slane %v4349_v58, %v5922_v37  ;;  %v4372_v14 = vrot.slane %v4364_v62, %v5922_v37  ;;  %v4379_v52 = vrot.slane %v4365_v2, %v5922_v37  ;;  %5544 = vmatprep.subr.bf16.mxu0 %v5740_v1 }
 0xefb   :  { %v4424_v19 = vrot.slane %v4416_v46, %v5922_v37  ;;  %v4431_v57 = vrot.slane %v4417_v53, %v5922_v37  ;;  %v4440_v15 = vrot.slane %v4432_v50, %v5922_v37  ;;  %v4447_v12 = vrot.slane %v4433_v42, %v5922_v37 }
 0xefc   :  { %v4452_v16 = vcombine.low %v4356_v48, %v4363_v5  ;;  %v5139_v6 = vcombine.high %v4356_v48, %v4363_v5  ;;  %v4468_v22 = vcombine.low %v4372_v14, %v4379_v52  ;;  %v5140_v23 = vcombine.high %v4372_v14, %v4379_v52 }
 0xefd   :  { %v4520_v24 = vcombine.low %v4424_v19, %v4431_v57  ;;  %v5141_v26 = vcombine.high %v4424_v19, %v4431_v57  ;;  %v4536_v3 = vcombine.low %v4440_v15, %v4447_v12  ;;  %v5142_v25 = vcombine.high %v4440_v15, %v4447_v12 }
 0xefe   :  { %v4459_v11 = vrot.slane %v4452_v16, %v5920_v30  ;;  %v4467_v7 = vrot.slane %v5139_v6, %v5920_v30  ;;  %v4475_v18 = vrot.slane %v4468_v22, %v5920_v30  ;;  %v4483_v28 = vrot.slane %v5140_v23, %v5920_v30  ;;  %v5148_v16 = vld [vmem:[%s6889_s5 + $0x1] ss:$0 sm:$0xff] }
 0xeff   :  { %v4527_v21 = vrot.slane %v4520_v24, %v5920_v30  ;;  %v4535_v29 = vrot.slane %v5141_v26, %v5920_v30  ;;  %v4543_v32 = vrot.slane %v4536_v3, %v5920_v30  ;;  %v4551_v33 = vrot.slane %v5142_v25, %v5920_v30 }
 0xf00   :  { %v4485_v34 = vcombine.high %v4459_v11, %v4467_v7  ;;  %v4501_v38 = vcombine.high %v4475_v18, %v4483_v28  ;;  %v4484_v39 = vcombine.low %v4459_v11, %v4467_v7  ;;  %v4500_v36 = vcombine.low %v4475_v18, %v4483_v28 }
 0xf01   :  { %v4553_v20 = vcombine.high %v4527_v21, %v4535_v29  ;;  %v4569_v35 = vcombine.high %v4543_v32, %v4551_v33  ;;  %v4552_v4 = vcombine.low %v4527_v21, %v4535_v29  ;;  %v4568_v43 = vcombine.low %v4543_v32, %v4551_v33 }
 0xf02   :  { %v4499_v61 = vrot.slane %v4485_v34, %v5922_v37  ;;  %v4515_v44 = vrot.slane %v4501_v38, %v5922_v37  ;;  %v4492_v40 = vrot.slane %v4484_v39, %v5922_v37  ;;  %v4508_v49 = vrot.slane %v4500_v36, %v5922_v37  ;;  %v5629_v36 = vld [vmem:[%s6892_s8 + $0x18] sm:$0xff]  }
 0xf03   :  { %v4567_v30 = vrot.slane %v4553_v20, %v5922_v37  ;;  %v4583_v51 = vrot.slane %v4569_v35, %v5922_v37  ;;  %v4560_v54 = vrot.slane %v4552_v4, %v5922_v37  ;;  %v4576_v55 = vrot.slane %v4568_v43, %v5922_v37  ;;  %v5630_v20 = vld [vmem:[%s6894_s10 + $0x20] sm:$0xff]   ;;  %v5631_v35 = vld [vmem:[%s6894_s10 + $0x28] sm:$0xff]  }
 0xf04   :  { %v4518_v0 = vcombine.low %v4499_v61, %v4515_v44  ;;  %v4517_v27 = vcombine.high %v4492_v40, %v4508_v49  ;;  %v4516_v8 = vcombine.low %v4492_v40, %v4508_v49  ;;  %v4519_v9 = vcombine.high %v4499_v61, %v4515_v44 }
 0xf05   :  { %v4586_v17 = vcombine.low %v4567_v30, %v4583_v51  ;;  %v4584_v41 = vcombine.low %v4560_v54, %v4576_v55  ;;  %v4585_v56 = vcombine.high %v4560_v54, %v4576_v55  ;;  %v4587_v45 = vcombine.high %v4567_v30, %v4583_v51  ;;  %v5154_v54 = vld [vmem:[%s6890_s6 + $0x1] ss:$0 sm:$0xff] }
 0xf07   :  { %v5604_v59 = vpack.i.bf16 %v4586_v17, %v4518_v0  ;;  %v5599_v13 = vpack.i.bf16 %v4585_v56, %v4517_v27  ;;  %v5609_v60 = vpack.i.bf16 %v4587_v45, %v4519_v9  ;;  %v5155_v27 = vld [vmem:[%s6891_s7 + $0x1] ss:$0 sm:$0xff]  ;;  %v5632_v56 = vld [vmem:[%s6894_s10 + $0x30] sm:$0xff]   ;;  %v5633_v45 = vld [vmem:[%s6894_s10 + $0x38] sm:$0xff]  }
 0xf09   :  { %5605 = vrot.lane.b32.xlu1 %v5604_v59, %s6915_s24  ;;  %5600 = vrot.lane.b32.xlu0 %v5599_v13, %s6916_s30  ;;  %v5161_v59 = vld [vmem:[%s6893_s9 + $0x1] ss:$0 sm:$0xff] }
 0xf0d   :  { %5610 = vrot.lane.b32.xlu1 %v5609_v60, %s6917_s0 }
 0xf7b   :  { %v5606_v37 = vpop.permute.xlu1 %5605  ;;  %v5601_v58 = vpop.permute.xlu0 %5600 }
 0xf7c   :  { %v5603_v62 = vunpack.i.h.bf16 %v5601_v58  ;;  %v5602_v2 = vunpack.i.l.bf16 %v5601_v58  ;;  %v5608_v46 = vunpack.i.h.bf16 %v5606_v37  ;;  %v5607_v53 = vunpack.i.l.bf16 %v5606_v37 }
 0xf7e   :  { %v4613_v50 = vsel %vm1052_vm2, %v4584_v41, %v5603_v62  ;;  %v4612_v42 = vsel %vm1052_vm2, %v4516_v8, %v5602_v2 }
 0xf7f   :  { %v5611_v48 = vpop.permute.xlu1 %5610  ;;  %v4614_v52 = vsel %vm2184_vm4, %v4612_v42, %v5607_v53  ;;  %v4615_v19 = vsel %vm2184_vm4, %v4613_v50, %v5608_v46  ;;  %v5174_v42 = vld [vmem:[%s6895_s11 + $0x1] ss:$0 sm:$0xff] }
 0xf80   :  { %v5613_v5 = vunpack.i.h.bf16 %v5611_v48  ;;  %v5612_v14 = vunpack.i.l.bf16 %v5611_v48 }
 0xf82   :  { %v4616_v57 = vsel %vm2187_vm5, %v4614_v52, %v5612_v14  ;;  %v4617_v15 = vsel %vm2187_vm5, %v4615_v19, %v5613_v5 }
 0xf83   :  { %v4618_v12 = vpack.c.bf16 %v4617_v15, %v4616_v57 }
 0xf85   :  { %5533 = vmatmul.mubr.msk.bf16.vlgmr.msra.gmra.mrb[76].mxu0 %vm99_vm1, %v4618_v12 }
 0xf86   :  { %5552 = vmatprep.mubr.msk.bf16.mxu0 %vm5741_vm0, %v5740_v1  ;;  %5545 = vmatpush3.bf16.msra.mxu0 %v5630_v20 }
 0xf87   :  { %5546 = vmatprep.subr.bf16.mxu0 %v5740_v1 }
 0xf8a   :  { %5547 = vmatpush3.bf16.msra.mxu0 %v5631_v35 }
 0xf8b   :  { %5548 = vmatprep.subr.bf16.mxu0 %v5740_v1 }
 0xf8e   :  { %5549 = vmatpush3.bf16.msra.mxu0 %v5632_v56 }
 0xf8f   :  { %5550 = vmatprep.subr.bf16.mxu0 %v5740_v1 }
 0xf92   :  { %5551 = vmatpush3.bf16.msra.mxu0 %v5633_v45 }
0x1058   :  { %v4681_v6 = vpop.f32.mrb[76].mxu0 }
0x1059   :  { %v4682_v22 = vadd.f32 %v5148_v16, %v4681_v6  ;;  %v5534_v23 = vpop.f32.mrb[77].mxu0 }
0x105a   :  { %v4684_v24 = vpop.f32.mrb[78].mxu0 }
0x105b   :  { %v4685_v26 = vadd.f32 %v5148_v16, %v4684_v24  ;;  %v5535_v3 = vpop.f32.mrb[79].mxu0  ;;  %v4688_v25 = vadd.f32 %v4682_v22, %v6373_v10 }
0x105d   :  { %v4694_v11 = vsel %vm99_vm1, %v4688_v25, 0.0  ;;  %v4689_v7 = vadd.f32 %v4685_v26, %v6375_v63  ;;  %v5628_v63 = vld [vmem:[%s6892_s8 + $0x10] sm:$0xff]  }
0x105e   :  { %4695 = vadd.xlane.f32.xlu0 %v4694_v11  ;;  %5537 = vmatpush3.bf16.msra.mxu1 %v5628_v63  ;;  %v5182_v63 = vld [vmem:[%s6896_s12 + $0x1] ss:$0 sm:$0xff]  ;;  %s5758_s12 = smov [#allocation2]  }
0x105f   :  { %v4697_v18 = vsel %vm99_vm1, %v4689_v7, 0.0  ;;  %5538 = vmatprep.subr.bf16.mxu1 %v5740_v1  ;;  %s5019_s26 = sshll.u32 %s5758_s12, 4  ;;  %s5020_s26 = int_to_ptr.vmem [resolvable:$true] %s5019_s26 }
0x1060   :  { %4698 = vadd.xlane.f32.xlu1 %v4697_v18  ;;  %p5721_p1 = scmp.lt.s32.totalorder %s5020_s26, %s5020_s26 }
0x1062   :  { %5539 = vmatpush3.bf16.msra.mxu1 %v5629_v36 }
0x1063   :  { %5556 = vmatprep.subr.bf16.mxu1 %v5740_v1 }
0x10eb   :  { %v4696_v28 = vpop.xlane.xlu0 %4695 }
0x10ec   :  { %v4700_v47 = vmul.f32 0.03125, %v4696_v28 }
0x10ed   :  { %v4699_v21 = vpop.xlane.xlu1 %4698 }
0x10ee   :  { %v4702_v29 = vsub.f32 %v4688_v25, %v4700_v47  ;;  %v4701_v32 = vmul.f32 0.03125, %v4699_v21  ;;  %v5634_v47 = vld [vmem:[%s6898_s14] sm:$0xff]   ;;  %v5635_v21 = vld [vmem:[%s6898_s14 + $0x8] sm:$0xff]  }
0x10f0   :  { %v4703_v33 = vsub.f32 %v4689_v7, %v4701_v32  ;;  %v4704_v34 = vmul.f32 %v4702_v29, %v4702_v29 }
0x10f2   :  { %v4706_v38 = vsel %vm99_vm1, %v4704_v34, 0.0  ;;  %v4705_v39 = vmul.f32 %v4703_v33, %v4703_v33 }
0x10f3   :  { %4707 = vadd.xlane.f32.xlu0 %v4706_v38 }
0x10f4   :  { %v4709_v10 = vsel %vm99_vm1, %v4705_v39, 0.0 }
0x10f7   :  { %4710 = vadd.xlane.f32.xlu0 %v4709_v10 }
0x1180   :  { %v4708_v4 = vpop.xlane.xlu0 %4707 }
0x1181   :  { %v4712_v43 = vmul.f32 0.03125, %v4708_v4 }
0x1183   :  { %v4714_v61 = vadd.f32 1e-05, %v4712_v43 }
0x1184   :  { %v4711_v44 = vpop.xlane.xlu0 %4710 }
0x1185   :  { %5708 = vrsqrt.f32 %v4714_v61  ;;  %v4713_v40 = vmul.f32 0.03125, %v4711_v44 }
0x1187   :  { %v4715_v49 = vadd.f32 1e-05, %v4713_v40 }
0x1189   :  { %5710 = vrsqrt.f32 %v4715_v49  ;;  %v5184_v49 = vld [vmem:[%s6899_s15] ss:$0 sm:$0xff] }
0x118f   :  { %v5709_v30 = vpop.eup %5708 }
0x1190   :  { %v4718_v51 = vmul.f32 %v5709_v30, %v4702_v29 }
0x1192   :  { %v4726_v31 = vmul.f32 %v5154_v54, %v4718_v51 }
0x1193   :  { %v5711_v55 = vpop.eup %5710 }
0x1194   :  { %v4719_v0 = vmul.f32 %v5711_v55, %v4703_v33  ;;  %v4734_v9 = vadd.f32 %v5155_v27, %v4726_v31 }
0x1196   :  { %v4727_v8 = vmul.f32 %v5154_v54, %v4719_v0 }
0x1198   :  { %v4735_v17 = vadd.f32 %v5155_v27, %v4727_v8 }
0x119a   :  { %v4736_v41 = vpack.c.bf16 %v4735_v17, %v4734_v9 }
0x119c   :  { %5541 = vmatmul.mubr.msk.bf16.vlgmr.msra.gmra.mrb[72].mxu1 %vm99_vm1, %v4736_v41 }
0x119d   :  { %5560 = vmatprep.mubr.msk.bf16.mxu1 %vm5741_vm0, %v5740_v1  ;;  %5557 = vmatpush3.bf16.msra.mxu1 %v5634_v47 }
0x119e   :  { %5558 = vmatprep.subr.bf16.mxu1 %v5740_v1  ;;  %v5183_v1 = vld [vmem:[%s6897_s13 + $0x1] ss:$0 sm:$0xff]  ;;  %s5716_s13 = scalar_lea.vmem %s5020_s26, 128 }
0x119f   :  { %p5717_p0 = scmp.ne.s32.totalorder %s5020_s26, %s5716_s13  ;;  %p5722_p2 = scmp.lt.s32.totalorder %s5716_s13, %s5716_s13 }
0x11a1   :  { %5559 = vmatpush3.bf16.msra.mxu1 %v5635_v21  ;;  %p5723_p3 = por %p5722_p2, %p5721_p1 }
0x11a3   :  { %p5724_p4 = pnand %p5723_p3, %p5717_p0 }
0x126f   :  { %v4799_v13 = vpop.f32.mrb[72].mxu1 }
0x1270   :  { %v4800_v60 = vadd.f32 %v5161_v59, %v4799_v13  ;;  %v5542_v37 = vpop.f32.mrb[73].mxu1 }
0x1271   :  { %v4802_v58 = vpop.f32.mrb[74].mxu1 }
0x1272   :  { %v4803_v62 = vadd.f32 %v5161_v59, %v4802_v58  ;;  %v5543_v2 = vpop.f32.mrb[75].mxu1  ;;  %v4806_v46 = vmax.f32 %v4800_v60, 0.0 }
0x1274   :  { %v4807_v53 = vmax.f32 %v4803_v62, 0.0 }
0x1276   :  { %v4808_v50 = vpack.c.bf16 %v4807_v53, %v4806_v46 }
0x1278   :  { %5553 = vmatmul.mubr.msk.bf16.vlgmr.msra.gmra.mrb[80].mxu0 %vm2415_vm6, %v4808_v50 }
0x134b   :  { %v4887_v48 = vpop.f32.mrb[80].mxu0 }
0x134c   :  { %v4888_v5 = vadd.f32 %v5174_v42, %v4887_v48  ;;  %v5554_v14 = vpop.f32.mrb[81].mxu0 }
0x134d   :  { %v4890_v52 = vpop.f32.mrb[82].mxu0 }
0x134e   :  { %v4891_v19 = vadd.f32 %v5174_v42, %v4890_v52  ;;  %v5555_v57 = vpop.f32.mrb[83].mxu0  ;;  %v4894_v15 = vadd.f32 %v4888_v5, %v4734_v9 }
0x1350   :  { %v4900_v12 = vsel %vm99_vm1, %v4894_v15, 0.0  ;;  %v4895_v16 = vadd.f32 %v4891_v19, %v4735_v17 }
0x1351   :  { %4901 = vadd.xlane.f32.xlu1 %v4900_v12 }
0x1352   :  { %v4903_v6 = vsel %vm99_vm1, %v4895_v16, 0.0 }
0x1353   :  { %4904 = vadd.xlane.f32.xlu0 %v4903_v6 }
0x13de   :  { %v4902_v22 = vpop.xlane.xlu1 %4901 }
0x13df   :  { %v4906_v23 = vmul.f32 0.03125, %v4902_v22 }
0x13e0   :  { %v4905_v24 = vpop.xlane.xlu0 %4904 }
0x13e1   :  { %v4908_v26 = vsub.f32 %v4894_v15, %v4906_v23  ;;  %v4907_v3 = vmul.f32 0.03125, %v4905_v24 }
0x13e3   :  { %v4909_v25 = vsub.f32 %v4895_v16, %v4907_v3  ;;  %v4910_v11 = vmul.f32 %v4908_v26, %v4908_v26 }
0x13e5   :  { %v4912_v7 = vsel %vm99_vm1, %v4910_v11, 0.0  ;;  %v4911_v18 = vmul.f32 %v4909_v25, %v4909_v25 }
0x13e6   :  { %4913 = vadd.xlane.f32.xlu1 %v4912_v7 }
0x13e7   :  { %v4915_v28 = vsel %vm99_vm1, %v4911_v18, 0.0 }
0x13e8   :  { %4916 = vadd.xlane.f32.xlu0 %v4915_v28 }
0x1473   :  { %v4914_v29 = vpop.xlane.xlu1 %4913 }
0x1474   :  { %v4918_v32 = vmul.f32 0.03125, %v4914_v29 }
0x1475   :  { %v4917_v33 = vpop.xlane.xlu0 %4916 }
0x1476   :  { %v4920_v34 = vadd.f32 1e-05, %v4918_v32  ;;  %v4919_v38 = vmul.f32 0.03125, %v4917_v33 }
0x1478   :  { %5712 = vrsqrt.f32 %v4920_v34  ;;  %v4921_v39 = vadd.f32 1e-05, %v4919_v38 }
0x147a   :  { %5714 = vrsqrt.f32 %v4921_v39 }
0x1482   :  { %v5713_v10 = vpop.eup %5712 }
0x1483   :  { %v4924_v36 = vmul.f32 %v5713_v10, %v4908_v26 }
0x1484   :  { %v5715_v20 = vpop.eup %5714 }
0x1485   :  { %v4932_v35 = vmul.f32 %v5182_v63, %v4924_v36  ;;  %v4925_v4 = vmul.f32 %v5715_v20, %v4909_v25 }
0x1487   :  { %v4933_v43 = vmul.f32 %v5182_v63, %v4925_v4  ;;  %v4940_v61 = vadd.f32 %v5183_v1, %v4932_v35 }
0x1489   :  { %v4941_v44 = vadd.f32 %v5183_v1, %v4933_v43 }
0x148b   :  { %v4942_v40 = vpack.c.bf16 %v4941_v44, %v4940_v61 }
0x148d   :  { %5561 = vmatmul.mubr.msk.bf16.vlgmr.msra.gmra.mrb[76].mxu1 %vm99_vm1, %v4942_v40 }
0x1560   :  { %v5003_v30 = vpop.f32.mrb[76].mxu1 }
0x1561   :  { %v5562_v51 = vpop.f32.mrb[77].mxu1  ;;  %v5004_v55 = vadd.f32 %v5184_v49, %v5003_v30 }
0x1562   :  { %v5006_v54 = vpop.f32.mrb[78].mxu1 }
0x1563   :  { %v5007_v31 = vadd.f32 %v5184_v49, %v5006_v54  ;;  %v5563_v0 = vpop.f32.mrb[79].mxu1 }
0x1565   :  { %v5195_v27 = vpack.c.bf16 %v5007_v31, %v5004_v55 }
0x1567   :  { %5196 = vst [vmem:[#allocation2] sm:$0xff] %v5195_v27  }
0x1568   :  { %5727 = shalt.err (!%p5724_p4)
}
0x1569   :  { %s5728_s29 = scalar_lea.hbm %s6900_s16, 128 }
0x156a   :  { %p5729_p5 = scmp.ne.s32.totalorder %s6900_s16, %s5728_s29  ;;  %p5732_p6 = scmp.lt.u32.totalorder %s5728_s29, %s6900_s16 }
0x156c   :  { %p5734_p7 = pnand %p5732_p6, %p5729_p5 }
0x156e   :  { %5737 = shalt.err (!%p5734_p7)
}
0x156f   :  { %s5759_s20 = smov 4  }
0x1570   :  { %5025 = dma.vmem_to_hbm [thread:$0]  %s5020_s26, 128, %s6900_s16, [#allocation3], %s5749_s25, %s5749_s25, %s5759_s20  }
0x1571   :  { %5738 = dma.done.wait [#allocation3], 128  }
0x1572   :  { %5739 = vsyncadd [#allocation3], 4294967168 }
0x1573   :  { %5029 = vsyncpa [#allocation3], 1 }

</bundles_post_ra>
